<compile_context>
chip_gen: v7x
topology: tpu7x:2x2x1
jax: 0.10.0
libtpu: 0.0.40
codegen_flags: <defaults>
</compile_context>

<pallas_src>
import functools
import math

import jax
import jax.numpy as jnp
from jax import lax
from jax.experimental import pallas as pl
from jax.experimental.pallas import tpu as pltpu


NEG_INF = float(jnp.finfo(jnp.float32).min)


# ----------------------------- in-kernel helpers -----------------------------

def _layernorm(x, gamma, beta, eps):
    mean = jnp.mean(x, axis=-1, keepdims=True)
    var = jnp.mean((x - mean) ** 2, axis=-1, keepdims=True)
    return (x - mean) * lax.rsqrt(var + eps) * gamma + beta


def _gelu_new(x):
    # ACT2FN["gelu_new"]: tanh-approximation GELU used by GPT-2.
    return 0.5 * x * (1.0 + jnp.tanh(
        math.sqrt(2.0 / math.pi) * (x + 0.044715 * x * x * x)))


def _const_spec(shape):
    """BlockSpec for a grid-constant (weight/bias/LN) operand.

    Constant index_map -> fetched once; request single buffering so the
    compiler does not waste VMEM on a second buffer that is never used.
    """
    index_map = lambda *_: (0,) * len(shape)
    if hasattr(pl, "Buffered"):
        try:
            return pl.BlockSpec(shape, index_map, pipeline_mode=pl.Buffered(1))
        except TypeError:  # older BlockSpec without pipeline_mode
            pass
    return pl.BlockSpec(shape, index_map)


def _compiler_params(sem):
    # Generation-aware scoped-VMEM limit: ~3/4 of physical VMEM
    # (v5e/v6e: 128 MiB -> 96 MiB, v7x: 64 MiB -> 48 MiB).
    cap = 64 << 20
    try:
        info = pltpu.get_tpu_info()
        cap = int(getattr(info, "vmem_capacity_bytes", cap))
    except Exception:
        pass
    limit = max(16 << 20, (cap * 3) // 4)
    return pltpu.CompilerParams(dimension_semantics=sem,
                                vmem_limit_bytes=int(limit))


# ------------------------------- Pallas kernels -------------------------------

def ln_qkv_kernel(x_ref, g_ref, b_ref, w_ref, bias_ref, qkv_ref, *, eps):
    # ln_1 + c_attn.  The 1/sqrt(head_dim) attention scale is already folded
    # into the q-columns of w/bias (prepare_params), so this is a plain GEMM.
    x = x_ref[...].astype(jnp.float32)
    h = _layernorm(x, g_ref[...].astype(jnp.float32),
                   b_ref[...].astype(jnp.float32), eps)
    qkv = jnp.dot(h.astype(w_ref.dtype), w_ref[...],
                  preferred_element_type=jnp.float32)
    qkv_ref[...] = (qkv + bias_ref[...].astype(jnp.float32)).astype(qkv_ref.dtype)


def flash_attn_kernel(q_ref, k_ref, v_ref, o_ref, m_sc, l_sc, acc_sc,
                      *, num_heads, head_dim):
    # q_ref/k_ref/v_ref: (tile, D) column slabs taken straight from the
    # [T, 3D] qkv activation (q already pre-scaled).  Heads are handled with
    # per-head static lane slices; the merged-heads accumulator acc_sc is
    # (tile, D) so the final HBM store is a single lane-dense slab.
    # Invariant: kv grid axis is the *inner, sequential* ("arbitrary") axis and
    # the q/kv tile sizes are equal (asserted in the wrapper).
    qi = pl.program_id(0)
    ki = pl.program_id(1)
    tq = q_ref.shape[0]
    tk = k_ref.shape[0]

    @pl.when(ki == 0)
    def _():
        m_sc[...] = jnp.full_like(m_sc, NEG_INF)
        l_sc[...] = jnp.zeros_like(l_sc)
        acc_sc[...] = jnp.zeros_like(acc_sc)

    def process(masked):
        if masked:
            # Diagonal tile only: local lower-triangular mask (tq == tk and the
            # global row/col offsets coincide on the diagonal).
            r = lax.broadcasted_iota(jnp.int32, (tq, tk), 0)
            c = lax.broadcasted_iota(jnp.int32, (tq, tk), 1)
            causal = c <= r
        for h in range(num_heads):
            sl = slice(h * head_dim, (h + 1) * head_dim)
            q = q_ref[:, sl]                                    # (tq, Dh)
            k = k_ref[:, sl]                                    # (tk, Dh)
            v = v_ref[:, sl]                                    # (tk, Dh)
            s = jnp.dot(q, k.T, preferred_element_type=jnp.float32)
            if masked:
                s = jnp.where(causal, s, NEG_INF)
            m_prev = m_sc[:, h:h + 1]                           # (tq, 1)
            m_new = jnp.maximum(m_prev, jnp.max(s, axis=-1, keepdims=True))
            alpha = jnp.exp(m_prev - m_new)
            p = jnp.exp(s - m_new)
            l_sc[:, h:h + 1] = alpha * l_sc[:, h:h + 1] + \
                jnp.sum(p, axis=-1, keepdims=True)
            acc_sc[:, sl] = alpha * acc_sc[:, sl] + jnp.dot(
                p.astype(v.dtype), v, preferred_element_type=jnp.float32)
            m_sc[:, h:h + 1] = m_new

    @pl.when(ki < qi)          # strictly below the diagonal: no mask needed
    def _():
        process(False)

    @pl.when(ki == qi)         # diagonal tile: mask, then normalize + store
    def _():
        process(True)
        for h in range(num_heads):
            sl = slice(h * head_dim, (h + 1) * head_dim)
            inv_l = pl.reciprocal(l_sc[:, h:h + 1], approx=True)   # EUP
            acc_sc[:, sl] = acc_sc[:, sl] * inv_l
        o_ref[...] = acc_sc[...].astype(o_ref.dtype)
    # ki > qi: kv blocks are clamped to the diagonal block by the index_map
    # (no DMA) and no compute runs.


def proj_mlp_kernel(attn_ref, x_ref, w_ao_ref, b_ao_ref, g2_ref, b2_ref,
                    w_fc_ref, b_fc_ref, w_fp_ref, b_fp_ref, *rest,
                    eps, fuse_final_ln):
    # attention c_proj + residual + ln_2 + MLP(gelu_new) + residual,
    # tiled over d_inner (inner "arbitrary" grid axis) with f32 accumulation.
    if fuse_final_ln:
        gf_ref, bf_ref, o_ref, h1_sc, hn_sc, acc_sc = rest
    else:
        o_ref, h1_sc, hn_sc, acc_sc = rest
    j = pl.program_id(1)

    @pl.when(j == 0)
    def _():
        x = x_ref[...].astype(jnp.float32)
        a = jnp.dot(attn_ref[...], w_ao_ref[...],
                    preferred_element_type=jnp.float32)
        h1 = x + a + b_ao_ref[...].astype(jnp.float32)
        h1_sc[...] = h1
        hn_sc[...] = _layernorm(h1, g2_ref[...].astype(jnp.float32),
                                b2_ref[...].astype(jnp.float32), eps)
        acc_sc[...] = jnp.zeros_like(acc_sc)

    hn = hn_sc[...]
    fc = jnp.dot(hn.astype(w_fc_ref.dtype), w_fc_ref[...],
                 preferred_element_type=jnp.float32)
    fc = _gelu_new(fc + b_fc_ref[...].astype(jnp.float32))
    acc_sc[...] += jnp.dot(fc.astype(w_fp_ref.dtype), w_fp_ref[...],
                           preferred_element_type=jnp.float32)

    @pl.when(j == pl.num_programs(1) - 1)
    def _():
        out = h1_sc[...] + acc_sc[...] + b_fp_ref[...].astype(jnp.float32)
        if fuse_final_ln:
            out = _layernorm(out, gf_ref[...].astype(jnp.float32),
                             bf_ref[...].astype(jnp.float32), eps)
        o_ref[...] = out.astype(o_ref.dtype)


# ------------------------------- JAX wrappers ---------------------------------

def run_ln_qkv(x, blk, *, tile, eps):
    T, D = x.shape
    return pl.pallas_call(
        functools.partial(ln_qkv_kernel, eps=eps),
        out_shape=jax.ShapeDtypeStruct((T, 3 * D), x.dtype),
        grid=(T // tile,),
        in_specs=[
            pl.BlockSpec((tile, D), lambda i: (i, 0)),   # activations stream
            _const_spec((1, D)),                         # ln1 gamma (resident)
            _const_spec((1, D)),                         # ln1 beta
            _const_spec((D, 3 * D)),                     # w_qkv (q-scaled)
            _const_spec((1, 3 * D)),                     # b_qkv (q-scaled)
        ],
        out_specs=pl.BlockSpec((tile, 3 * D), lambda i: (i, 0)),
        compiler_params=_compiler_params(("parallel",)),
    )(x, blk["ln1_g"], blk["ln1_b"], blk["w_qkv"], blk["b_qkv"])


def run_flash_attention(qkv, *, num_heads, head_dim, tile):
    T = qkv.shape[0]
    D = num_heads * head_dim
    assert qkv.shape[1] == 3 * D
    assert T % tile == 0
    nq = T // tile
    nk = T // tile          # tq == tk: required by the causal tile logic
    kernel = functools.partial(flash_attn_kernel,
                               num_heads=num_heads, head_dim=head_dim)
    return pl.pallas_call(
        kernel,
        out_shape=jax.ShapeDtypeStruct((T, D), qkv.dtype),
        grid=(nq, nk),
        in_specs=[
            # q / k / v read directly from the qkv slab via column-block
            # index_maps; k/v are clamped to the causal limit so fully-masked
            # kv tiles re-use the previous block (no new DMA).
            pl.BlockSpec((tile, D), lambda qi, ki: (qi, 0)),
            pl.BlockSpec((tile, D), lambda qi, ki: (jnp.minimum(ki, qi), 1)),
            pl.BlockSpec((tile, D), lambda qi, ki: (jnp.minimum(ki, qi), 2)),
        ],
        out_specs=pl.BlockSpec((tile, D), lambda qi, ki: (qi, 0)),  # lane-dense
        scratch_shapes=[pltpu.VMEM((tile, num_heads), jnp.float32),   # m
                        pltpu.VMEM((tile, num_heads), jnp.float32),   # l
                        pltpu.VMEM((tile, D), jnp.float32)],          # acc
        compiler_params=_compiler_params(("parallel", "arbitrary")),
    )(qkv, qkv, qkv)


def run_proj_mlp(attn, x, blk, *, tile, inner_tile, eps, lnf=None):
    T, D = x.shape
    d_inner = blk["w_fc"].shape[1]
    assert d_inner % inner_tile == 0
    nt = T // tile
    nj = d_inner // inner_tile
    fuse = lnf is not None
    kernel = functools.partial(proj_mlp_kernel, eps=eps, fuse_final_ln=fuse)
    in_specs = [
        pl.BlockSpec((tile, D), lambda i, j: (i, 0)),            # attn (merged)
        pl.BlockSpec((tile, D), lambda i, j: (i, 0)),            # residual x
        _const_spec((D, D)),                                     # w_ao
        _const_spec((1, D)),                                     # b_ao
        _const_spec((1, D)),                                     # ln2_g
        _const_spec((1, D)),                                     # ln2_b
        pl.BlockSpec((D, inner_tile), lambda i, j: (0, j)),      # w_fc slice
        pl.BlockSpec((1, inner_tile), lambda i, j: (0, j)),      # b_fc slice
        pl.BlockSpec((inner_tile, D), lambda i, j: (j, 0)),      # w_fp slice
        _const_spec((1, D)),                                     # b_fp
    ]
    args = [attn, x, blk["w_ao"], blk["b_ao"], blk["ln2_g"], blk["ln2_b"],
            blk["w_fc"], blk["b_fc"], blk["w_fp"], blk["b_fp"]]
    if fuse:
        in_specs += [_const_spec((1, D)), _const_spec((1, D))]   # ln_f params
        args += [lnf[0], lnf[1]]
    return pl.pallas_call(
        kernel,
        out_shape=jax.ShapeDtypeStruct((T, D), x.dtype),
        grid=(nt, nj),
        in_specs=in_specs,
        out_specs=pl.BlockSpec((tile, D), lambda i, j: (i, 0)),
        scratch_shapes=[pltpu.VMEM((tile, D), jnp.float32),      # h1 (residual)
                        pltpu.VMEM((tile, D), jnp.float32),      # ln_2 output
                        pltpu.VMEM((tile, D), jnp.float32)],     # mlp accum
        compiler_params=_compiler_params(("parallel", "arbitrary")),
    )(*args)


def prepare_params(params, cfg):
    """One-time weight prep: fold 1/sqrt(head_dim) into the q columns of
    c_attn so the attention kernel consumes pre-scaled q for free."""
    D = cfg["num_heads"] * cfg["head_dim"]
    q_scale = 1.0 / math.sqrt(cfg["head_dim"])
    scale_cols = jnp.concatenate(
        [jnp.full((D,), q_scale, jnp.float32),
         jnp.ones((2 * D,), jnp.float32)])[None, :]
    out = dict(params)
    blocks = []
    for blk in params["blocks"]:
        b = dict(blk)
        b["w_qkv"] = (blk["w_qkv"].astype(jnp.float32) *
                      scale_cols).astype(blk["w_qkv"].dtype)
        b["b_qkv"] = (blk["b_qkv"].astype(jnp.float32) *
                      scale_cols).astype(blk["b_qkv"].dtype)
        blocks.append(b)
    out["blocks"] = blocks
    return out


def gpt2_forward(params, input_ids, position_ids, cfg):
    """params must be prepare_params() output (q-scaled c_attn weights)."""
    H, Dh, eps = cfg["num_heads"], cfg["head_dim"], cfg["eps"]
    D = H * Dh
    tile = cfg["tile_t"]
    inner_tile = cfg["inner_tile"]

    # Embedding gathers (plain-JAX glue).
    h = jnp.take(params["wte"], input_ids, axis=0) + \
        jnp.take(params["wpe"], position_ids, axis=0)
    T = h.shape[0]
    assert T % tile == 0, "token count must be a multiple of the token tile"

    n_layers = len(params["blocks"])
    cache_kvs = []
    for li, blk in enumerate(params["blocks"]):
        qkv = run_ln_qkv(h, blk, tile=tile, eps=eps)              # [T, 3D]
        attn = run_flash_attention(qkv, num_heads=H, head_dim=Dh,
                                   tile=tile)                     # [T, D]
        last = li == n_layers - 1
        lnf = (params["lnf_g"], params["lnf_b"]) if last else None
        h = run_proj_mlp(attn, h, blk, tile=tile, inner_tile=inner_tile,
                         eps=eps, lnf=lnf)                        # ln_f fused on last
        # Present-KV in the module's _split_heads layout [H, T, Dh]
        # (output formatting only; nothing downstream re-reads it here).
        k = qkv[:, D:2 * D].reshape(T, H, Dh).transpose(1, 0, 2)
        v = qkv[:, 2 * D:].reshape(T, H, Dh).transpose(1, 0, 2)
        cache_kvs.append((k, v))
    return h, tuple(cache_kvs)


# ------------------------------ pure-JAX reference ----------------------------

def _ref_forward(params, input_ids, position_ids, cfg):
    H, Dh, eps = cfg["num_heads"], cfg["head_dim"], cfg["eps"]
    f32 = jnp.float32
    h = params["wte"][input_ids].astype(f32) + \
        params["wpe"][position_ids].astype(f32)
    for blk in params["blocks"]:
        x = h
        hn = _layernorm(x, blk["ln1_g"].astype(f32), blk["ln1_b"].astype(f32), eps)
        qkv = hn @ blk["w_qkv"].astype(f32) + blk["b_qkv"].astype(f32)
        T, D = x.shape
        q, k, v = jnp.split(qkv, 3, axis=-1)
        q = q.reshape(T, H, Dh).transpose(1, 0, 2)
        k = k.reshape(T, H, Dh).transpose(1, 0, 2)
        v = v.reshape(T, H, Dh).transpose(1, 0, 2)
        s = jnp.einsum("htd,hsd->hts", q, k) / math.sqrt(Dh)
        causal = jnp.tril(jnp.ones((T, T), dtype=bool))
        s = jnp.where(causal[None], s, jnp.finfo(f32).min)
        p = jax.nn.softmax(s, axis=-1)
        a = jnp.einsum("hts,hsd->htd", p, v).transpose(1, 0, 2).reshape(T, D)
        a = a @ blk["w_ao"].astype(f32) + blk["b_ao"].astype(f32)
        h1 = x + a
        hn2 = _layernorm(h1, blk["ln2_g"].astype(f32), blk["ln2_b"].astype(f32), eps)
        fc = _gelu_new(hn2 @ blk["w_fc"].astype(f32) + blk["b_fc"].astype(f32))
        h = h1 + (fc @ blk["w_fp"].astype(f32) + blk["b_fp"].astype(f32))
    return _layernorm(h, params["lnf_g"].astype(f32),
                      params["lnf_b"].astype(f32), eps)


# ----------------------------------- params ------------------------------------

def init_params(key, cfg):
    V, P, D = cfg["vocab"], cfg["max_pos"], cfg["hidden"]
    d_inner, L, dt = cfg["inner"], cfg["layers"], cfg["dtype"]
    ks = jax.random.split(key, 4 + 10 * L)
    std = 0.02
    params = {
        "wte": (std * jax.random.normal(ks[0], (V, D))).astype(dt),
        "wpe": (std * jax.random.normal(ks[1], (P, D))).astype(dt),
        "lnf_g": (1.0 + 0.01 * jax.random.normal(ks[2], (1, D))).astype(dt),
        "lnf_b": (0.01 * jax.random.normal(ks[3], (1, D))).astype(dt),
        "blocks": [],
    }
    idx = 4
    for _ in range(L):
        k = ks[idx:idx + 10]
        idx += 10
        params["blocks"].append({
            "ln1_g": (1.0 + 0.01 * jax.random.normal(k[0], (1, D))).astype(dt),
            "ln1_b": (0.01 * jax.random.normal(k[1], (1, D))).astype(dt),
            "w_qkv": (std * jax.random.normal(k[2], (D, 3 * D))).astype(dt),
            "b_qkv": jnp.zeros((1, 3 * D), dt),
            "w_ao": (std * jax.random.normal(k[3], (D, D))).astype(dt),
            "b_ao": jnp.zeros((1, D), dt),
            "ln2_g": (1.0 + 0.01 * jax.random.normal(k[4], (1, D))).astype(dt),
            "ln2_b": (0.01 * jax.random.normal(k[5], (1, D))).astype(dt),
            "w_fc": (std * jax.random.normal(k[6], (D, d_inner))).astype(dt),
            "b_fc": jnp.zeros((1, d_inner), dt),
            "w_fp": (std * jax.random.normal(k[7], (d_inner, D))).astype(dt),
            "b_fp": jnp.zeros((1, D), dt),
        })
    return params


# ----------------------------------- main --------------------------------------

if __name__ == "__main__":
    # Small demo config. hidden=128 keeps every block's minor dim lane-aligned
    # (multiples of 128). T=16 with tile_t=8 gives 2x2 q/kv tiles (exercises
    # diag-masked, unmasked and fully-skipped kv tiles) and 2 inner-MLP tiles
    # (inner=256, inner_tile=128). Even tile counts keep both v7x cores busy.
    # For production shapes use tile_t>=256, inner_tile 512-1024 and
    # cfg["dtype"]=jnp.bfloat16 (f32 accumulation is kept inside the kernels).
    cfg = dict(vocab=64, max_pos=64, hidden=128, num_heads=4, head_dim=32,
               layers=2, inner=256, eps=1e-5, tile_t=8, inner_tile=128,
               dtype=jnp.float32)
    T = 16

    key = jax.random.PRNGKey(0)
    pkey, ikey = jax.random.split(key)
    params = init_params(pkey, cfg)
    run_params = prepare_params(params, cfg)   # one-time q-scale fold

    input_ids = jax.random.randint(ikey, (T,), 0, cfg["vocab"], dtype=jnp.int32)
    position_ids = jnp.arange(T, dtype=jnp.int32)

    fwd = jax.jit(lambda p, ids, pos: gpt2_forward(p, ids, pos, cfg))
    hidden, cache_kvs = fwd(run_params, input_ids, position_ids)
    hidden = jax.block_until_ready(hidden)
    jax.block_until_ready(cache_kvs)

    # silent correctness check against a pure-JAX reference
    ref = _ref_forward(params, input_ids, position_ids, cfg)
    assert hidden.shape == (T, cfg["hidden"])
    assert cache_kvs[0][0].shape == (cfg["num_heads"], T, cfg["head_dim"])
    err = float(jnp.max(jnp.abs(hidden.astype(jnp.float32) - ref)))
    assert jnp.allclose(hidden.astype(jnp.float32), ref,
                        atol=5e-3, rtol=5e-3), err

    print("KERNEL_OK")
</pallas_src>

<mosaic_0001>
module attributes {stable_mosaic.version = 11 : i64} {
  func.func @ln_qkv_kernel(%arg0: i32, %arg1: memref<8x128xf32, #tpu.memory_space<vmem>>, %arg2: memref<1x128xf32, #tpu.memory_space<vmem>>, %arg3: memref<1x128xf32, #tpu.memory_space<vmem>>, %arg4: memref<128x384xf32, #tpu.memory_space<vmem>>, %arg5: memref<1x384xf32, #tpu.memory_space<vmem>>, %arg6: memref<8x384xf32, #tpu.memory_space<vmem>>) attributes {dimension_semantics = [#tpu.dimension_semantics<parallel>], iteration_bounds = array<i64: 2>, scalar_prefetch = 0 : i64, scratch_operands = 0 : i64, tpu.core_type = #tpu.core_type<tc>, window_params = [{transform_indices = @transform_0, window_bounds = array<i64: 8, 128>}, {pipeline_mode = #tpu.pipeline_mode<synchronous>, transform_indices = @transform_1, window_bounds = array<i64: 1, 128>}, {pipeline_mode = #tpu.pipeline_mode<synchronous>, transform_indices = @transform_2, window_bounds = array<i64: 1, 128>}, {pipeline_mode = #tpu.pipeline_mode<synchronous>, transform_indices = @transform_3, window_bounds = array<i64: 128, 384>}, {pipeline_mode = #tpu.pipeline_mode<synchronous>, transform_indices = @transform_4, window_bounds = array<i64: 1, 384>}, {transform_indices = @transform_5, window_bounds = array<i64: 8, 384>}]} {
    %c0 = arith.constant 0 : index
    %c0_0 = arith.constant 0 : index
    %0 = vector.load %arg1[%c0, %c0_0] : memref<8x128xf32, #tpu.memory_space<vmem>>, vector<8x128xf32>
    %c0_1 = arith.constant 0 : index
    %c0_2 = arith.constant 0 : index
    %1 = vector.load %arg2[%c0_1, %c0_2] : memref<1x128xf32, #tpu.memory_space<vmem>>, vector<1x128xf32>
    %c0_3 = arith.constant 0 : index
    %c0_4 = arith.constant 0 : index
    %2 = vector.load %arg3[%c0_3, %c0_4] : memref<1x128xf32, #tpu.memory_space<vmem>>, vector<1x128xf32>
    %cst = arith.constant dense<0.000000e+00> : vector<8xf32>
    %3 = vector.multi_reduction <add>, %0, %cst [1] : vector<8x128xf32> to vector<8xf32>
    %4 = vector.shape_cast %3 : vector<8xf32> to vector<8x1xf32>
    %cst_5 = arith.constant 1.280000e+02 : f32
    %5 = vector.broadcast %cst_5 : f32 to vector<8x1xf32>
    %6 = arith.divf %4, %5 : vector<8x1xf32>
    %7 = vector.broadcast %6 : vector<8x1xf32> to vector<8x128xf32>
    %8 = arith.subf %0, %7 : vector<8x128xf32>
    %9 = arith.mulf %8, %8 : vector<8x128xf32>
    %cst_6 = arith.constant dense<0.000000e+00> : vector<8xf32>
    %10 = vector.multi_reduction <add>, %9, %cst_6 [1] : vector<8x128xf32> to vector<8xf32>
    %11 = vector.shape_cast %10 : vector<8xf32> to vector<8x1xf32>
    %cst_7 = arith.constant 1.280000e+02 : f32
    %12 = vector.broadcast %cst_7 : f32 to vector<8x1xf32>
    %13 = arith.divf %11, %12 : vector<8x1xf32>
    %14 = vector.broadcast %6 : vector<8x1xf32> to vector<8x128xf32>
    %15 = arith.subf %0, %14 : vector<8x128xf32>
    %cst_8 = arith.constant 9.99999974E-6 : f32
    %16 = vector.broadcast %cst_8 : f32 to vector<8x1xf32>
    %17 = arith.addf %13, %16 : vector<8x1xf32>
    %18 = math.rsqrt %17 : vector<8x1xf32>
    %19 = vector.broadcast %18 : vector<8x1xf32> to vector<8x128xf32>
    %20 = arith.mulf %15, %19 : vector<8x128xf32>
    %21 = vector.broadcast %1 : vector<1x128xf32> to vector<8x128xf32>
    %22 = arith.mulf %20, %21 : vector<8x128xf32>
    %23 = vector.broadcast %2 : vector<1x128xf32> to vector<8x128xf32>
    %24 = arith.addf %22, %23 : vector<8x128xf32>
    %c0_9 = arith.constant 0 : index
    %c0_10 = arith.constant 0 : index
    %25 = vector.load %arg4[%c0_9, %c0_10] : memref<128x384xf32, #tpu.memory_space<vmem>>, vector<128x384xf32>
    %cst_11 = arith.constant dense<0.000000e+00> : vector<8x384xf32>
    %26 = tpu.matmul %24, %25, %cst_11 {dimension_numbers = #tpu.dot_dimension_numbers<[1], [0], [0], [1], [0, 0, 1, 1], [], []>} : vector<8x128xf32>, vector<128x384xf32>, vector<8x384xf32> -> vector<8x384xf32>
    %c0_12 = arith.constant 0 : index
    %c0_13 = arith.constant 0 : index
    %27 = vector.load %arg5[%c0_12, %c0_13] : memref<1x384xf32, #tpu.memory_space<vmem>>, vector<1x384xf32>
    %28 = vector.broadcast %27 : vector<1x384xf32> to vector<8x384xf32>
    %29 = arith.addf %26, %28 : vector<8x384xf32>
    %c0_14 = arith.constant 0 : index
    %c0_15 = arith.constant 0 : index
    %30 = vector.load %arg6[%c0_14, %c0_15] : memref<8x384xf32, #tpu.memory_space<vmem>>, vector<8x384xf32>
    tpu.vector_store %arg6[%c0_14, %c0_15], %29 {strides = array<i32>} : memref<8x384xf32, #tpu.memory_space<vmem>>, vector<8x384xf32>,
    return
  }
  func.func @transform_0(%arg0: i32) -> (i32, i32) {
    %c0_i32 = arith.constant 0 : i32
    %c0_i32_0 = arith.constant 0 : i32
    return %arg0, %c0_i32 : i32, i32
  }
  func.func @transform_1(%arg0: i32) -> (i32, i32) {
    %c0_i32 = arith.constant 0 : i32
    %c0_i32_0 = arith.constant 0 : i32
    %c0_i32_1 = arith.constant 0 : i32
    return %c0_i32, %c0_i32_0 : i32, i32
  }
  func.func @transform_2(%arg0: i32) -> (i32, i32) {
    %c0_i32 = arith.constant 0 : i32
    %c0_i32_0 = arith.constant 0 : i32
    %c0_i32_1 = arith.constant 0 : i32
    return %c0_i32, %c0_i32_0 : i32, i32
  }
  func.func @transform_3(%arg0: i32) -> (i32, i32) {
    %c0_i32 = arith.constant 0 : i32
    %c0_i32_0 = arith.constant 0 : i32
    %c0_i32_1 = arith.constant 0 : i32
    return %c0_i32, %c0_i32_0 : i32, i32
  }
  func.func @transform_4(%arg0: i32) -> (i32, i32) {
    %c0_i32 = arith.constant 0 : i32
    %c0_i32_0 = arith.constant 0 : i32
    %c0_i32_1 = arith.constant 0 : i32
    return %c0_i32, %c0_i32_0 : i32, i32
  }
  func.func @transform_5(%arg0: i32) -> (i32, i32) {
    %c0_i32 = arith.constant 0 : i32
    %c0_i32_0 = arith.constant 0 : i32
    return %arg0, %c0_i32 : i32, i32
  }
}

module attributes {stable_mosaic.version = 11 : i64} {
  func.func @proj_mlp_kernel(%arg0: i32, %arg1: i32, %arg2: memref<8x128xf32, #tpu.memory_space<vmem>>, %arg3: memref<8x128xf32, #tpu.memory_space<vmem>>, %arg4: memref<128x128xf32, #tpu.memory_space<vmem>>, %arg5: memref<1x128xf32, #tpu.memory_space<vmem>>, %arg6: memref<1x128xf32, #tpu.memory_space<vmem>>, %arg7: memref<1x128xf32, #tpu.memory_space<vmem>>, %arg8: memref<128x128xf32, #tpu.memory_space<vmem>>, %arg9: memref<1x128xf32, #tpu.memory_space<vmem>>, %arg10: memref<128x128xf32, #tpu.memory_space<vmem>>, %arg11: memref<1x128xf32, #tpu.memory_space<vmem>>, %arg12: memref<8x128xf32, #tpu.memory_space<vmem>>, %arg13: memref<8x128xf32, #tpu.memory_space<vmem>>, %arg14: memref<8x128xf32, #tpu.memory_space<vmem>>, %arg15: memref<8x128xf32, #tpu.memory_space<vmem>>) attributes {dimension_semantics = [#tpu.dimension_semantics<parallel>, #tpu.dimension_semantics<arbitrary>], iteration_bounds = array<i64: 2, 2>, scalar_prefetch = 0 : i64, scratch_operands = 3 : i64, tpu.core_type = #tpu.core_type<tc>, window_params = [{transform_indices = @transform_0, window_bounds = array<i64: 8, 128>}, {transform_indices = @transform_1, window_bounds = array<i64: 8, 128>}, {pipeline_mode = #tpu.pipeline_mode<synchronous>, transform_indices = @transform_2, window_bounds = array<i64: 128, 128>}, {pipeline_mode = #tpu.pipeline_mode<synchronous>, transform_indices = @transform_3, window_bounds = array<i64: 1, 128>}, {pipeline_mode = #tpu.pipeline_mode<synchronous>, transform_indices = @transform_4, window_bounds = array<i64: 1, 128>}, {pipeline_mode = #tpu.pipeline_mode<synchronous>, transform_indices = @transform_5, window_bounds = array<i64: 1, 128>}, {transform_indices = @transform_6, window_bounds = array<i64: 128, 128>}, {transform_indices = @transform_7, window_bounds = array<i64: 1, 128>}, {transform_indices = @transform_8, window_bounds = array<i64: 128, 128>}, {pipeline_mode = #tpu.pipeline_mode<synchronous>, transform_indices = @transform_9, window_bounds = array<i64: 1, 128>}, {transform_indices = @transform_10, window_bounds = array<i64: 8, 128>}]} {
    %c0_i32 = arith.constant 0 : i32
    %0 = arith.cmpi eq, %arg1, %c0_i32 : i32
    %1 = arith.extui %0 : i1 to i32
    %c0_i32_0 = arith.constant 0 : i32
    %2 = arith.cmpi ne, %1, %c0_i32_0 : i32
    scf.if %2 {
      %c0_18 = arith.constant 0 : index
      %c0_19 = arith.constant 0 : index
      %30 = vector.load %arg3[%c0_18, %c0_19] : memref<8x128xf32, #tpu.memory_space<vmem>>, vector<8x128xf32>
      %c0_20 = arith.constant 0 : index
      %c0_21 = arith.constant 0 : index
      %31 = vector.load %arg2[%c0_20, %c0_21] : memref<8x128xf32, #tpu.memory_space<vmem>>, vector<8x128xf32>
      %c0_22 = arith.constant 0 : index
      %c0_23 = arith.constant 0 : index
      %32 = vector.load %arg4[%c0_22, %c0_23] : memref<128x128xf32, #tpu.memory_space<vmem>>, vector<128x128xf32>
      %cst_24 = arith.constant dense<0.000000e+00> : vector<8x128xf32>
      %33 = tpu.matmul %31, %32, %cst_24 {dimension_numbers = #tpu.dot_dimension_numbers<[1], [0], [0], [1], [0, 0, 1, 1], [], []>} : vector<8x128xf32>, vector<128x128xf32>, vector<8x128xf32> -> vector<8x128xf32>
      %34 = arith.addf %30, %33 : vector<8x128xf32>
      %c0_25 = arith.constant 0 : index
      %c0_26 = arith.constant 0 : index
      %35 = vector.load %arg5[%c0_25, %c0_26] : memref<1x128xf32, #tpu.memory_space<vmem>>, vector<1x128xf32>
      %36 = vector.broadcast %35 : vector<1x128xf32> to vector<8x128xf32>
      %37 = arith.addf %34, %36 : vector<8x128xf32>
      %c0_27 = arith.constant 0 : index
      %c0_28 = arith.constant 0 : index
      %38 = vector.load %arg13[%c0_27, %c0_28] : memref<8x128xf32, #tpu.memory_space<vmem>>, vector<8x128xf32>
      tpu.vector_store %arg13[%c0_27, %c0_28], %37 {strides = array<i32>} : memref<8x128xf32, #tpu.memory_space<vmem>>, vector<8x128xf32>,
      %c0_29 = arith.constant 0 : index
      %c0_30 = arith.constant 0 : index
      %39 = vector.load %arg6[%c0_29, %c0_30] : memref<1x128xf32, #tpu.memory_space<vmem>>, vector<1x128xf32>
      %c0_31 = arith.constant 0 : index
      %c0_32 = arith.constant 0 : index
      %40 = vector.load %arg7[%c0_31, %c0_32] : memref<1x128xf32, #tpu.memory_space<vmem>>, vector<1x128xf32>
      %cst_33 = arith.constant dense<0.000000e+00> : vector<8xf32>
      %41 = vector.multi_reduction <add>, %37, %cst_33 [1] : vector<8x128xf32> to vector<8xf32>
      %42 = vector.shape_cast %41 : vector<8xf32> to vector<8x1xf32>
      %cst_34 = arith.constant 1.280000e+02 : f32
      %43 = vector.broadcast %cst_34 : f32 to vector<8x1xf32>
      %44 = arith.divf %42, %43 : vector<8x1xf32>
      %45 = vector.broadcast %44 : vector<8x1xf32> to vector<8x128xf32>
      %46 = arith.subf %37, %45 : vector<8x128xf32>
      %47 = arith.mulf %46, %46 : vector<8x128xf32>
      %cst_35 = arith.constant dense<0.000000e+00> : vector<8xf32>
      %48 = vector.multi_reduction <add>, %47, %cst_35 [1] : vector<8x128xf32> to vector<8xf32>
      %49 = vector.shape_cast %48 : vector<8xf32> to vector<8x1xf32>
      %cst_36 = arith.constant 1.280000e+02 : f32
      %50 = vector.broadcast %cst_36 : f32 to vector<8x1xf32>
      %51 = arith.divf %49, %50 : vector<8x1xf32>
      %52 = vector.broadcast %44 : vector<8x1xf32> to vector<8x128xf32>
      %53 = arith.subf %37, %52 : vector<8x128xf32>
      %cst_37 = arith.constant 9.99999974E-6 : f32
      %54 = vector.broadcast %cst_37 : f32 to vector<8x1xf32>
      %55 = arith.addf %51, %54 : vector<8x1xf32>
      %56 = math.rsqrt %55 : vector<8x1xf32>
      %57 = vector.broadcast %56 : vector<8x1xf32> to vector<8x128xf32>
      %58 = arith.mulf %53, %57 : vector<8x128xf32>
      %59 = vector.broadcast %39 : vector<1x128xf32> to vector<8x128xf32>
      %60 = arith.mulf %58, %59 : vector<8x128xf32>
      %61 = vector.broadcast %40 : vector<1x128xf32> to vector<8x128xf32>
      %62 = arith.addf %60, %61 : vector<8x128xf32>
      %c0_38 = arith.constant 0 : index
      %c0_39 = arith.constant 0 : index
      %63 = vector.load %arg14[%c0_38, %c0_39] : memref<8x128xf32, #tpu.memory_space<vmem>>, vector<8x128xf32>
      tpu.vector_store %arg14[%c0_38, %c0_39], %62 {strides = array<i32>} : memref<8x128xf32, #tpu.memory_space<vmem>>, vector<8x128xf32>,
      %cst_40 = arith.constant 0.000000e+00 : f32
      %64 = vector.broadcast %cst_40 : f32 to vector<8x128xf32>
      %c0_41 = arith.constant 0 : index
      %c0_42 = arith.constant 0 : index
      %65 = vector.load %arg15[%c0_41, %c0_42] : memref<8x128xf32, #tpu.memory_space<vmem>>, vector<8x128xf32>
      tpu.vector_store %arg15[%c0_41, %c0_42], %64 {strides = array<i32>} : memref<8x128xf32, #tpu.memory_space<vmem>>, vector<8x128xf32>,
    } else {
    }
    %c0 = arith.constant 0 : index
    %c0_1 = arith.constant 0 : index
    %3 = vector.load %arg14[%c0, %c0_1] : memref<8x128xf32, #tpu.memory_space<vmem>>, vector<8x128xf32>
    %c0_2 = arith.constant 0 : index
    %c0_3 = arith.constant 0 : index
    %4 = vector.load %arg8[%c0_2, %c0_3] : memref<128x128xf32, #tpu.memory_space<vmem>>, vector<128x128xf32>
    %cst = arith.constant dense<0.000000e+00> : vector<8x128xf32>
    %5 = tpu.matmul %3, %4, %cst {dimension_numbers = #tpu.dot_dimension_numbers<[1], [0], [0], [1], [0, 0, 1, 1], [], []>} : vector<8x128xf32>, vector<128x128xf32>, vector<8x128xf32> -> vector<8x128xf32>
    %c0_4 = arith.constant 0 : index
    %c0_5 = arith.constant 0 : index
    %6 = vector.load %arg9[%c0_4, %c0_5] : memref<1x128xf32, #tpu.memory_space<vmem>>, vector<1x128xf32>
    %7 = vector.broadcast %6 : vector<1x128xf32> to vector<8x128xf32>
    %8 = arith.addf %5, %7 : vector<8x128xf32>
    %cst_6 = arith.constant 5.000000e-01 : f32
    %9 = vector.broadcast %cst_6 : f32 to vector<8x128xf32>
    %10 = arith.mulf %9, %8 : vector<8x128xf32>
    %cst_7 = arith.constant 4.471500e-02 : f32
    %11 = vector.broadcast %cst_7 : f32 to vector<8x128xf32>
    %12 = arith.mulf %11, %8 : vector<8x128xf32>
    %13 = arith.mulf %12, %8 : vector<8x128xf32>
    %14 = arith.mulf %13, %8 : vector<8x128xf32>
    %15 = arith.addf %8, %14 : vector<8x128xf32>
    %cst_8 = arith.constant 0.797884583 : f32
    %16 = vector.broadcast %cst_8 : f32 to vector<8x128xf32>
    %17 = arith.mulf %16, %15 : vector<8x128xf32>
    %18 = math.tanh %17 : vector<8x128xf32>
    %cst_9 = arith.constant 1.000000e+00 : f32
    %19 = vector.broadcast %cst_9 : f32 to vector<8x128xf32>
    %20 = arith.addf %19, %18 : vector<8x128xf32>
    %21 = arith.mulf %10, %20 : vector<8x128xf32>
    %c0_10 = arith.constant 0 : index
    %c0_11 = arith.constant 0 : index
    %22 = vector.load %arg15[%c0_10, %c0_11] : memref<8x128xf32, #tpu.memory_space<vmem>>, vector<8x128xf32>
    %c0_12 = arith.constant 0 : index
    %c0_13 = arith.constant 0 : index
    %23 = vector.load %arg10[%c0_12, %c0_13] : memref<128x128xf32, #tpu.memory_space<vmem>>, vector<128x128xf32>
    %cst_14 = arith.constant dense<0.000000e+00> : vector<8x128xf32>
    %24 = tpu.matmul %21, %23, %cst_14 {dimension_numbers = #tpu.dot_dimension_numbers<[1], [0], [0], [1], [0, 0, 1, 1], [], []>} : vector<8x128xf32>, vector<128x128xf32>, vector<8x128xf32> -> vector<8x128xf32>
    %25 = arith.addf %22, %24 : vector<8x128xf32>
    %c0_15 = arith.constant 0 : index
    %c0_16 = arith.constant 0 : index
    %26 = vector.load %arg15[%c0_15, %c0_16] : memref<8x128xf32, #tpu.memory_space<vmem>>, vector<8x128xf32>
    tpu.vector_store %arg15[%c0_15, %c0_16], %25 {strides = array<i32>} : memref<8x128xf32, #tpu.memory_space<vmem>>, vector<8x128xf32>,
    %c1_i32 = arith.constant 1 : i32
    %27 = arith.cmpi eq, %arg1, %c1_i32 : i32
    %28 = arith.extui %27 : i1 to i32
    %c0_i32_17 = arith.constant 0 : i32
    %29 = arith.cmpi ne, %28, %c0_i32_17 : i32
    scf.if %29 {
      %c0_18 = arith.constant 0 : index
      %c0_19 = arith.constant 0 : index
      %30 = vector.load %arg13[%c0_18, %c0_19] : memref<8x128xf32, #tpu.memory_space<vmem>>, vector<8x128xf32>
      %c0_20 = arith.constant 0 : index
      %c0_21 = arith.constant 0 : index
      %31 = vector.load %arg15[%c0_20, %c0_21] : memref<8x128xf32, #tpu.memory_space<vmem>>, vector<8x128xf32>
      %32 = arith.addf %30, %31 : vector<8x128xf32>
      %c0_22 = arith.constant 0 : index
      %c0_23 = arith.constant 0 : index
      %33 = vector.load %arg11[%c0_22, %c0_23] : memref<1x128xf32, #tpu.memory_space<vmem>>, vector<1x128xf32>
      %34 = vector.broadcast %33 : vector<1x128xf32> to vector<8x128xf32>
      %35 = arith.addf %32, %34 : vector<8x128xf32>
      %c0_24 = arith.constant 0 : index
      %c0_25 = arith.constant 0 : index
      %36 = vector.load %arg12[%c0_24, %c0_25] : memref<8x128xf32, #tpu.memory_space<vmem>>, vector<8x128xf32>
      tpu.vector_store %arg12[%c0_24, %c0_25], %35 {strides = array<i32>} : memref<8x128xf32, #tpu.memory_space<vmem>>, vector<8x128xf32>,
    } else {
    }
    return
  }
  func.func @transform_0(%arg0: i32, %arg1: i32) -> (i32, i32) {
    %c0_i32 = arith.constant 0 : i32
    %c0_i32_0 = arith.constant 0 : i32
    return %arg0, %c0_i32 : i32, i32
  }
  func.func @transform_1(%arg0: i32, %arg1: i32) -> (i32, i32) {
    %c0_i32 = arith.constant 0 : i32
    %c0_i32_0 = arith.constant 0 : i32
    return %arg0, %c0_i32 : i32, i32
  }
  func.func @transform_2(%arg0: i32, %arg1: i32) -> (i32, i32) {
    %c0_i32 = arith.constant 0 : i32
    %c0_i32_0 = arith.constant 0 : i32
    %c0_i32_1 = arith.constant 0 : i32
    return %c0_i32, %c0_i32_0 : i32, i32
  }
  func.func @transform_3(%arg0: i32, %arg1: i32) -> (i32, i32) {
    %c0_i32 = arith.constant 0 : i32
    %c0_i32_0 = arith.constant 0 : i32
    %c0_i32_1 = arith.constant 0 : i32
    return %c0_i32, %c0_i32_0 : i32, i32
  }
  func.func @transform_4(%arg0: i32, %arg1: i32) -> (i32, i32) {
    %c0_i32 = arith.constant 0 : i32
    %c0_i32_0 = arith.constant 0 : i32
    %c0_i32_1 = arith.constant 0 : i32
    return %c0_i32, %c0_i32_0 : i32, i32
  }
  func.func @transform_5(%arg0: i32, %arg1: i32) -> (i32, i32) {
    %c0_i32 = arith.constant 0 : i32
    %c0_i32_0 = arith.constant 0 : i32
    %c0_i32_1 = arith.constant 0 : i32
    return %c0_i32, %c0_i32_0 : i32, i32
  }
  func.func @transform_6(%arg0: i32, %arg1: i32) -> (i32, i32) {
    %c0_i32 = arith.constant 0 : i32
    %c0_i32_0 = arith.constant 0 : i32
    return %c0_i32, %arg1 : i32, i32
  }
  func.func @transform_7(%arg0: i32, %arg1: i32) -> (i32, i32) {
    %c0_i32 = arith.constant 0 : i32
    %c0_i32_0 = arith.constant 0 : i32
    return %c0_i32, %arg1 : i32, i32
  }
  func.func @transform_8(%arg0: i32, %arg1: i32) -> (i32, i32) {
    %c0_i32 = arith.constant 0 : i32
    %c0_i32_0 = arith.constant 0 : i32
    return %arg1, %c0_i32 : i32, i32
  }
  func.func @transform_9(%arg0: i32, %arg1: i32) -> (i32, i32) {
    %c0_i32 = arith.constant 0 : i32
    %c0_i32_0 = arith.constant 0 : i32
    %c0_i32_1 = arith.constant 0 : i32
    return %c0_i32, %c0_i32_0 : i32, i32
  }
  func.func @transform_10(%arg0: i32, %arg1: i32) -> (i32, i32) {
    %c0_i32 = arith.constant 0 : i32
    %c0_i32_0 = arith.constant 0 : i32
    return %arg0, %c0_i32 : i32, i32
  }
}

module attributes {stable_mosaic.version = 11 : i64} {
  func.func @ln_qkv_kernel(%arg0: i32, %arg1: memref<8x128xf32, #tpu.memory_space<vmem>>, %arg2: memref<1x128xf32, #tpu.memory_space<vmem>>, %arg3: memref<1x128xf32, #tpu.memory_space<vmem>>, %arg4: memref<128x384xf32, #tpu.memory_space<vmem>>, %arg5: memref<1x384xf32, #tpu.memory_space<vmem>>, %arg6: memref<8x384xf32, #tpu.memory_space<vmem>>) attributes {dimension_semantics = [#tpu.dimension_semantics<parallel>], iteration_bounds = array<i64: 2>, scalar_prefetch = 0 : i64, scratch_operands = 0 : i64, tpu.core_type = #tpu.core_type<tc>, window_params = [{transform_indices = @transform_0, window_bounds = array<i64: 8, 128>}, {pipeline_mode = #tpu.pipeline_mode<synchronous>, transform_indices = @transform_1, window_bounds = array<i64: 1, 128>}, {pipeline_mode = #tpu.pipeline_mode<synchronous>, transform_indices = @transform_2, window_bounds = array<i64: 1, 128>}, {pipeline_mode = #tpu.pipeline_mode<synchronous>, transform_indices = @transform_3, window_bounds = array<i64: 128, 384>}, {pipeline_mode = #tpu.pipeline_mode<synchronous>, transform_indices = @transform_4, window_bounds = array<i64: 1, 384>}, {transform_indices = @transform_5, window_bounds = array<i64: 8, 384>}]} {
    %c0 = arith.constant 0 : index
    %c0_0 = arith.constant 0 : index
    %0 = vector.load %arg1[%c0, %c0_0] : memref<8x128xf32, #tpu.memory_space<vmem>>, vector<8x128xf32>
    %c0_1 = arith.constant 0 : index
    %c0_2 = arith.constant 0 : index
    %1 = vector.load %arg2[%c0_1, %c0_2] : memref<1x128xf32, #tpu.memory_space<vmem>>, vector<1x128xf32>
    %c0_3 = arith.constant 0 : index
    %c0_4 = arith.constant 0 : index
    %2 = vector.load %arg3[%c0_3, %c0_4] : memref<1x128xf32, #tpu.memory_space<vmem>>, vector<1x128xf32>
    %cst = arith.constant dense<0.000000e+00> : vector<8xf32>
    %3 = vector.multi_reduction <add>, %0, %cst [1] : vector<8x128xf32> to vector<8xf32>
    %4 = vector.shape_cast %3 : vector<8xf32> to vector<8x1xf32>
    %cst_5 = arith.constant 1.280000e+02 : f32
    %5 = vector.broadcast %cst_5 : f32 to vector<8x1xf32>
    %6 = arith.divf %4, %5 : vector<8x1xf32>
    %7 = vector.broadcast %6 : vector<8x1xf32> to vector<8x128xf32>
    %8 = arith.subf %0, %7 : vector<8x128xf32>
    %9 = arith.mulf %8, %8 : vector<8x128xf32>
    %cst_6 = arith.constant dense<0.000000e+00> : vector<8xf32>
    %10 = vector.multi_reduction <add>, %9, %cst_6 [1] : vector<8x128xf32> to vector<8xf32>
    %11 = vector.shape_cast %10 : vector<8xf32> to vector<8x1xf32>
    %cst_7 = arith.constant 1.280000e+02 : f32
    %12 = vector.broadcast %cst_7 : f32 to vector<8x1xf32>
    %13 = arith.divf %11, %12 : vector<8x1xf32>
    %14 = vector.broadcast %6 : vector<8x1xf32> to vector<8x128xf32>
    %15 = arith.subf %0, %14 : vector<8x128xf32>
    %cst_8 = arith.constant 9.99999974E-6 : f32
    %16 = vector.broadcast %cst_8 : f32 to vector<8x1xf32>
    %17 = arith.addf %13, %16 : vector<8x1xf32>
    %18 = math.rsqrt %17 : vector<8x1xf32>
    %19 = vector.broadcast %18 : vector<8x1xf32> to vector<8x128xf32>
    %20 = arith.mulf %15, %19 : vector<8x128xf32>
    %21 = vector.broadcast %1 : vector<1x128xf32> to vector<8x128xf32>
    %22 = arith.mulf %20, %21 : vector<8x128xf32>
    %23 = vector.broadcast %2 : vector<1x128xf32> to vector<8x128xf32>
    %24 = arith.addf %22, %23 : vector<8x128xf32>
    %c0_9 = arith.constant 0 : index
    %c0_10 = arith.constant 0 : index
    %25 = vector.load %arg4[%c0_9, %c0_10] : memref<128x384xf32, #tpu.memory_space<vmem>>, vector<128x384xf32>
    %cst_11 = arith.constant dense<0.000000e+00> : vector<8x384xf32>
    %26 = tpu.matmul %24, %25, %cst_11 {dimension_numbers = #tpu.dot_dimension_numbers<[1], [0], [0], [1], [0, 0, 1, 1], [], []>} : vector<8x128xf32>, vector<128x384xf32>, vector<8x384xf32> -> vector<8x384xf32>
    %c0_12 = arith.constant 0 : index
    %c0_13 = arith.constant 0 : index
    %27 = vector.load %arg5[%c0_12, %c0_13] : memref<1x384xf32, #tpu.memory_space<vmem>>, vector<1x384xf32>
    %28 = vector.broadcast %27 : vector<1x384xf32> to vector<8x384xf32>
    %29 = arith.addf %26, %28 : vector<8x384xf32>
    %c0_14 = arith.constant 0 : index
    %c0_15 = arith.constant 0 : index
    %30 = vector.load %arg6[%c0_14, %c0_15] : memref<8x384xf32, #tpu.memory_space<vmem>>, vector<8x384xf32>
    tpu.vector_store %arg6[%c0_14, %c0_15], %29 {strides = array<i32>} : memref<8x384xf32, #tpu.memory_space<vmem>>, vector<8x384xf32>,
    return
  }
  func.func @transform_0(%arg0: i32) -> (i32, i32) {
    %c0_i32 = arith.constant 0 : i32
    %c0_i32_0 = arith.constant 0 : i32
    return %arg0, %c0_i32 : i32, i32
  }
  func.func @transform_1(%arg0: i32) -> (i32, i32) {
    %c0_i32 = arith.constant 0 : i32
    %c0_i32_0 = arith.constant 0 : i32
    %c0_i32_1 = arith.constant 0 : i32
    return %c0_i32, %c0_i32_0 : i32, i32
  }
  func.func @transform_2(%arg0: i32) -> (i32, i32) {
    %c0_i32 = arith.constant 0 : i32
    %c0_i32_0 = arith.constant 0 : i32
    %c0_i32_1 = arith.constant 0 : i32
    return %c0_i32, %c0_i32_0 : i32, i32
  }
  func.func @transform_3(%arg0: i32) -> (i32, i32) {
    %c0_i32 = arith.constant 0 : i32
    %c0_i32_0 = arith.constant 0 : i32
    %c0_i32_1 = arith.constant 0 : i32
    return %c0_i32, %c0_i32_0 : i32, i32
  }
  func.func @transform_4(%arg0: i32) -> (i32, i32) {
    %c0_i32 = arith.constant 0 : i32
    %c0_i32_0 = arith.constant 0 : i32
    %c0_i32_1 = arith.constant 0 : i32
    return %c0_i32, %c0_i32_0 : i32, i32
  }
  func.func @transform_5(%arg0: i32) -> (i32, i32) {
    %c0_i32 = arith.constant 0 : i32
    %c0_i32_0 = arith.constant 0 : i32
    return %arg0, %c0_i32 : i32, i32
  }
}

module attributes {stable_mosaic.version = 11 : i64} {
  func.func @flash_attn_kernel(%arg0: i32, %arg1: i32, %arg2: memref<8x128xf32, #tpu.memory_space<vmem>>, %arg3: memref<8x128xf32, #tpu.memory_space<vmem>>, %arg4: memref<8x128xf32, #tpu.memory_space<vmem>>, %arg5: memref<8x128xf32, #tpu.memory_space<vmem>>, %arg6: memref<8x4xf32, #tpu.memory_space<vmem>>, %arg7: memref<8x4xf32, #tpu.memory_space<vmem>>, %arg8: memref<8x128xf32, #tpu.memory_space<vmem>>) attributes {dimension_semantics = [#tpu.dimension_semantics<parallel>, #tpu.dimension_semantics<arbitrary>], iteration_bounds = array<i64: 2, 2>, scalar_prefetch = 0 : i64, scratch_operands = 3 : i64, tpu.core_type = #tpu.core_type<tc>, window_params = [{transform_indices = @transform_0, window_bounds = array<i64: 8, 128>}, {transform_indices = @transform_1, window_bounds = array<i64: 8, 128>}, {transform_indices = @transform_2, window_bounds = array<i64: 8, 128>}, {transform_indices = @transform_3, window_bounds = array<i64: 8, 128>}]} {
    %c0_i32 = arith.constant 0 : i32
    %0 = arith.cmpi eq, %arg1, %c0_i32 : i32
    %1 = arith.extui %0 : i1 to i32
    %c0_i32_0 = arith.constant 0 : i32
    %2 = arith.cmpi ne, %1, %c0_i32_0 : i32
    scf.if %2 {
      %cst = arith.constant -3.40282347E+38 : f32
      %9 = vector.broadcast %cst : f32 to vector<8x4xf32>
      %c0 = arith.constant 0 : index
      %c0_3 = arith.constant 0 : index
      %10 = vector.load %arg6[%c0, %c0_3] : memref<8x4xf32, #tpu.memory_space<vmem>>, vector<8x4xf32>
      tpu.vector_store %arg6[%c0, %c0_3], %9 {strides = array<i32>} : memref<8x4xf32, #tpu.memory_space<vmem>>, vector<8x4xf32>,
      %cst_4 = arith.constant 0.000000e+00 : f32
      %11 = vector.broadcast %cst_4 : f32 to vector<8x4xf32>
      %c0_5 = arith.constant 0 : index
      %c0_6 = arith.constant 0 : index
      %12 = vector.load %arg7[%c0_5, %c0_6] : memref<8x4xf32, #tpu.memory_space<vmem>>, vector<8x4xf32>
      tpu.vector_store %arg7[%c0_5, %c0_6], %11 {strides = array<i32>} : memref<8x4xf32, #tpu.memory_space<vmem>>, vector<8x4xf32>,
      %cst_7 = arith.constant 0.000000e+00 : f32
      %13 = vector.broadcast %cst_7 : f32 to vector<8x128xf32>
      %c0_8 = arith.constant 0 : index
      %c0_9 = arith.constant 0 : index
      %14 = vector.load %arg8[%c0_8, %c0_9] : memref<8x128xf32, #tpu.memory_space<vmem>>, vector<8x128xf32>
      tpu.vector_store %arg8[%c0_8, %c0_9], %13 {strides = array<i32>} : memref<8x128xf32, #tpu.memory_space<vmem>>, vector<8x128xf32>,
    } else {
    }
    %3 = arith.cmpi slt, %arg1, %arg0 : i32
    %4 = arith.extui %3 : i1 to i32
    %c0_i32_1 = arith.constant 0 : i32
    %5 = arith.cmpi ne, %4, %c0_i32_1 : i32
    scf.if %5 {
      %c0 = arith.constant 0 : index
      %c0_3 = arith.constant 0 : index
      %9 = vector.load %arg2[%c0, %c0_3] : memref<8x128xf32, #tpu.memory_space<vmem>>, vector<8x32xf32>
      %c0_4 = arith.constant 0 : index
      %c0_5 = arith.constant 0 : index
      %10 = vector.load %arg3[%c0_4, %c0_5] : memref<8x128xf32, #tpu.memory_space<vmem>>, vector<8x32xf32>
      %c0_6 = arith.constant 0 : index
      %c0_7 = arith.constant 0 : index
      %11 = vector.load %arg4[%c0_6, %c0_7] : memref<8x128xf32, #tpu.memory_space<vmem>>, vector<8x32xf32>
      %12 = tpu.transpose %10, [1, 0] : vector<8x32xf32> -> vector<32x8xf32>
      %cst = arith.constant dense<0.000000e+00> : vector<8x8xf32>
      %13 = tpu.matmul %9, %12, %cst {dimension_numbers = #tpu.dot_dimension_numbers<[1], [0], [0], [1], [0, 0, 1, 1], [], []>} : vector<8x32xf32>, vector<32x8xf32>, vector<8x8xf32> -> vector<8x8xf32>
      %c0_8 = arith.constant 0 : index
      %c0_9 = arith.constant 0 : index
      %14 = vector.load %arg6[%c0_8, %c0_9] : memref<8x4xf32, #tpu.memory_space<vmem>>, vector<8x1xf32>
      %cst_10 = arith.constant dense<0xFF800000> : vector<8xf32>
      %15 = vector.multi_reduction <maximumf>, %13, %cst_10 [1] : vector<8x8xf32> to vector<8xf32>
      %16 = vector.shape_cast %15 : vector<8xf32> to vector<8x1xf32>
      %17 = arith.maximumf %14, %16 : vector<8x1xf32>
      %18 = arith.subf %14, %17 : vector<8x1xf32>
      %19 = math.exp %18 : vector<8x1xf32>
      %20 = vector.broadcast %17 : vector<8x1xf32> to vector<8x8xf32>
      %21 = arith.subf %13, %20 : vector<8x8xf32>
      %22 = math.exp %21 : vector<8x8xf32>
      %c0_11 = arith.constant 0 : index
      %c0_12 = arith.constant 0 : index
      %23 = vector.load %arg7[%c0_11, %c0_12] : memref<8x4xf32, #tpu.memory_space<vmem>>, vector<8x1xf32>
      %24 = arith.mulf %19, %23 : vector<8x1xf32>
      %cst_13 = arith.constant dense<0.000000e+00> : vector<8xf32>
      %25 = vector.multi_reduction <add>, %22, %cst_13 [1] : vector<8x8xf32> to vector<8xf32>
      %26 = vector.shape_cast %25 : vector<8xf32> to vector<8x1xf32>
      %27 = arith.addf %24, %26 : vector<8x1xf32>
      %c0_14 = arith.constant 0 : index
      %c0_15 = arith.constant 0 : index
      %28 = vector.load %arg7[%c0_14, %c0_15] : memref<8x4xf32, #tpu.memory_space<vmem>>, vector<8x1xf32>
      tpu.vector_store %arg7[%c0_14, %c0_15], %27 {strides = array<i32>} : memref<8x4xf32, #tpu.memory_space<vmem>>, vector<8x1xf32>,
      %c0_16 = arith.constant 0 : index
      %c0_17 = arith.constant 0 : index
      %29 = vector.load %arg8[%c0_16, %c0_17] : memref<8x128xf32, #tpu.memory_space<vmem>>, vector<8x32xf32>
      %30 = vector.broadcast %19 : vector<8x1xf32> to vector<8x32xf32>
      %31 = arith.mulf %30, %29 : vector<8x32xf32>
      %cst_18 = arith.constant dense<0.000000e+00> : vector<8x32xf32>
      %32 = tpu.matmul %22, %11, %cst_18 {dimension_numbers = #tpu.dot_dimension_numbers<[1], [0], [0], [1], [0, 0, 1, 1], [], []>} : vector<8x8xf32>, vector<8x32xf32>, vector<8x32xf32> -> vector<8x32xf32>
      %33 = arith.addf %31, %32 : vector<8x32xf32>
      %c0_19 = arith.constant 0 : index
      %c0_20 = arith.constant 0 : index
      %34 = vector.load %arg8[%c0_19, %c0_20] : memref<8x128xf32, #tpu.memory_space<vmem>>, vector<8x32xf32>
      tpu.vector_store %arg8[%c0_19, %c0_20], %33 {strides = array<i32>} : memref<8x128xf32, #tpu.memory_space<vmem>>, vector<8x32xf32>,
      %c0_21 = arith.constant 0 : index
      %c0_22 = arith.constant 0 : index
      %35 = vector.load %arg6[%c0_21, %c0_22] : memref<8x4xf32, #tpu.memory_space<vmem>>, vector<8x1xf32>
      tpu.vector_store %arg6[%c0_21, %c0_22], %17 {strides = array<i32>} : memref<8x4xf32, #tpu.memory_space<vmem>>, vector<8x1xf32>,
      %c0_23 = arith.constant 0 : index
      %c32 = arith.constant 32 : index
      %36 = vector.load %arg2[%c0_23, %c32] : memref<8x128xf32, #tpu.memory_space<vmem>>, vector<8x32xf32>
      %c0_24 = arith.constant 0 : index
      %c32_25 = arith.constant 32 : index
      %37 = vector.load %arg3[%c0_24, %c32_25] : memref<8x128xf32, #tpu.memory_space<vmem>>, vector<8x32xf32>
      %c0_26 = arith.constant 0 : index
      %c32_27 = arith.constant 32 : index
      %38 = vector.load %arg4[%c0_26, %c32_27] : memref<8x128xf32, #tpu.memory_space<vmem>>, vector<8x32xf32>
      %39 = tpu.transpose %37, [1, 0] : vector<8x32xf32> -> vector<32x8xf32>
      %cst_28 = arith.constant dense<0.000000e+00> : vector<8x8xf32>
      %40 = tpu.matmul %36, %39, %cst_28 {dimension_numbers = #tpu.dot_dimension_numbers<[1], [0], [0], [1], [0, 0, 1, 1], [], []>} : vector<8x32xf32>, vector<32x8xf32>, vector<8x8xf32> -> vector<8x8xf32>
      %c0_29 = arith.constant 0 : index
      %c1 = arith.constant 1 : index
      %41 = vector.load %arg6[%c0_29, %c1] : memref<8x4xf32, #tpu.memory_space<vmem>>, vector<8x1xf32>
      %cst_30 = arith.constant dense<0xFF800000> : vector<8xf32>
      %42 = vector.multi_reduction <maximumf>, %40, %cst_30 [1] : vector<8x8xf32> to vector<8xf32>
      %43 = vector.shape_cast %42 : vector<8xf32> to vector<8x1xf32>
      %44 = arith.maximumf %41, %43 : vector<8x1xf32>
      %45 = arith.subf %41, %44 : vector<8x1xf32>
      %46 = math.exp %45 : vector<8x1xf32>
      %47 = vector.broadcast %44 : vector<8x1xf32> to vector<8x8xf32>
      %48 = arith.subf %40, %47 : vector<8x8xf32>
      %49 = math.exp %48 : vector<8x8xf32>
      %c0_31 = arith.constant 0 : index
      %c1_32 = arith.constant 1 : index
      %50 = vector.load %arg7[%c0_31, %c1_32] : memref<8x4xf32, #tpu.memory_space<vmem>>, vector<8x1xf32>
      %51 = arith.mulf %46, %50 : vector<8x1xf32>
      %cst_33 = arith.constant dense<0.000000e+00> : vector<8xf32>
      %52 = vector.multi_reduction <add>, %49, %cst_33 [1] : vector<8x8xf32> to vector<8xf32>
      %53 = vector.shape_cast %52 : vector<8xf32> to vector<8x1xf32>
      %54 = arith.addf %51, %53 : vector<8x1xf32>
      %c0_34 = arith.constant 0 : index
      %c1_35 = arith.constant 1 : index
      %55 = vector.load %arg7[%c0_34, %c1_35] : memref<8x4xf32, #tpu.memory_space<vmem>>, vector<8x1xf32>
      tpu.vector_store %arg7[%c0_34, %c1_35], %54 {strides = array<i32>} : memref<8x4xf32, #tpu.memory_space<vmem>>, vector<8x1xf32>,
      %c0_36 = arith.constant 0 : index
      %c32_37 = arith.constant 32 : index
      %56 = vector.load %arg8[%c0_36, %c32_37] : memref<8x128xf32, #tpu.memory_space<vmem>>, vector<8x32xf32>
      %57 = vector.broadcast %46 : vector<8x1xf32> to vector<8x32xf32>
      %58 = arith.mulf %57, %56 : vector<8x32xf32>
      %cst_38 = arith.constant dense<0.000000e+00> : vector<8x32xf32>
      %59 = tpu.matmul %49, %38, %cst_38 {dimension_numbers = #tpu.dot_dimension_numbers<[1], [0], [0], [1], [0, 0, 1, 1], [], []>} : vector<8x8xf32>, vector<8x32xf32>, vector<8x32xf32> -> vector<8x32xf32>
      %60 = arith.addf %58, %59 : vector<8x32xf32>
      %c0_39 = arith.constant 0 : index
      %c32_40 = arith.constant 32 : index
      %61 = vector.load %arg8[%c0_39, %c32_40] : memref<8x128xf32, #tpu.memory_space<vmem>>, vector<8x32xf32>
      tpu.vector_store %arg8[%c0_39, %c32_40], %60 {strides = array<i32>} : memref<8x128xf32, #tpu.memory_space<vmem>>, vector<8x32xf32>,
      %c0_41 = arith.constant 0 : index
      %c1_42 = arith.constant 1 : index
      %62 = vector.load %arg6[%c0_41, %c1_42] : memref<8x4xf32, #tpu.memory_space<vmem>>, vector<8x1xf32>
      tpu.vector_store %arg6[%c0_41, %c1_42], %44 {strides = array<i32>} : memref<8x4xf32, #tpu.memory_space<vmem>>, vector<8x1xf32>,
      %c0_43 = arith.constant 0 : index
      %c64 = arith.constant 64 : index
      %63 = vector.load %arg2[%c0_43, %c64] : memref<8x128xf32, #tpu.memory_space<vmem>>, vector<8x32xf32>
      %c0_44 = arith.constant 0 : index
      %c64_45 = arith.constant 64 : index
      %64 = vector.load %arg3[%c0_44, %c64_45] : memref<8x128xf32, #tpu.memory_space<vmem>>, vector<8x32xf32>
      %c0_46 = arith.constant 0 : index
      %c64_47 = arith.constant 64 : index
      %65 = vector.load %arg4[%c0_46, %c64_47] : memref<8x128xf32, #tpu.memory_space<vmem>>, vector<8x32xf32>
      %66 = tpu.transpose %64, [1, 0] : vector<8x32xf32> -> vector<32x8xf32>
      %cst_48 = arith.constant dense<0.000000e+00> : vector<8x8xf32>
      %67 = tpu.matmul %63, %66, %cst_48 {dimension_numbers = #tpu.dot_dimension_numbers<[1], [0], [0], [1], [0, 0, 1, 1], [], []>} : vector<8x32xf32>, vector<32x8xf32>, vector<8x8xf32> -> vector<8x8xf32>
      %c0_49 = arith.constant 0 : index
      %c2 = arith.constant 2 : index
      %68 = vector.load %arg6[%c0_49, %c2] : memref<8x4xf32, #tpu.memory_space<vmem>>, vector<8x1xf32>
      %cst_50 = arith.constant dense<0xFF800000> : vector<8xf32>
      %69 = vector.multi_reduction <maximumf>, %67, %cst_50 [1] : vector<8x8xf32> to vector<8xf32>
      %70 = vector.shape_cast %69 : vector<8xf32> to vector<8x1xf32>
      %71 = arith.maximumf %68, %70 : vector<8x1xf32>
      %72 = arith.subf %68, %71 : vector<8x1xf32>
      %73 = math.exp %72 : vector<8x1xf32>
      %74 = vector.broadcast %71 : vector<8x1xf32> to vector<8x8xf32>
      %75 = arith.subf %67, %74 : vector<8x8xf32>
      %76 = math.exp %75 : vector<8x8xf32>
      %c0_51 = arith.constant 0 : index
      %c2_52 = arith.constant 2 : index
      %77 = vector.load %arg7[%c0_51, %c2_52] : memref<8x4xf32, #tpu.memory_space<vmem>>, vector<8x1xf32>
      %78 = arith.mulf %73, %77 : vector<8x1xf32>
      %cst_53 = arith.constant dense<0.000000e+00> : vector<8xf32>
      %79 = vector.multi_reduction <add>, %76, %cst_53 [1] : vector<8x8xf32> to vector<8xf32>
      %80 = vector.shape_cast %79 : vector<8xf32> to vector<8x1xf32>
      %81 = arith.addf %78, %80 : vector<8x1xf32>
      %c0_54 = arith.constant 0 : index
      %c2_55 = arith.constant 2 : index
      %82 = vector.load %arg7[%c0_54, %c2_55] : memref<8x4xf32, #tpu.memory_space<vmem>>, vector<8x1xf32>
      tpu.vector_store %arg7[%c0_54, %c2_55], %81 {strides = array<i32>} : memref<8x4xf32, #tpu.memory_space<vmem>>, vector<8x1xf32>,
      %c0_56 = arith.constant 0 : index
      %c64_57 = arith.constant 64 : index
      %83 = vector.load %arg8[%c0_56, %c64_57] : memref<8x128xf32, #tpu.memory_space<vmem>>, vector<8x32xf32>
      %84 = vector.broadcast %73 : vector<8x1xf32> to vector<8x32xf32>
      %85 = arith.mulf %84, %83 : vector<8x32xf32>
      %cst_58 = arith.constant dense<0.000000e+00> : vector<8x32xf32>
      %86 = tpu.matmul %76, %65, %cst_58 {dimension_numbers = #tpu.dot_dimension_numbers<[1], [0], [0], [1], [0, 0, 1, 1], [], []>} : vector<8x8xf32>, vector<8x32xf32>, vector<8x32xf32> -> vector<8x32xf32>
      %87 = arith.addf %85, %86 : vector<8x32xf32>
      %c0_59 = arith.constant 0 : index
      %c64_60 = arith.constant 64 : index
      %88 = vector.load %arg8[%c0_59, %c64_60] : memref<8x128xf32, #tpu.memory_space<vmem>>, vector<8x32xf32>
      tpu.vector_store %arg8[%c0_59, %c64_60], %87 {strides = array<i32>} : memref<8x128xf32, #tpu.memory_space<vmem>>, vector<8x32xf32>,
      %c0_61 = arith.constant 0 : index
      %c2_62 = arith.constant 2 : index
      %89 = vector.load %arg6[%c0_61, %c2_62] : memref<8x4xf32, #tpu.memory_space<vmem>>, vector<8x1xf32>
      tpu.vector_store %arg6[%c0_61, %c2_62], %71 {strides = array<i32>} : memref<8x4xf32, #tpu.memory_space<vmem>>, vector<8x1xf32>,
      %c0_63 = arith.constant 0 : index
      %c96 = arith.constant 96 : index
      %90 = vector.load %arg2[%c0_63, %c96] : memref<8x128xf32, #tpu.memory_space<vmem>>, vector<8x32xf32>
      %c0_64 = arith.constant 0 : index
      %c96_65 = arith.constant 96 : index
      %91 = vector.load %arg3[%c0_64, %c96_65] : memref<8x128xf32, #tpu.memory_space<vmem>>, vector<8x32xf32>
      %c0_66 = arith.constant 0 : index
      %c96_67 = arith.constant 96 : index
      %92 = vector.load %arg4[%c0_66, %c96_67] : memref<8x128xf32, #tpu.memory_space<vmem>>, vector<8x32xf32>
      %93 = tpu.transpose %91, [1, 0] : vector<8x32xf32> -> vector<32x8xf32>
      %cst_68 = arith.constant dense<0.000000e+00> : vector<8x8xf32>
      %94 = tpu.matmul %90, %93, %cst_68 {dimension_numbers = #tpu.dot_dimension_numbers<[1], [0], [0], [1], [0, 0, 1, 1], [], []>} : vector<8x32xf32>, vector<32x8xf32>, vector<8x8xf32> -> vector<8x8xf32>
      %c0_69 = arith.constant 0 : index
      %c3 = arith.constant 3 : index
      %95 = vector.load %arg6[%c0_69, %c3] : memref<8x4xf32, #tpu.memory_space<vmem>>, vector<8x1xf32>
      %cst_70 = arith.constant dense<0xFF800000> : vector<8xf32>
      %96 = vector.multi_reduction <maximumf>, %94, %cst_70 [1] : vector<8x8xf32> to vector<8xf32>
      %97 = vector.shape_cast %96 : vector<8xf32> to vector<8x1xf32>
      %98 = arith.maximumf %95, %97 : vector<8x1xf32>
      %99 = arith.subf %95, %98 : vector<8x1xf32>
      %100 = math.exp %99 : vector<8x1xf32>
      %101 = vector.broadcast %98 : vector<8x1xf32> to vector<8x8xf32>
      %102 = arith.subf %94, %101 : vector<8x8xf32>
      %103 = math.exp %102 : vector<8x8xf32>
      %c0_71 = arith.constant 0 : index
      %c3_72 = arith.constant 3 : index
      %104 = vector.load %arg7[%c0_71, %c3_72] : memref<8x4xf32, #tpu.memory_space<vmem>>, vector<8x1xf32>
      %105 = arith.mulf %100, %104 : vector<8x1xf32>
      %cst_73 = arith.constant dense<0.000000e+00> : vector<8xf32>
      %106 = vector.multi_reduction <add>, %103, %cst_73 [1] : vector<8x8xf32> to vector<8xf32>
      %107 = vector.shape_cast %106 : vector<8xf32> to vector<8x1xf32>
      %108 = arith.addf %105, %107 : vector<8x1xf32>
      %c0_74 = arith.constant 0 : index
      %c3_75 = arith.constant 3 : index
      %109 = vector.load %arg7[%c0_74, %c3_75] : memref<8x4xf32, #tpu.memory_space<vmem>>, vector<8x1xf32>
      tpu.vector_store %arg7[%c0_74, %c3_75], %108 {strides = array<i32>} : memref<8x4xf32, #tpu.memory_space<vmem>>, vector<8x1xf32>,
      %c0_76 = arith.constant 0 : index
      %c96_77 = arith.constant 96 : index
      %110 = vector.load %arg8[%c0_76, %c96_77] : memref<8x128xf32, #tpu.memory_space<vmem>>, vector<8x32xf32>
      %111 = vector.broadcast %100 : vector<8x1xf32> to vector<8x32xf32>
      %112 = arith.mulf %111, %110 : vector<8x32xf32>
      %cst_78 = arith.constant dense<0.000000e+00> : vector<8x32xf32>
      %113 = tpu.matmul %103, %92, %cst_78 {dimension_numbers = #tpu.dot_dimension_numbers<[1], [0], [0], [1], [0, 0, 1, 1], [], []>} : vector<8x8xf32>, vector<8x32xf32>, vector<8x32xf32> -> vector<8x32xf32>
      %114 = arith.addf %112, %113 : vector<8x32xf32>
      %c0_79 = arith.constant 0 : index
      %c96_80 = arith.constant 96 : index
      %115 = vector.load %arg8[%c0_79, %c96_80] : memref<8x128xf32, #tpu.memory_space<vmem>>, vector<8x32xf32>
      tpu.vector_store %arg8[%c0_79, %c96_80], %114 {strides = array<i32>} : memref<8x128xf32, #tpu.memory_space<vmem>>, vector<8x32xf32>,
      %c0_81 = arith.constant 0 : index
      %c3_82 = arith.constant 3 : index
      %116 = vector.load %arg6[%c0_81, %c3_82] : memref<8x4xf32, #tpu.memory_space<vmem>>, vector<8x1xf32>
      tpu.vector_store %arg6[%c0_81, %c3_82], %98 {strides = array<i32>} : memref<8x4xf32, #tpu.memory_space<vmem>>, vector<8x1xf32>,
    } else {
    }
    %6 = arith.cmpi eq, %arg1, %arg0 : i32
    %7 = arith.extui %6 : i1 to i32
    %c0_i32_2 = arith.constant 0 : i32
    %8 = arith.cmpi ne, %7, %c0_i32_2 : i32
    scf.if %8 {
      %9 = tpu.iota {dimensions = array<i32: 0>} : vector<8x8xi32>
      %10 = tpu.iota {dimensions = array<i32: 1>} : vector<8x8xi32>
      %11 = arith.cmpi sle, %10, %9 : vector<8x8xi32>
      %c0 = arith.constant 0 : index
      %c0_3 = arith.constant 0 : index
      %12 = vector.load %arg2[%c0, %c0_3] : memref<8x128xf32, #tpu.memory_space<vmem>>, vector<8x32xf32>
      %c0_4 = arith.constant 0 : index
      %c0_5 = arith.constant 0 : index
      %13 = vector.load %arg3[%c0_4, %c0_5] : memref<8x128xf32, #tpu.memory_space<vmem>>, vector<8x32xf32>
      %c0_6 = arith.constant 0 : index
      %c0_7 = arith.constant 0 : index
      %14 = vector.load %arg4[%c0_6, %c0_7] : memref<8x128xf32, #tpu.memory_space<vmem>>, vector<8x32xf32>
      %15 = tpu.transpose %13, [1, 0] : vector<8x32xf32> -> vector<32x8xf32>
      %cst = arith.constant dense<0.000000e+00> : vector<8x8xf32>
      %16 = tpu.matmul %12, %15, %cst {dimension_numbers = #tpu.dot_dimension_numbers<[1], [0], [0], [1], [0, 0, 1, 1], [], []>} : vector<8x32xf32>, vector<32x8xf32>, vector<8x8xf32> -> vector<8x8xf32>
      %cst_8 = arith.constant -3.40282347E+38 : f32
      %17 = vector.broadcast %cst_8 : f32 to vector<8x8xf32>
      %18 = arith.select %11, %16, %17 : vector<8x8xi1>, vector<8x8xf32>
      %c0_9 = arith.constant 0 : index
      %c0_10 = arith.constant 0 : index
      %19 = vector.load %arg6[%c0_9, %c0_10] : memref<8x4xf32, #tpu.memory_space<vmem>>, vector<8x1xf32>
      %cst_11 = arith.constant dense<0xFF800000> : vector<8xf32>
      %20 = vector.multi_reduction <maximumf>, %18, %cst_11 [1] : vector<8x8xf32> to vector<8xf32>
      %21 = vector.shape_cast %20 : vector<8xf32> to vector<8x1xf32>
      %22 = arith.maximumf %19, %21 : vector<8x1xf32>
      %23 = arith.subf %19, %22 : vector<8x1xf32>
      %24 = math.exp %23 : vector<8x1xf32>
      %25 = vector.broadcast %22 : vector<8x1xf32> to vector<8x8xf32>
      %26 = arith.subf %18, %25 : vector<8x8xf32>
      %27 = math.exp %26 : vector<8x8xf32>
      %c0_12 = arith.constant 0 : index
      %c0_13 = arith.constant 0 : index
      %28 = vector.load %arg7[%c0_12, %c0_13] : memref<8x4xf32, #tpu.memory_space<vmem>>, vector<8x1xf32>
      %29 = arith.mulf %24, %28 : vector<8x1xf32>
      %cst_14 = arith.constant dense<0.000000e+00> : vector<8xf32>
      %30 = vector.multi_reduction <add>, %27, %cst_14 [1] : vector<8x8xf32> to vector<8xf32>
      %31 = vector.shape_cast %30 : vector<8xf32> to vector<8x1xf32>
      %32 = arith.addf %29, %31 : vector<8x1xf32>
      %c0_15 = arith.constant 0 : index
      %c0_16 = arith.constant 0 : index
      %33 = vector.load %arg7[%c0_15, %c0_16] : memref<8x4xf32, #tpu.memory_space<vmem>>, vector<8x1xf32>
      tpu.vector_store %arg7[%c0_15, %c0_16], %32 {strides = array<i32>} : memref<8x4xf32, #tpu.memory_space<vmem>>, vector<8x1xf32>,
      %c0_17 = arith.constant 0 : index
      %c0_18 = arith.constant 0 : index
      %34 = vector.load %arg8[%c0_17, %c0_18] : memref<8x128xf32, #tpu.memory_space<vmem>>, vector<8x32xf32>
      %35 = vector.broadcast %24 : vector<8x1xf32> to vector<8x32xf32>
      %36 = arith.mulf %35, %34 : vector<8x32xf32>
      %cst_19 = arith.constant dense<0.000000e+00> : vector<8x32xf32>
      %37 = tpu.matmul %27, %14, %cst_19 {dimension_numbers = #tpu.dot_dimension_numbers<[1], [0], [0], [1], [0, 0, 1, 1], [], []>} : vector<8x8xf32>, vector<8x32xf32>, vector<8x32xf32> -> vector<8x32xf32>
      %38 = arith.addf %36, %37 : vector<8x32xf32>
      %c0_20 = arith.constant 0 : index
      %c0_21 = arith.constant 0 : index
      %39 = vector.load %arg8[%c0_20, %c0_21] : memref<8x128xf32, #tpu.memory_space<vmem>>, vector<8x32xf32>
      tpu.vector_store %arg8[%c0_20, %c0_21], %38 {strides = array<i32>} : memref<8x128xf32, #tpu.memory_space<vmem>>, vector<8x32xf32>,
      %c0_22 = arith.constant 0 : index
      %c0_23 = arith.constant 0 : index
      %40 = vector.load %arg6[%c0_22, %c0_23] : memref<8x4xf32, #tpu.memory_space<vmem>>, vector<8x1xf32>
      tpu.vector_store %arg6[%c0_22, %c0_23], %22 {strides = array<i32>} : memref<8x4xf32, #tpu.memory_space<vmem>>, vector<8x1xf32>,
      %c0_24 = arith.constant 0 : index
      %c32 = arith.constant 32 : index
      %41 = vector.load %arg2[%c0_24, %c32] : memref<8x128xf32, #tpu.memory_space<vmem>>, vector<8x32xf32>
      %c0_25 = arith.constant 0 : index
      %c32_26 = arith.constant 32 : index
      %42 = vector.load %arg3[%c0_25, %c32_26] : memref<8x128xf32, #tpu.memory_space<vmem>>, vector<8x32xf32>
      %c0_27 = arith.constant 0 : index
      %c32_28 = arith.constant 32 : index
      %43 = vector.load %arg4[%c0_27, %c32_28] : memref<8x128xf32, #tpu.memory_space<vmem>>, vector<8x32xf32>
      %44 = tpu.transpose %42, [1, 0] : vector<8x32xf32> -> vector<32x8xf32>
      %cst_29 = arith.constant dense<0.000000e+00> : vector<8x8xf32>
      %45 = tpu.matmul %41, %44, %cst_29 {dimension_numbers = #tpu.dot_dimension_numbers<[1], [0], [0], [1], [0, 0, 1, 1], [], []>} : vector<8x32xf32>, vector<32x8xf32>, vector<8x8xf32> -> vector<8x8xf32>
      %cst_30 = arith.constant -3.40282347E+38 : f32
      %46 = vector.broadcast %cst_30 : f32 to vector<8x8xf32>
      %47 = arith.select %11, %45, %46 : vector<8x8xi1>, vector<8x8xf32>
      %c0_31 = arith.constant 0 : index
      %c1 = arith.constant 1 : index
      %48 = vector.load %arg6[%c0_31, %c1] : memref<8x4xf32, #tpu.memory_space<vmem>>, vector<8x1xf32>
      %cst_32 = arith.constant dense<0xFF800000> : vector<8xf32>
      %49 = vector.multi_reduction <maximumf>, %47, %cst_32 [1] : vector<8x8xf32> to vector<8xf32>
      %50 = vector.shape_cast %49 : vector<8xf32> to vector<8x1xf32>
      %51 = arith.maximumf %48, %50 : vector<8x1xf32>
      %52 = arith.subf %48, %51 : vector<8x1xf32>
      %53 = math.exp %52 : vector<8x1xf32>
      %54 = vector.broadcast %51 : vector<8x1xf32> to vector<8x8xf32>
      %55 = arith.subf %47, %54 : vector<8x8xf32>
      %56 = math.exp %55 : vector<8x8xf32>
      %c0_33 = arith.constant 0 : index
      %c1_34 = arith.constant 1 : index
      %57 = vector.load %arg7[%c0_33, %c1_34] : memref<8x4xf32, #tpu.memory_space<vmem>>, vector<8x1xf32>
      %58 = arith.mulf %53, %57 : vector<8x1xf32>
      %cst_35 = arith.constant dense<0.000000e+00> : vector<8xf32>
      %59 = vector.multi_reduction <add>, %56, %cst_35 [1] : vector<8x8xf32> to vector<8xf32>
      %60 = vector.shape_cast %59 : vector<8xf32> to vector<8x1xf32>
      %61 = arith.addf %58, %60 : vector<8x1xf32>
      %c0_36 = arith.constant 0 : index
      %c1_37 = arith.constant 1 : index
      %62 = vector.load %arg7[%c0_36, %c1_37] : memref<8x4xf32, #tpu.memory_space<vmem>>, vector<8x1xf32>
      tpu.vector_store %arg7[%c0_36, %c1_37], %61 {strides = array<i32>} : memref<8x4xf32, #tpu.memory_space<vmem>>, vector<8x1xf32>,
      %c0_38 = arith.constant 0 : index
      %c32_39 = arith.constant 32 : index
      %63 = vector.load %arg8[%c0_38, %c32_39] : memref<8x128xf32, #tpu.memory_space<vmem>>, vector<8x32xf32>
      %64 = vector.broadcast %53 : vector<8x1xf32> to vector<8x32xf32>
      %65 = arith.mulf %64, %63 : vector<8x32xf32>
      %cst_40 = arith.constant dense<0.000000e+00> : vector<8x32xf32>
      %66 = tpu.matmul %56, %43, %cst_40 {dimension_numbers = #tpu.dot_dimension_numbers<[1], [0], [0], [1], [0, 0, 1, 1], [], []>} : vector<8x8xf32>, vector<8x32xf32>, vector<8x32xf32> -> vector<8x32xf32>
      %67 = arith.addf %65, %66 : vector<8x32xf32>
      %c0_41 = arith.constant 0 : index
      %c32_42 = arith.constant 32 : index
      %68 = vector.load %arg8[%c0_41, %c32_42] : memref<8x128xf32, #tpu.memory_space<vmem>>, vector<8x32xf32>
      tpu.vector_store %arg8[%c0_41, %c32_42], %67 {strides = array<i32>} : memref<8x128xf32, #tpu.memory_space<vmem>>, vector<8x32xf32>,
      %c0_43 = arith.constant 0 : index
      %c1_44 = arith.constant 1 : index
      %69 = vector.load %arg6[%c0_43, %c1_44] : memref<8x4xf32, #tpu.memory_space<vmem>>, vector<8x1xf32>
      tpu.vector_store %arg6[%c0_43, %c1_44], %51 {strides = array<i32>} : memref<8x4xf32, #tpu.memory_space<vmem>>, vector<8x1xf32>,
      %c0_45 = arith.constant 0 : index
      %c64 = arith.constant 64 : index
      %70 = vector.load %arg2[%c0_45, %c64] : memref<8x128xf32, #tpu.memory_space<vmem>>, vector<8x32xf32>
      %c0_46 = arith.constant 0 : index
      %c64_47 = arith.constant 64 : index
      %71 = vector.load %arg3[%c0_46, %c64_47] : memref<8x128xf32, #tpu.memory_space<vmem>>, vector<8x32xf32>
      %c0_48 = arith.constant 0 : index
      %c64_49 = arith.constant 64 : index
      %72 = vector.load %arg4[%c0_48, %c64_49] : memref<8x128xf32, #tpu.memory_space<vmem>>, vector<8x32xf32>
      %73 = tpu.transpose %71, [1, 0] : vector<8x32xf32> -> vector<32x8xf32>
      %cst_50 = arith.constant dense<0.000000e+00> : vector<8x8xf32>
      %74 = tpu.matmul %70, %73, %cst_50 {dimension_numbers = #tpu.dot_dimension_numbers<[1], [0], [0], [1], [0, 0, 1, 1], [], []>} : vector<8x32xf32>, vector<32x8xf32>, vector<8x8xf32> -> vector<8x8xf32>
      %cst_51 = arith.constant -3.40282347E+38 : f32
      %75 = vector.broadcast %cst_51 : f32 to vector<8x8xf32>
      %76 = arith.select %11, %74, %75 : vector<8x8xi1>, vector<8x8xf32>
      %c0_52 = arith.constant 0 : index
      %c2 = arith.constant 2 : index
      %77 = vector.load %arg6[%c0_52, %c2] : memref<8x4xf32, #tpu.memory_space<vmem>>, vector<8x1xf32>
      %cst_53 = arith.constant dense<0xFF800000> : vector<8xf32>
      %78 = vector.multi_reduction <maximumf>, %76, %cst_53 [1] : vector<8x8xf32> to vector<8xf32>
      %79 = vector.shape_cast %78 : vector<8xf32> to vector<8x1xf32>
      %80 = arith.maximumf %77, %79 : vector<8x1xf32>
      %81 = arith.subf %77, %80 : vector<8x1xf32>
      %82 = math.exp %81 : vector<8x1xf32>
      %83 = vector.broadcast %80 : vector<8x1xf32> to vector<8x8xf32>
      %84 = arith.subf %76, %83 : vector<8x8xf32>
      %85 = math.exp %84 : vector<8x8xf32>
      %c0_54 = arith.constant 0 : index
      %c2_55 = arith.constant 2 : index
      %86 = vector.load %arg7[%c0_54, %c2_55] : memref<8x4xf32, #tpu.memory_space<vmem>>, vector<8x1xf32>
      %87 = arith.mulf %82, %86 : vector<8x1xf32>
      %cst_56 = arith.constant dense<0.000000e+00> : vector<8xf32>
      %88 = vector.multi_reduction <add>, %85, %cst_56 [1] : vector<8x8xf32> to vector<8xf32>
      %89 = vector.shape_cast %88 : vector<8xf32> to vector<8x1xf32>
      %90 = arith.addf %87, %89 : vector<8x1xf32>
      %c0_57 = arith.constant 0 : index
      %c2_58 = arith.constant 2 : index
      %91 = vector.load %arg7[%c0_57, %c2_58] : memref<8x4xf32, #tpu.memory_space<vmem>>, vector<8x1xf32>
      tpu.vector_store %arg7[%c0_57, %c2_58], %90 {strides = array<i32>} : memref<8x4xf32, #tpu.memory_space<vmem>>, vector<8x1xf32>,
      %c0_59 = arith.constant 0 : index
      %c64_60 = arith.constant 64 : index
      %92 = vector.load %arg8[%c0_59, %c64_60] : memref<8x128xf32, #tpu.memory_space<vmem>>, vector<8x32xf32>
      %93 = vector.broadcast %82 : vector<8x1xf32> to vector<8x32xf32>
      %94 = arith.mulf %93, %92 : vector<8x32xf32>
      %cst_61 = arith.constant dense<0.000000e+00> : vector<8x32xf32>
      %95 = tpu.matmul %85, %72, %cst_61 {dimension_numbers = #tpu.dot_dimension_numbers<[1], [0], [0], [1], [0, 0, 1, 1], [], []>} : vector<8x8xf32>, vector<8x32xf32>, vector<8x32xf32> -> vector<8x32xf32>
      %96 = arith.addf %94, %95 : vector<8x32xf32>
      %c0_62 = arith.constant 0 : index
      %c64_63 = arith.constant 64 : index
      %97 = vector.load %arg8[%c0_62, %c64_63] : memref<8x128xf32, #tpu.memory_space<vmem>>, vector<8x32xf32>
      tpu.vector_store %arg8[%c0_62, %c64_63], %96 {strides = array<i32>} : memref<8x128xf32, #tpu.memory_space<vmem>>, vector<8x32xf32>,
      %c0_64 = arith.constant 0 : index
      %c2_65 = arith.constant 2 : index
      %98 = vector.load %arg6[%c0_64, %c2_65] : memref<8x4xf32, #tpu.memory_space<vmem>>, vector<8x1xf32>
      tpu.vector_store %arg6[%c0_64, %c2_65], %80 {strides = array<i32>} : memref<8x4xf32, #tpu.memory_space<vmem>>, vector<8x1xf32>,
      %c0_66 = arith.constant 0 : index
      %c96 = arith.constant 96 : index
      %99 = vector.load %arg2[%c0_66, %c96] : memref<8x128xf32, #tpu.memory_space<vmem>>, vector<8x32xf32>
      %c0_67 = arith.constant 0 : index
      %c96_68 = arith.constant 96 : index
      %100 = vector.load %arg3[%c0_67, %c96_68] : memref<8x128xf32, #tpu.memory_space<vmem>>, vector<8x32xf32>
      %c0_69 = arith.constant 0 : index
      %c96_70 = arith.constant 96 : index
      %101 = vector.load %arg4[%c0_69, %c96_70] : memref<8x128xf32, #tpu.memory_space<vmem>>, vector<8x32xf32>
      %102 = tpu.transpose %100, [1, 0] : vector<8x32xf32> -> vector<32x8xf32>
      %cst_71 = arith.constant dense<0.000000e+00> : vector<8x8xf32>
      %103 = tpu.matmul %99, %102, %cst_71 {dimension_numbers = #tpu.dot_dimension_numbers<[1], [0], [0], [1], [0, 0, 1, 1], [], []>} : vector<8x32xf32>, vector<32x8xf32>, vector<8x8xf32> -> vector<8x8xf32>
      %cst_72 = arith.constant -3.40282347E+38 : f32
      %104 = vector.broadcast %cst_72 : f32 to vector<8x8xf32>
      %105 = arith.select %11, %103, %104 : vector<8x8xi1>, vector<8x8xf32>
      %c0_73 = arith.constant 0 : index
      %c3 = arith.constant 3 : index
      %106 = vector.load %arg6[%c0_73, %c3] : memref<8x4xf32, #tpu.memory_space<vmem>>, vector<8x1xf32>
      %cst_74 = arith.constant dense<0xFF800000> : vector<8xf32>
      %107 = vector.multi_reduction <maximumf>, %105, %cst_74 [1] : vector<8x8xf32> to vector<8xf32>
      %108 = vector.shape_cast %107 : vector<8xf32> to vector<8x1xf32>
      %109 = arith.maximumf %106, %108 : vector<8x1xf32>
      %110 = arith.subf %106, %109 : vector<8x1xf32>
      %111 = math.exp %110 : vector<8x1xf32>
      %112 = vector.broadcast %109 : vector<8x1xf32> to vector<8x8xf32>
      %113 = arith.subf %105, %112 : vector<8x8xf32>
      %114 = math.exp %113 : vector<8x8xf32>
      %c0_75 = arith.constant 0 : index
      %c3_76 = arith.constant 3 : index
      %115 = vector.load %arg7[%c0_75, %c3_76] : memref<8x4xf32, #tpu.memory_space<vmem>>, vector<8x1xf32>
      %116 = arith.mulf %111, %115 : vector<8x1xf32>
      %cst_77 = arith.constant dense<0.000000e+00> : vector<8xf32>
      %117 = vector.multi_reduction <add>, %114, %cst_77 [1] : vector<8x8xf32> to vector<8xf32>
      %118 = vector.shape_cast %117 : vector<8xf32> to vector<8x1xf32>
      %119 = arith.addf %116, %118 : vector<8x1xf32>
      %c0_78 = arith.constant 0 : index
      %c3_79 = arith.constant 3 : index
      %120 = vector.load %arg7[%c0_78, %c3_79] : memref<8x4xf32, #tpu.memory_space<vmem>>, vector<8x1xf32>
      tpu.vector_store %arg7[%c0_78, %c3_79], %119 {strides = array<i32>} : memref<8x4xf32, #tpu.memory_space<vmem>>, vector<8x1xf32>,
      %c0_80 = arith.constant 0 : index
      %c96_81 = arith.constant 96 : index
      %121 = vector.load %arg8[%c0_80, %c96_81] : memref<8x128xf32, #tpu.memory_space<vmem>>, vector<8x32xf32>
      %122 = vector.broadcast %111 : vector<8x1xf32> to vector<8x32xf32>
      %123 = arith.mulf %122, %121 : vector<8x32xf32>
      %cst_82 = arith.constant dense<0.000000e+00> : vector<8x32xf32>
      %124 = tpu.matmul %114, %101, %cst_82 {dimension_numbers = #tpu.dot_dimension_numbers<[1], [0], [0], [1], [0, 0, 1, 1], [], []>} : vector<8x8xf32>, vector<8x32xf32>, vector<8x32xf32> -> vector<8x32xf32>
      %125 = arith.addf %123, %124 : vector<8x32xf32>
      %c0_83 = arith.constant 0 : index
      %c96_84 = arith.constant 96 : index
      %126 = vector.load %arg8[%c0_83, %c96_84] : memref<8x128xf32, #tpu.memory_space<vmem>>, vector<8x32xf32>
      tpu.vector_store %arg8[%c0_83, %c96_84], %125 {strides = array<i32>} : memref<8x128xf32, #tpu.memory_space<vmem>>, vector<8x32xf32>,
      %c0_85 = arith.constant 0 : index
      %c3_86 = arith.constant 3 : index
      %127 = vector.load %arg6[%c0_85, %c3_86] : memref<8x4xf32, #tpu.memory_space<vmem>>, vector<8x1xf32>
      tpu.vector_store %arg6[%c0_85, %c3_86], %109 {strides = array<i32>} : memref<8x4xf32, #tpu.memory_space<vmem>>, vector<8x1xf32>,
      %c0_87 = arith.constant 0 : index
      %c0_88 = arith.constant 0 : index
      %128 = vector.load %arg7[%c0_87, %c0_88] : memref<8x4xf32, #tpu.memory_space<vmem>>, vector<8x1xf32>
      %129 = tpu.reciprocal %128 {approx = true} : vector<8x1xf32> -> vector<8x1xf32>
      %c0_89 = arith.constant 0 : index
      %c0_90 = arith.constant 0 : index
      %130 = vector.load %arg8[%c0_89, %c0_90] : memref<8x128xf32, #tpu.memory_space<vmem>>, vector<8x32xf32>
      %131 = vector.broadcast %129 : vector<8x1xf32> to vector<8x32xf32>
      %132 = arith.mulf %130, %131 : vector<8x32xf32>
      %c0_91 = arith.constant 0 : index
      %c0_92 = arith.constant 0 : index
      %133 = vector.load %arg8[%c0_91, %c0_92] : memref<8x128xf32, #tpu.memory_space<vmem>>, vector<8x32xf32>
      tpu.vector_store %arg8[%c0_91, %c0_92], %132 {strides = array<i32>} : memref<8x128xf32, #tpu.memory_space<vmem>>, vector<8x32xf32>,
      %c0_93 = arith.constant 0 : index
      %c1_94 = arith.constant 1 : index
      %134 = vector.load %arg7[%c0_93, %c1_94] : memref<8x4xf32, #tpu.memory_space<vmem>>, vector<8x1xf32>
      %135 = tpu.reciprocal %134 {approx = true} : vector<8x1xf32> -> vector<8x1xf32>
      %c0_95 = arith.constant 0 : index
      %c32_96 = arith.constant 32 : index
      %136 = vector.load %arg8[%c0_95, %c32_96] : memref<8x128xf32, #tpu.memory_space<vmem>>, vector<8x32xf32>
      %137 = vector.broadcast %135 : vector<8x1xf32> to vector<8x32xf32>
      %138 = arith.mulf %136, %137 : vector<8x32xf32>
      %c0_97 = arith.constant 0 : index
      %c32_98 = arith.constant 32 : index
      %139 = vector.load %arg8[%c0_97, %c32_98] : memref<8x128xf32, #tpu.memory_space<vmem>>, vector<8x32xf32>
      tpu.vector_store %arg8[%c0_97, %c32_98], %138 {strides = array<i32>} : memref<8x128xf32, #tpu.memory_space<vmem>>, vector<8x32xf32>,
      %c0_99 = arith.constant 0 : index
      %c2_100 = arith.constant 2 : index
      %140 = vector.load %arg7[%c0_99, %c2_100] : memref<8x4xf32, #tpu.memory_space<vmem>>, vector<8x1xf32>
      %141 = tpu.reciprocal %140 {approx = true} : vector<8x1xf32> -> vector<8x1xf32>
      %c0_101 = arith.constant 0 : index
      %c64_102 = arith.constant 64 : index
      %142 = vector.load %arg8[%c0_101, %c64_102] : memref<8x128xf32, #tpu.memory_space<vmem>>, vector<8x32xf32>
      %143 = vector.broadcast %141 : vector<8x1xf32> to vector<8x32xf32>
      %144 = arith.mulf %142, %143 : vector<8x32xf32>
      %c0_103 = arith.constant 0 : index
      %c64_104 = arith.constant 64 : index
      %145 = vector.load %arg8[%c0_103, %c64_104] : memref<8x128xf32, #tpu.memory_space<vmem>>, vector<8x32xf32>
      tpu.vector_store %arg8[%c0_103, %c64_104], %144 {strides = array<i32>} : memref<8x128xf32, #tpu.memory_space<vmem>>, vector<8x32xf32>,
      %c0_105 = arith.constant 0 : index
      %c3_106 = arith.constant 3 : index
      %146 = vector.load %arg7[%c0_105, %c3_106] : memref<8x4xf32, #tpu.memory_space<vmem>>, vector<8x1xf32>
      %147 = tpu.reciprocal %146 {approx = true} : vector<8x1xf32> -> vector<8x1xf32>
      %c0_107 = arith.constant 0 : index
      %c96_108 = arith.constant 96 : index
      %148 = vector.load %arg8[%c0_107, %c96_108] : memref<8x128xf32, #tpu.memory_space<vmem>>, vector<8x32xf32>
      %149 = vector.broadcast %147 : vector<8x1xf32> to vector<8x32xf32>
      %150 = arith.mulf %148, %149 : vector<8x32xf32>
      %c0_109 = arith.constant 0 : index
      %c96_110 = arith.constant 96 : index
      %151 = vector.load %arg8[%c0_109, %c96_110] : memref<8x128xf32, #tpu.memory_space<vmem>>, vector<8x32xf32>
      tpu.vector_store %arg8[%c0_109, %c96_110], %150 {strides = array<i32>} : memref<8x128xf32, #tpu.memory_space<vmem>>, vector<8x32xf32>,
      %c0_111 = arith.constant 0 : index
      %c0_112 = arith.constant 0 : index
      %152 = vector.load %arg8[%c0_111, %c0_112] : memref<8x128xf32, #tpu.memory_space<vmem>>, vector<8x128xf32>
      %c0_113 = arith.constant 0 : index
      %c0_114 = arith.constant 0 : index
      %153 = vector.load %arg5[%c0_113, %c0_114] : memref<8x128xf32, #tpu.memory_space<vmem>>, vector<8x128xf32>
      tpu.vector_store %arg5[%c0_113, %c0_114], %152 {strides = array<i32>} : memref<8x128xf32, #tpu.memory_space<vmem>>, vector<8x128xf32>,
    } else {
    }
    return
  }
  func.func @transform_0(%arg0: i32, %arg1: i32) -> (i32, i32) {
    %c0_i32 = arith.constant 0 : i32
    %c0_i32_0 = arith.constant 0 : i32
    return %arg0, %c0_i32 : i32, i32
  }
  func.func @transform_1(%arg0: i32, %arg1: i32) -> (i32, i32) {
    %0 = arith.minsi %arg1, %arg0 : i32
    %c1_i32 = arith.constant 1 : i32
    %c0_i32 = arith.constant 0 : i32
    return %0, %c1_i32 : i32, i32
  }
  func.func @transform_2(%arg0: i32, %arg1: i32) -> (i32, i32) {
    %0 = arith.minsi %arg1, %arg0 : i32
    %c2_i32 = arith.constant 2 : i32
    %c0_i32 = arith.constant 0 : i32
    return %0, %c2_i32 : i32, i32
  }
  func.func @transform_3(%arg0: i32, %arg1: i32) -> (i32, i32) {
    %c0_i32 = arith.constant 0 : i32
    %c0_i32_0 = arith.constant 0 : i32
    return %arg0, %c0_i32 : i32, i32
  }
}

module attributes {stable_mosaic.version = 11 : i64} {
  func.func @proj_mlp_kernel(%arg0: i32, %arg1: i32, %arg2: memref<8x128xf32, #tpu.memory_space<vmem>>, %arg3: memref<8x128xf32, #tpu.memory_space<vmem>>, %arg4: memref<128x128xf32, #tpu.memory_space<vmem>>, %arg5: memref<1x128xf32, #tpu.memory_space<vmem>>, %arg6: memref<1x128xf32, #tpu.memory_space<vmem>>, %arg7: memref<1x128xf32, #tpu.memory_space<vmem>>, %arg8: memref<128x128xf32, #tpu.memory_space<vmem>>, %arg9: memref<1x128xf32, #tpu.memory_space<vmem>>, %arg10: memref<128x128xf32, #tpu.memory_space<vmem>>, %arg11: memref<1x128xf32, #tpu.memory_space<vmem>>, %arg12: memref<1x128xf32, #tpu.memory_space<vmem>>, %arg13: memref<1x128xf32, #tpu.memory_space<vmem>>, %arg14: memref<8x128xf32, #tpu.memory_space<vmem>>, %arg15: memref<8x128xf32, #tpu.memory_space<vmem>>, %arg16: memref<8x128xf32, #tpu.memory_space<vmem>>, %arg17: memref<8x128xf32, #tpu.memory_space<vmem>>) attributes {dimension_semantics = [#tpu.dimension_semantics<parallel>, #tpu.dimension_semantics<arbitrary>], iteration_bounds = array<i64: 2, 2>, scalar_prefetch = 0 : i64, scratch_operands = 3 : i64, tpu.core_type = #tpu.core_type<tc>, window_params = [{transform_indices = @transform_0, window_bounds = array<i64: 8, 128>}, {transform_indices = @transform_1, window_bounds = array<i64: 8, 128>}, {pipeline_mode = #tpu.pipeline_mode<synchronous>, transform_indices = @transform_2, window_bounds = array<i64: 128, 128>}, {pipeline_mode = #tpu.pipeline_mode<synchronous>, transform_indices = @transform_3, window_bounds = array<i64: 1, 128>}, {pipeline_mode = #tpu.pipeline_mode<synchronous>, transform_indices = @transform_4, window_bounds = array<i64: 1, 128>}, {pipeline_mode = #tpu.pipeline_mode<synchronous>, transform_indices = @transform_5, window_bounds = array<i64: 1, 128>}, {transform_indices = @transform_6, window_bounds = array<i64: 128, 128>}, {transform_indices = @transform_7, window_bounds = array<i64: 1, 128>}, {transform_indices = @transform_8, window_bounds = array<i64: 128, 128>}, {pipeline_mode = #tpu.pipeline_mode<synchronous>, transform_indices = @transform_9, window_bounds = array<i64: 1, 128>}, {pipeline_mode = #tpu.pipeline_mode<synchronous>, transform_indices = @transform_10, window_bounds = array<i64: 1, 128>}, {pipeline_mode = #tpu.pipeline_mode<synchronous>, transform_indices = @transform_11, window_bounds = array<i64: 1, 128>}, {transform_indices = @transform_12, window_bounds = array<i64: 8, 128>}]} {
    %c0_i32 = arith.constant 0 : i32
    %0 = arith.cmpi eq, %arg1, %c0_i32 : i32
    %1 = arith.extui %0 : i1 to i32
    %c0_i32_0 = arith.constant 0 : i32
    %2 = arith.cmpi ne, %1, %c0_i32_0 : i32
    scf.if %2 {
      %c0_18 = arith.constant 0 : index
      %c0_19 = arith.constant 0 : index
      %30 = vector.load %arg3[%c0_18, %c0_19] : memref<8x128xf32, #tpu.memory_space<vmem>>, vector<8x128xf32>
      %c0_20 = arith.constant 0 : index
      %c0_21 = arith.constant 0 : index
      %31 = vector.load %arg2[%c0_20, %c0_21] : memref<8x128xf32, #tpu.memory_space<vmem>>, vector<8x128xf32>
      %c0_22 = arith.constant 0 : index
      %c0_23 = arith.constant 0 : index
      %32 = vector.load %arg4[%c0_22, %c0_23] : memref<128x128xf32, #tpu.memory_space<vmem>>, vector<128x128xf32>
      %cst_24 = arith.constant dense<0.000000e+00> : vector<8x128xf32>
      %33 = tpu.matmul %31, %32, %cst_24 {dimension_numbers = #tpu.dot_dimension_numbers<[1], [0], [0], [1], [0, 0, 1, 1], [], []>} : vector<8x128xf32>, vector<128x128xf32>, vector<8x128xf32> -> vector<8x128xf32>
      %34 = arith.addf %30, %33 : vector<8x128xf32>
      %c0_25 = arith.constant 0 : index
      %c0_26 = arith.constant 0 : index
      %35 = vector.load %arg5[%c0_25, %c0_26] : memref<1x128xf32, #tpu.memory_space<vmem>>, vector<1x128xf32>
      %36 = vector.broadcast %35 : vector<1x128xf32> to vector<8x128xf32>
      %37 = arith.addf %34, %36 : vector<8x128xf32>
      %c0_27 = arith.constant 0 : index
      %c0_28 = arith.constant 0 : index
      %38 = vector.load %arg15[%c0_27, %c0_28] : memref<8x128xf32, #tpu.memory_space<vmem>>, vector<8x128xf32>
      tpu.vector_store %arg15[%c0_27, %c0_28], %37 {strides = array<i32>} : memref<8x128xf32, #tpu.memory_space<vmem>>, vector<8x128xf32>,
      %c0_29 = arith.constant 0 : index
      %c0_30 = arith.constant 0 : index
      %39 = vector.load %arg6[%c0_29, %c0_30] : memref<1x128xf32, #tpu.memory_space<vmem>>, vector<1x128xf32>
      %c0_31 = arith.constant 0 : index
      %c0_32 = arith.constant 0 : index
      %40 = vector.load %arg7[%c0_31, %c0_32] : memref<1x128xf32, #tpu.memory_space<vmem>>, vector<1x128xf32>
      %cst_33 = arith.constant dense<0.000000e+00> : vector<8xf32>
      %41 = vector.multi_reduction <add>, %37, %cst_33 [1] : vector<8x128xf32> to vector<8xf32>
      %42 = vector.shape_cast %41 : vector<8xf32> to vector<8x1xf32>
      %cst_34 = arith.constant 1.280000e+02 : f32
      %43 = vector.broadcast %cst_34 : f32 to vector<8x1xf32>
      %44 = arith.divf %42, %43 : vector<8x1xf32>
      %45 = vector.broadcast %44 : vector<8x1xf32> to vector<8x128xf32>
      %46 = arith.subf %37, %45 : vector<8x128xf32>
      %47 = arith.mulf %46, %46 : vector<8x128xf32>
      %cst_35 = arith.constant dense<0.000000e+00> : vector<8xf32>
      %48 = vector.multi_reduction <add>, %47, %cst_35 [1] : vector<8x128xf32> to vector<8xf32>
      %49 = vector.shape_cast %48 : vector<8xf32> to vector<8x1xf32>
      %cst_36 = arith.constant 1.280000e+02 : f32
      %50 = vector.broadcast %cst_36 : f32 to vector<8x1xf32>
      %51 = arith.divf %49, %50 : vector<8x1xf32>
      %52 = vector.broadcast %44 : vector<8x1xf32> to vector<8x128xf32>
      %53 = arith.subf %37, %52 : vector<8x128xf32>
      %cst_37 = arith.constant 9.99999974E-6 : f32
      %54 = vector.broadcast %cst_37 : f32 to vector<8x1xf32>
      %55 = arith.addf %51, %54 : vector<8x1xf32>
      %56 = math.rsqrt %55 : vector<8x1xf32>
      %57 = vector.broadcast %56 : vector<8x1xf32> to vector<8x128xf32>
      %58 = arith.mulf %53, %57 : vector<8x128xf32>
      %59 = vector.broadcast %39 : vector<1x128xf32> to vector<8x128xf32>
      %60 = arith.mulf %58, %59 : vector<8x128xf32>
      %61 = vector.broadcast %40 : vector<1x128xf32> to vector<8x128xf32>
      %62 = arith.addf %60, %61 : vector<8x128xf32>
      %c0_38 = arith.constant 0 : index
      %c0_39 = arith.constant 0 : index
      %63 = vector.load %arg16[%c0_38, %c0_39] : memref<8x128xf32, #tpu.memory_space<vmem>>, vector<8x128xf32>
      tpu.vector_store %arg16[%c0_38, %c0_39], %62 {strides = array<i32>} : memref<8x128xf32, #tpu.memory_space<vmem>>, vector<8x128xf32>,
      %cst_40 = arith.constant 0.000000e+00 : f32
      %64 = vector.broadcast %cst_40 : f32 to vector<8x128xf32>
      %c0_41 = arith.constant 0 : index
      %c0_42 = arith.constant 0 : index
      %65 = vector.load %arg17[%c0_41, %c0_42] : memref<8x128xf32, #tpu.memory_space<vmem>>, vector<8x128xf32>
      tpu.vector_store %arg17[%c0_41, %c0_42], %64 {strides = array<i32>} : memref<8x128xf32, #tpu.memory_space<vmem>>, vector<8x128xf32>,
    } else {
    }
    %c0 = arith.constant 0 : index
    %c0_1 = arith.constant 0 : index
    %3 = vector.load %arg16[%c0, %c0_1] : memref<8x128xf32, #tpu.memory_space<vmem>>, vector<8x128xf32>
    %c0_2 = arith.constant 0 : index
    %c0_3 = arith.constant 0 : index
    %4 = vector.load %arg8[%c0_2, %c0_3] : memref<128x128xf32, #tpu.memory_space<vmem>>, vector<128x128xf32>
    %cst = arith.constant dense<0.000000e+00> : vector<8x128xf32>
    %5 = tpu.matmul %3, %4, %cst {dimension_numbers = #tpu.dot_dimension_numbers<[1], [0], [0], [1], [0, 0, 1, 1], [], []>} : vector<8x128xf32>, vector<128x128xf32>, vector<8x128xf32> -> vector<8x128xf32>
    %c0_4 = arith.constant 0 : index
    %c0_5 = arith.constant 0 : index
    %6 = vector.load %arg9[%c0_4, %c0_5] : memref<1x128xf32, #tpu.memory_space<vmem>>, vector<1x128xf32>
    %7 = vector.broadcast %6 : vector<1x128xf32> to vector<8x128xf32>
    %8 = arith.addf %5, %7 : vector<8x128xf32>
    %cst_6 = arith.constant 5.000000e-01 : f32
    %9 = vector.broadcast %cst_6 : f32 to vector<8x128xf32>
    %10 = arith.mulf %9, %8 : vector<8x128xf32>
    %cst_7 = arith.constant 4.471500e-02 : f32
    %11 = vector.broadcast %cst_7 : f32 to vector<8x128xf32>
    %12 = arith.mulf %11, %8 : vector<8x128xf32>
    %13 = arith.mulf %12, %8 : vector<8x128xf32>
    %14 = arith.mulf %13, %8 : vector<8x128xf32>
    %15 = arith.addf %8, %14 : vector<8x128xf32>
    %cst_8 = arith.constant 0.797884583 : f32
    %16 = vector.broadcast %cst_8 : f32 to vector<8x128xf32>
    %17 = arith.mulf %16, %15 : vector<8x128xf32>
    %18 = math.tanh %17 : vector<8x128xf32>
    %cst_9 = arith.constant 1.000000e+00 : f32
    %19 = vector.broadcast %cst_9 : f32 to vector<8x128xf32>
    %20 = arith.addf %19, %18 : vector<8x128xf32>
    %21 = arith.mulf %10, %20 : vector<8x128xf32>
    %c0_10 = arith.constant 0 : index
    %c0_11 = arith.constant 0 : index
    %22 = vector.load %arg17[%c0_10, %c0_11] : memref<8x128xf32, #tpu.memory_space<vmem>>, vector<8x128xf32>
    %c0_12 = arith.constant 0 : index
    %c0_13 = arith.constant 0 : index
    %23 = vector.load %arg10[%c0_12, %c0_13] : memref<128x128xf32, #tpu.memory_space<vmem>>, vector<128x128xf32>
    %cst_14 = arith.constant dense<0.000000e+00> : vector<8x128xf32>
    %24 = tpu.matmul %21, %23, %cst_14 {dimension_numbers = #tpu.dot_dimension_numbers<[1], [0], [0], [1], [0, 0, 1, 1], [], []>} : vector<8x128xf32>, vector<128x128xf32>, vector<8x128xf32> -> vector<8x128xf32>
    %25 = arith.addf %22, %24 : vector<8x128xf32>
    %c0_15 = arith.constant 0 : index
    %c0_16 = arith.constant 0 : index
    %26 = vector.load %arg17[%c0_15, %c0_16] : memref<8x128xf32, #tpu.memory_space<vmem>>, vector<8x128xf32>
    tpu.vector_store %arg17[%c0_15, %c0_16], %25 {strides = array<i32>} : memref<8x128xf32, #tpu.memory_space<vmem>>, vector<8x128xf32>,
    %c1_i32 = arith.constant 1 : i32
    %27 = arith.cmpi eq, %arg1, %c1_i32 : i32
    %28 = arith.extui %27 : i1 to i32
    %c0_i32_17 = arith.constant 0 : i32
    %29 = arith.cmpi ne, %28, %c0_i32_17 : i32
    scf.if %29 {
      %c0_18 = arith.constant 0 : index
      %c0_19 = arith.constant 0 : index
      %30 = vector.load %arg15[%c0_18, %c0_19] : memref<8x128xf32, #tpu.memory_space<vmem>>, vector<8x128xf32>
      %c0_20 = arith.constant 0 : index
      %c0_21 = arith.constant 0 : index
      %31 = vector.load %arg17[%c0_20, %c0_21] : memref<8x128xf32, #tpu.memory_space<vmem>>, vector<8x128xf32>
      %32 = arith.addf %30, %31 : vector<8x128xf32>
      %c0_22 = arith.constant 0 : index
      %c0_23 = arith.constant 0 : index
      %33 = vector.load %arg11[%c0_22, %c0_23] : memref<1x128xf32, #tpu.memory_space<vmem>>, vector<1x128xf32>
      %34 = vector.broadcast %33 : vector<1x128xf32> to vector<8x128xf32>
      %35 = arith.addf %32, %34 : vector<8x128xf32>
      %c0_24 = arith.constant 0 : index
      %c0_25 = arith.constant 0 : index
      %36 = vector.load %arg12[%c0_24, %c0_25] : memref<1x128xf32, #tpu.memory_space<vmem>>, vector<1x128xf32>
      %c0_26 = arith.constant 0 : index
      %c0_27 = arith.constant 0 : index
      %37 = vector.load %arg13[%c0_26, %c0_27] : memref<1x128xf32, #tpu.memory_space<vmem>>, vector<1x128xf32>
      %cst_28 = arith.constant dense<0.000000e+00> : vector<8xf32>
      %38 = vector.multi_reduction <add>, %35, %cst_28 [1] : vector<8x128xf32> to vector<8xf32>
      %39 = vector.shape_cast %38 : vector<8xf32> to vector<8x1xf32>
      %cst_29 = arith.constant 1.280000e+02 : f32
      %40 = vector.broadcast %cst_29 : f32 to vector<8x1xf32>
      %41 = arith.divf %39, %40 : vector<8x1xf32>
      %42 = vector.broadcast %41 : vector<8x1xf32> to vector<8x128xf32>
      %43 = arith.subf %35, %42 : vector<8x128xf32>
      %44 = arith.mulf %43, %43 : vector<8x128xf32>
      %cst_30 = arith.constant dense<0.000000e+00> : vector<8xf32>
      %45 = vector.multi_reduction <add>, %44, %cst_30 [1] : vector<8x128xf32> to vector<8xf32>
      %46 = vector.shape_cast %45 : vector<8xf32> to vector<8x1xf32>
      %cst_31 = arith.constant 1.280000e+02 : f32
      %47 = vector.broadcast %cst_31 : f32 to vector<8x1xf32>
      %48 = arith.divf %46, %47 : vector<8x1xf32>
      %49 = vector.broadcast %41 : vector<8x1xf32> to vector<8x128xf32>
      %50 = arith.subf %35, %49 : vector<8x128xf32>
      %cst_32 = arith.constant 9.99999974E-6 : f32
      %51 = vector.broadcast %cst_32 : f32 to vector<8x1xf32>
      %52 = arith.addf %48, %51 : vector<8x1xf32>
      %53 = math.rsqrt %52 : vector<8x1xf32>
      %54 = vector.broadcast %53 : vector<8x1xf32> to vector<8x128xf32>
      %55 = arith.mulf %50, %54 : vector<8x128xf32>
      %56 = vector.broadcast %36 : vector<1x128xf32> to vector<8x128xf32>
      %57 = arith.mulf %55, %56 : vector<8x128xf32>
      %58 = vector.broadcast %37 : vector<1x128xf32> to vector<8x128xf32>
      %59 = arith.addf %57, %58 : vector<8x128xf32>
      %c0_33 = arith.constant 0 : index
      %c0_34 = arith.constant 0 : index
      %60 = vector.load %arg14[%c0_33, %c0_34] : memref<8x128xf32, #tpu.memory_space<vmem>>, vector<8x128xf32>
      tpu.vector_store %arg14[%c0_33, %c0_34], %59 {strides = array<i32>} : memref<8x128xf32, #tpu.memory_space<vmem>>, vector<8x128xf32>,
    } else {
    }
    return
  }
  func.func @transform_0(%arg0: i32, %arg1: i32) -> (i32, i32) {
    %c0_i32 = arith.constant 0 : i32
    %c0_i32_0 = arith.constant 0 : i32
    return %arg0, %c0_i32 : i32, i32
  }
  func.func @transform_1(%arg0: i32, %arg1: i32) -> (i32, i32) {
    %c0_i32 = arith.constant 0 : i32
    %c0_i32_0 = arith.constant 0 : i32
    return %arg0, %c0_i32 : i32, i32
  }
  func.func @transform_2(%arg0: i32, %arg1: i32) -> (i32, i32) {
    %c0_i32 = arith.constant 0 : i32
    %c0_i32_0 = arith.constant 0 : i32
    %c0_i32_1 = arith.constant 0 : i32
    return %c0_i32, %c0_i32_0 : i32, i32
  }
  func.func @transform_3(%arg0: i32, %arg1: i32) -> (i32, i32) {
    %c0_i32 = arith.constant 0 : i32
    %c0_i32_0 = arith.constant 0 : i32
    %c0_i32_1 = arith.constant 0 : i32
    return %c0_i32, %c0_i32_0 : i32, i32
  }
  func.func @transform_4(%arg0: i32, %arg1: i32) -> (i32, i32) {
    %c0_i32 = arith.constant 0 : i32
    %c0_i32_0 = arith.constant 0 : i32
    %c0_i32_1 = arith.constant 0 : i32
    return %c0_i32, %c0_i32_0 : i32, i32
  }
  func.func @transform_5(%arg0: i32, %arg1: i32) -> (i32, i32) {
    %c0_i32 = arith.constant 0 : i32
    %c0_i32_0 = arith.constant 0 : i32
    %c0_i32_1 = arith.constant 0 : i32
    return %c0_i32, %c0_i32_0 : i32, i32
  }
  func.func @transform_6(%arg0: i32, %arg1: i32) -> (i32, i32) {
    %c0_i32 = arith.constant 0 : i32
    %c0_i32_0 = arith.constant 0 : i32
    return %c0_i32, %arg1 : i32, i32
  }
  func.func @transform_7(%arg0: i32, %arg1: i32) -> (i32, i32) {
    %c0_i32 = arith.constant 0 : i32
    %c0_i32_0 = arith.constant 0 : i32
    return %c0_i32, %arg1 : i32, i32
  }
  func.func @transform_8(%arg0: i32, %arg1: i32) -> (i32, i32) {
    %c0_i32 = arith.constant 0 : i32
    %c0_i32_0 = arith.constant 0 : i32
    return %arg1, %c0_i32 : i32, i32
  }
  func.func @transform_9(%arg0: i32, %arg1: i32) -> (i32, i32) {
    %c0_i32 = arith.constant 0 : i32
    %c0_i32_0 = arith.constant 0 : i32
    %c0_i32_1 = arith.constant 0 : i32
    return %c0_i32, %c0_i32_0 : i32, i32
  }
  func.func @transform_10(%arg0: i32, %arg1: i32) -> (i32, i32) {
    %c0_i32 = arith.constant 0 : i32
    %c0_i32_0 = arith.constant 0 : i32
    %c0_i32_1 = arith.constant 0 : i32
    return %c0_i32, %c0_i32_0 : i32, i32
  }
  func.func @transform_11(%arg0: i32, %arg1: i32) -> (i32, i32) {
    %c0_i32 = arith.constant 0 : i32
    %c0_i32_0 = arith.constant 0 : i32
    %c0_i32_1 = arith.constant 0 : i32
    return %c0_i32, %c0_i32_0 : i32, i32
  }
  func.func @transform_12(%arg0: i32, %arg1: i32) -> (i32, i32) {
    %c0_i32 = arith.constant 0 : i32
    %c0_i32_0 = arith.constant 0 : i32
    return %arg0, %c0_i32 : i32, i32
  }
}

</mosaic_0001>

<bundles_post_ra>
// kernel: _lambda_.9
= control target key start
LH: loop header
LB: loop body
LE: loop exit
PB: predicated region body
PF: predicated region fallthrough
CT: control target
= control target key end

     0   :  { %s689_s18 = smov 0   ;;  %s876_s0 = inlined_call_operand.vmem [shape: f32[16,128], index: 0, kind: input, shape index: {}]   ;;  %s877_s1 = inlined_call_operand.vmem [shape: f32[1,128], index: 1, kind: input, shape index: {}]   ;;  %s878_s2 = inlined_call_operand.vmem [shape: f32[1,128], index: 2, kind: input, shape index: {}]   ;;  %s879_s3 = inlined_call_operand.vmem [shape: f32[128,384], index: 3, kind: input, shape index: {}]   ;;  %s880_s4 = inlined_call_operand.vmem [shape: f32[1,384], index: 4, kind: input, shape index: {}]   ;;  %s881_s5 = inlined_call_operand.vmem [shape: f32[16,384], index: 5, kind: output, shape index: {}]  }
   0x1 LB: > { %s515_s19 = sadd.s32 4294967295, %s654_s18   ;;  %p519_p0 = scmp.ge.s32.totalorder %s654_s18, 1  ;;  %s654_s18 = sphi %s689_s18, %s15_s18  }
   0x2   : > { %p186_p1 = scmp.lt.s32.totalorder %s654_s18, 3 }
   0x4   : > { %p187_p2 = pnand %p519_p0, %p186_p1 }
   0x5   : > { %p213_p3 = scmp.lt.s32.totalorder (!%p187_p2), %s515_s19, 1  ;;  %v252_v1 = vld [vmem:[%s879_s3 + $0x8] sm:$0xff] (!%p187_p2)  ;;  %v255_v2 = vld [vmem:[%s879_s3 + $0x20] sm:$0xff] (!%p187_p2)  ;;  %v656_v5 = vmov (!%p187_p2), 0.0|0.0   ;;  %v254_v6 = vld [vmem:[%s879_s3 + $0x18] sm:$0xff] (!%p187_p2)  ;;  %v657_v57 = vmov (!%p187_p2), 0.0  }
   0x6   : > { %190 = sbr.rel (%p187_p2) target bundleno = 544 (0x220), region = 40  ;;  %v251_v3 = vld [vmem:[%s879_s3] sm:$0xff] (!%p187_p2)  ;;  %v578_v4 = vpack.c.bf16 (!%p187_p2), %v255_v2, %v252_v1  ;;  %610 = vmatprep.subr.bf16.mxu1 (!%p187_p2), %v656_v5  ;;  %v253_v7 = vld [vmem:[%s879_s3 + $0x10] sm:$0xff] (!%p187_p2)  ;;  %v256_v8 = vld [vmem:[%s879_s3 + $0x28] sm:$0xff] (!%p187_p2)  ;;  %380 = vmatprep.mubr.f32.mxu0 (!%p187_p2), %v657_v57  ;;  %vm658_vm0 = vmmov (!%p187_p2), 0  }
   0x7   : > { %v580_v9 = vpack.c.bf16 (!%p187_p2), %v254_v6, %v251_v3  ;;  %v611_v10 = vpack.c.bf16 (!%p187_p2), %v256_v8, %v253_v7  ;;  %v258_v11 = vld [vmem:[%s879_s3 + $0x38] sm:$0xff] (!%p187_p2)  ;;  %v261_v12 = vld [vmem:[%s879_s3 + $0x50] sm:$0xff] (!%p187_p2)  ;;  %v260_v15 = vld [vmem:[%s879_s3 + $0x48] sm:$0xff] (!%p187_p2)  ;;  %575 = vmatprep.mubr.msk.f32.mxu1 (!%p187_p2), %vm658_vm0, %v657_v57 }
   0x8   : > { %v257_v13 = vld [vmem:[%s879_s3 + $0x30] sm:$0xff] (!%p187_p2)  ;;  %579 = vmatprep.subr.bf16.mxu0 (!%p187_p2), %v578_v4  ;;  %v582_v14 = vpack.c.bf16 (!%p187_p2), %v261_v12, %v258_v11  ;;  %v259_v16 = vld [vmem:[%s879_s3 + $0x40] sm:$0xff] (!%p187_p2)  ;;  %v262_v17 = vld [vmem:[%s879_s3 + $0x58] sm:$0xff] (!%p187_p2) }
   0x9   : > { %581 = vmatpush1.bf16.msra.mxu0 (!%p187_p2), %v580_v9  ;;  %612 = vmatpush3.bf16.msra.mxu1 (!%p187_p2), %v611_v10  ;;  %v584_v18 = vpack.c.bf16 (!%p187_p2), %v260_v15, %v257_v13  ;;  %v614_v19 = vpack.c.bf16 (!%p187_p2), %v262_v17, %v259_v16  ;;  %v264_v20 = vld [vmem:[%s879_s3 + $0x68] sm:$0xff] (!%p187_p2)  ;;  %v267_v21 = vld [vmem:[%s879_s3 + $0x80] sm:$0xff] (!%p187_p2)  ;;  %v266_v24 = vld [vmem:[%s879_s3 + $0x78] sm:$0xff] (!%p187_p2) }
   0xa   : > { %v263_v22 = vld [vmem:[%s879_s3 + $0x60] sm:$0xff] (!%p187_p2)  ;;  %583 = vmatprep.subr.bf16.mxu0 (!%p187_p2), %v582_v14  ;;  %613 = vmatprep.subr.bf16.mxu1 (!%p187_p2), %v656_v5  ;;  %v586_v23 = vpack.c.bf16 (!%p187_p2), %v267_v21, %v264_v20  ;;  %v265_v25 = vld [vmem:[%s879_s3 + $0x70] sm:$0xff] (!%p187_p2)  ;;  %v268_v26 = vld [vmem:[%s879_s3 + $0x88] sm:$0xff] (!%p187_p2) }
   0xb   : > { %v588_v27 = vpack.c.bf16 (!%p187_p2), %v266_v24, %v263_v22  ;;  %v617_v28 = vpack.c.bf16 (!%p187_p2), %v268_v26, %v265_v25  ;;  %v270_v33 = vld [vmem:[%s879_s3 + $0x98] sm:$0xff] (!%p187_p2)  ;;  %v273_v34 = vld [vmem:[%s879_s3 + $0xb0] sm:$0xff] (!%p187_p2)  ;;  %v272_v37 = vld [vmem:[%s879_s3 + $0xa8] sm:$0xff] (!%p187_p2)  ;;  %v301_v24 = vlaneseq (!%p187_p2) }
   0xc   : > { %v590_v35 = vpack.c.bf16 (!%p187_p2), %v273_v34, %v270_v33  ;;  %v269_v36 = vld [vmem:[%s879_s3 + $0x90] sm:$0xff] (!%p187_p2)  ;;  %v271_v38 = vld [vmem:[%s879_s3 + $0xa0] sm:$0xff] (!%p187_p2)  ;;  %v274_v40 = vld [vmem:[%s879_s3 + $0xb8] sm:$0xff] (!%p187_p2) }
   0xd   : > { %s883_s19 = smov (!%p213_p3, %s515_s19), 1  ;;  %585 = vmatpush1.bf16.msra.mxu0 %v584_v18  ;;  %615 = vmatpush3.bf16.msra.mxu1 %v614_v19  ;;  %v592_v39 = vpack.c.bf16 %v272_v37, %v269_v36  ;;  %v620_v41 = vpack.c.bf16 %v274_v40, %v271_v38  ;;  %v276_v42 = vld [vmem:[%s879_s3 + $0xc8] sm:$0xff]  ;;  %v279_v43 = vld [vmem:[%s879_s3 + $0xe0] sm:$0xff]  ;;  %v278_v46 = vld [vmem:[%s879_s3 + $0xd8] sm:$0xff]  ;;  %v302_v25 = vshrl.u32 %v301_v24, 7 }
   0xe   : > { %s520_s20 = sshll.u32 %s883_s19, 3  ;;  %587 = vmatprep.subr.bf16.mxu0 %v586_v23  ;;  %616 = vmatprep.subr.bf16.mxu1 %v656_v5  ;;  %v594_v44 = vpack.c.bf16 %v279_v43, %v276_v42  ;;  %v275_v45 = vld [vmem:[%s879_s3 + $0xc0] sm:$0xff]  ;;  %v277_v47 = vld [vmem:[%s879_s3 + $0xd0] sm:$0xff]  ;;  %v280_v49 = vld [vmem:[%s879_s3 + $0xe8] sm:$0xff]  ;;  %s634_s9 = smul.u32 24, %s883_s19 }
   0xf   : > { %s216_s23 = scalar_lea.vmem %s876_s0, %s520_s20  ;;  %v596_v48 = vpack.c.bf16 %v278_v46, %v275_v45  ;;  %v282_v50 = vld [vmem:[%s879_s3 + $0xf8] sm:$0xff]  ;;  %v285_v51 = vld [vmem:[%s879_s3 + $0x110] sm:$0xff]  ;;  %v623_v52 = vpack.c.bf16 %v280_v49, %v277_v47  ;;  %v284_v55 = vld [vmem:[%s879_s3 + $0x108] sm:$0xff]  ;;  %v303_v26 = vsub.s32 0, %v302_v25 }
  0x10   : > { %v222_v0 = vld [vmem:[%s216_s23] sm:$0xff]  ;;  %v598_v53 = vpack.c.bf16 %v285_v51, %v282_v50  ;;  %v281_v54 = vld [vmem:[%s879_s3 + $0xf0] sm:$0xff]  ;;  %v286_v59 = vld [vmem:[%s879_s3 + $0x118] sm:$0xff]  ;;  %s221_s12 = scalar_lea.vmem %s881_s5, %s634_s9 }
  0x11   : > { %225 = vadd.xlane.f32.xlu0 %v222_v0  ;;  %589 = vmatpush1.bf16.msra.mxu0 %v588_v27  ;;  %v283_v56 = vld [vmem:[%s879_s3 + $0x100] sm:$0xff]  ;;  %v600_v58 = vpack.c.bf16 %v284_v55, %v281_v54  ;;  %v288_v60 = vld [vmem:[%s879_s3 + $0x128] sm:$0xff]  ;;  %v290_v1 = vld [vmem:[%s879_s3 + $0x138] sm:$0xff]  ;;  %v311_v27 = vsub.s32 2, %v302_v25 }
  0x12   : > { %618 = vmatpush3.bf16.msra.mxu1 %v617_v28  ;;  %591 = vmatprep.subr.bf16.mxu0 %v590_v35  ;;  %v291_v61 = vld [vmem:[%s879_s3 + $0x140] sm:$0xff]  ;;  %v626_v62 = vpack.c.bf16 %v286_v59, %v283_v56  ;;  %v289_v2 = vld [vmem:[%s879_s3 + $0x130] sm:$0xff]  ;;  %v292_v3 = vld [vmem:[%s879_s3 + $0x148] sm:$0xff] }
  0x13   : > { %619 = vmatprep.subr.bf16.mxu1 %v656_v5  ;;  %v602_v63 = vpack.c.bf16 %v291_v61, %v288_v60  ;;  %v294_v4 = vld [vmem:[%s879_s3 + $0x158] sm:$0xff]  ;;  %v297_v6 = vld [vmem:[%s879_s3 + $0x170] sm:$0xff]  ;;  %v629_v8 = vpack.c.bf16 %v292_v3, %v289_v2  ;;  %v296_v11 = vld [vmem:[%s879_s3 + $0x168] sm:$0xff] }
  0x14   : > { %v606_v9 = vpack.c.bf16 %v297_v6, %v294_v4  ;;  %v293_v10 = vld [vmem:[%s879_s3 + $0x150] sm:$0xff]  ;;  %v295_v12 = vld [vmem:[%s879_s3 + $0x160] sm:$0xff]  ;;  %v298_v13 = vld [vmem:[%s879_s3 + $0x178] sm:$0xff] }
  0x15   : > { %593 = vmatpush1.bf16.msra.mxu0 %v592_v39  ;;  %v608_v14 = vpack.c.bf16 %v296_v11, %v293_v10  ;;  %v632_v15 = vpack.c.bf16 %v298_v13, %v295_v12  ;;  %v522_v20 = vld [vmem:[%s877_s1] ss:$0 sm:$0xff] }
  0x16   : > { %621 = vmatpush3.bf16.msra.mxu1 %v620_v41  ;;  %595 = vmatprep.subr.bf16.mxu0 %v594_v44  ;;  %v523_v22 = vld [vmem:[%s878_s2] ss:$0 sm:$0xff] }
  0x17   : > { %622 = vmatprep.subr.bf16.mxu1 %v656_v5  ;;  %v299_v28 = vld [vmem:[%s880_s4] sm:$0x7] }
  0x19   : > { %597 = vmatpush1.bf16.msra.mxu0 %v596_v48 }
  0x1a   : > { %624 = vmatpush3.bf16.msra.mxu1 %v623_v52  ;;  %599 = vmatprep.subr.bf16.mxu0 %v598_v53 }
  0x1b   : > { %625 = vmatprep.subr.bf16.mxu1 %v656_v5 }
  0x1d   : > { %601 = vmatpush1.bf16.msra.mxu0 %v600_v58 }
  0x1e   : > { %627 = vmatpush3.bf16.msra.mxu1 %v626_v62  ;;  %603 = vmatprep.subr.bf16.mxu0 %v602_v63 }
  0x1f   : > { %628 = vmatprep.subr.bf16.mxu1 %v656_v5 }
  0x22   : > { %630 = vmatpush3.bf16.msra.mxu1 %v629_v8 }
  0x23   : > { %631 = vmatprep.subr.bf16.mxu1 %v656_v5 }
  0x26   : > { %633 = vmatpush3.bf16.msra.mxu1 %v632_v15 }
  0x9e   : > { %v226_v29 = vpop.xlane.xlu0 %225 }
  0x9f   : > { %v228_v30 = vmul.f32 0.0078125, %v226_v29  ;;  %v307_v29 = vsub.s32 1, %v302_v25 }
  0xa1   : > { %v761_v31 = vsub.f32 %v222_v0, %v228_v30  ;;  %v287_v0 = vld [vmem:[%s879_s3 + $0x120] sm:$0xff]  ;;  %v304_v30 = vrot.slane %v299_v28, %v303_v26 }
  0xa2   : > { %v604_v7 = vpack.c.bf16 %v290_v1, %v287_v0 }
  0xa3   : > { %v230_v32 = vmul.f32 %v761_v31, %v761_v31 }
  0xa4   : > { %605 = vmatpush1.bf16.msra.mxu0 %v604_v7 }
  0xa5   : > { %231 = vadd.xlane.f32.xlu0 %v230_v32  ;;  %607 = vmatprep.subr.bf16.mxu0 %v606_v9  ;;  %v308_v32 = vrot.slane %v299_v28, %v307_v29 }
  0xa8   : > { %609 = vmatpush1.bf16.msra.mxu0 %v608_v14 }
 0x132   : > { %v232_v16 = vpop.xlane.xlu0 %231 }
 0x133   : > { %v233_v17 = vmul.f32 0.0078125, %v232_v16 }
 0x135   : > { %v234_v18 = vadd.f32 1e-05, %v233_v17 }
 0x137   : > { %646 = vrsqrt.f32 %v234_v18 }
 0x141   : > { %v647_v19 = vpop.eup %646 }
 0x142   : > { %v236_v21 = vmul.f32 %v647_v19, %v761_v31  ;;  %v312_v31 = vrot.slane %v299_v28, %v311_v27 }
 0x144   : > { %v243_v23 = vmul.f32 %v522_v20, %v236_v21 }
 0x146   : > { %v250_v5 = vadd.f32 %v523_v22, %v243_v23 }
 0x148   : > { %381 = vmatmul.mubr.f32.vlgmr.msra.gmra.mrb[0].mxu0 %v250_v5  ;;  %576 = vmatmul.mubr.f32.vlgmr.msra.gmra.mrb[0].mxu1 %v250_v5 }
 0x21b   : > { %v382_v33 = vpop.f32.mrb[0].mxu0  ;;  %v453_v34 = vpop.f32.mrb[0].mxu1 }
 0x21c   : > { %v383_v35 = vadd.f32 %v382_v33, %v304_v30  ;;  %v454_v36 = vadd.f32 %v453_v34, %v312_v31  ;;  %v384_v37 = vpop.f32.mrb[1].mxu0  ;;  %v577_v38 = vpop.f32.mrb[1].mxu1 }
 0x21d   : > { %v385_v39 = vadd.f32 %v384_v37, %v308_v32 }
 0x21e   : > { %457 = vst [vmem:[%s221_s12] sm:$0xff] %v383_v35  ;;  %459 = vst [vmem:[%s221_s12 + $0x10] sm:$0xff] %v454_v36 }
 0x21f   : > { %458 = vst [vmem:[%s221_s12 + $0x8] sm:$0xff] %v385_v39 }
 0x220 PF: > { %s15_s18 = sadd.s32 1, %s654_s18  }
 0x221   : > { %p12_p4 = scmp.ge.s32.totalorder %s15_s18, 4  }
 0x223   :  { %14 = sbr.rel (!%p12_p4) target bundleno = 1 (0x1), region = 70 }

// kernel: _lambda_.6
= control target key start
LH: loop header
LB: loop body
LE: loop exit
PB: predicated region body
PF: predicated region fallthrough
CT: control target
= control target key end

     0   :  { %10 = vsyncpa [#allocation3], 0  ;;  %s1086_s0 = inlined_call_operand.vmem [shape: f32[16,128], index: 0, kind: input, shape index: {}]   ;;  %s1087_s1 = inlined_call_operand.vmem [shape: f32[1,128], index: 1, kind: input, shape index: {}]   ;;  %s1088_s2 = inlined_call_operand.hbm [shape: f32[1,128], index: 2, kind: input, shape index: {}]   ;;  %s1089_s3 = inlined_call_operand.vmem [shape: f32[128,384], index: 3, kind: input, shape index: {}]   ;;  %s1090_s4 = inlined_call_operand.hbm [shape: f32[1,384], index: 4, kind: input, shape index: {}]   ;;  %s1091_s5 = inlined_call_operand.vmem [shape: f32[16,384], index: 5, kind: output, shape index: {}]  }
   0x1   :  { %11 = vsyncpa [#allocation5], 0  ;;  %s828_s18 = smov 0  }
   0x2 LB: > { %s834_s19 = sadd.s32 4294967295, %s791_s18   ;;  %p565_p0 = scmp.ge.s32.totalorder %s791_s18, 1  ;;  %s791_s18 = sphi %s828_s18, %s17_s18  }
   0x3   : > { %p158_p1 = scmp.lt.s32.totalorder %s791_s18, 3  ;;  %p1092_p2 = scmp.eq.s32.totalorder %s834_s19, 0 }
   0x4   : > { %s793_s21 = smov [#allocation2]   ;;  %s794_s23 = smov [#allocation4]  }
   0x5   : > { %p839_p3 = pnand %p565_p0, %p158_p1  ;;  %s174_s22 = sshll.u32 %s793_s21, 4  ;;  %s175_s22 = int_to_ptr.vmem [resolvable:$true] %s174_s22 }
   0x6   : > { %s188_s24 = sshll.u32 %s794_s23, 4  ;;  %s721_s28 = scalar_lea.hbm %s1088_s2, 16  ;;  %s851_s24 = int_to_ptr.vmem [resolvable:$true] %s188_s24 }
   0x7   : > { %s1094_s20 = scalar_select %p839_p3, 1, 0 }
   0x8   : > { %p695_p4 = pneg %p839_p3  ;;  %p722_p6 = scmp.ne.s32.totalorder %s1088_s2, %s721_s28 }
   0x9   : > { %p728_p10 = scmp.lt.u32.totalorder %s721_s28, %s1088_s2 }
   0xa   : > { %p847_p5 = pnand %p1092_p2, %p695_p4 }
   0xc   : > { %p723_p7 = pneg %p847_p5 }
   0xe   : > { %p724_p8 = pnand %p723_p7, %p722_p6 }
  0x10   : > { %p725_p9 = pneg %p724_p8 }
  0x12   : > { %p730_p11 = pnand %p728_p10, %p725_p9 }
  0x14   : > { %733 = shalt.err (!%p730_p11)
}
  0x15   : > { %s734_s8 = scalar_lea.vmem %s175_s22, 16  ;;  %s741_s9 = scalar_lea.vmem %s175_s22, 32 }
  0x16   : > { %p735_p12 = scmp.ne.s32.totalorder %s175_s22, %s734_s8  ;;  %p742_p1 = scmp.lt.s32.totalorder %s175_s22, %s175_s22 }
  0x17   : > { %p743_p4 = scmp.lt.s32.totalorder %s741_s9, %s734_s8 }
  0x18   : > { %p737_p13 = pnand %p735_p12, %p723_p7 }
  0x19   : > { %p744_p2 = por %p743_p4, %p742_p1 }
  0x1a   : > { %p738_p0 = pneg %p737_p13 }
  0x1c   : > { %p745_p3 = pnand %p744_p2, %p738_p0 }
  0x1e   : > { %748 = shalt.err (!%p745_p3)
}
  0x1f   : > { %698 = dma.hbm_to_vmem [thread:$0]  (!%p847_p5), %s1088_s2, 16, %s175_s22, [#allocation3]  }
  0x20   : > { %s749_s14 = scalar_lea.hbm %s1090_s4, 48 }
  0x21   : > { %p750_p6 = scmp.ne.s32.totalorder %s1090_s4, %s749_s14  ;;  %p756_p3 = scmp.lt.u32.totalorder %s749_s14, %s1090_s4 }
  0x23   : > { %p752_p8 = pnand %p750_p6, %p723_p7 }
  0x25   : > { %p753_p2 = pneg %p752_p8 }
  0x27   : > { %p758_p9 = pnand %p756_p3, %p753_p2 }
  0x29   : > { %761 = shalt.err (!%p758_p9)
}
  0x2a   : > { %s762_s22 = scalar_lea.vmem %s851_s24, 48  ;;  %s769_s23 = scalar_lea.vmem %s851_s24, 64 }
  0x2b   : > { %p763_p10 = scmp.ne.s32.totalorder %s851_s24, %s762_s22  ;;  %p770_p13 = scmp.lt.s32.totalorder %s851_s24, %s851_s24 }
  0x2c   : > { %p771_p0 = scmp.lt.s32.totalorder %s769_s23, %s762_s22 }
  0x2d   : > { %p765_p11 = pnand %p763_p10, %p723_p7 }
  0x2e   : > { %p772_p1 = por %p771_p0, %p770_p13 }
  0x2f   : > { %p766_p12 = pneg %p765_p11 }
  0x31   : > { %p773_p4 = pnand %p772_p1, %p766_p12 }
  0x33   : > { %776 = shalt.err (!%p773_p4)
}
  0x34   : > { %701 = dma.hbm_to_vmem [thread:$0]  (!%p847_p5), %s1090_s4, 48, %s851_s24, [#allocation5]  }
  0x35   : > { %p1096_p6 = scmp.ne.s32.totalorder %s1094_s20, 0 }
  0x36   : > { %p1097_p7 = scmp.eq.s32.totalorder (!%p1096_p6), %s834_s19, 0 }
  0x37   : > { %208 = sbr.rel (%p1096_p6) target bundleno = 599 (0x257), region = 40 }
  0x3e   : > { %782 = dma.done.wait (%p1097_p7), [#allocation3], 16   ;;  %p1098_p8 = pmov %p1097_p7 }
  0x3f   : > { %p1099_p2 = pmov %p1097_p7 }
  0x40   : > { %784 = vsyncadd (%p1098_p8), [#allocation3], 4294967280 }
  0x41   : > { %786 = dma.done.wait (%p1099_p2), [#allocation5], 48   ;;  %p1100_p3 = pmov %p1099_p2 }
  0x42   : > { %p239_p9 = scmp.lt.s32.totalorder %s834_s19, 1  ;;  %v278_v1 = vld [vmem:[%s1089_s3 + $0x8] sm:$0xff]  ;;  %v281_v2 = vld [vmem:[%s1089_s3 + $0x20] sm:$0xff]  ;;  %v795_v5 = vmov 0.0|0.0   ;;  %v280_v6 = vld [vmem:[%s1089_s3 + $0x18] sm:$0xff]  ;;  %v796_v57 = vmov 0.0  }
  0x43   : > { %788 = vsyncadd (%p1100_p3), [#allocation5], 4294967248  ;;  %v277_v3 = vld [vmem:[%s1089_s3] sm:$0xff]  ;;  %v630_v4 = vpack.c.bf16 %v281_v2, %v278_v1  ;;  %662 = vmatprep.subr.bf16.mxu1 %v795_v5  ;;  %v279_v7 = vld [vmem:[%s1089_s3 + $0x10] sm:$0xff]  ;;  %406 = vmatprep.mubr.f32.mxu0 %v796_v57  ;;  %vm797_vm0 = vmmov 0  }
  0x44   : > { %s1102_s19 = smov (!%p239_p9, %s834_s19), 1  ;;  %v282_v8 = vld [vmem:[%s1089_s3 + $0x28] sm:$0xff]  ;;  %v632_v9 = vpack.c.bf16 %v280_v6, %v277_v3  ;;  %v284_v11 = vld [vmem:[%s1089_s3 + $0x38] sm:$0xff]  ;;  %v287_v12 = vld [vmem:[%s1089_s3 + $0x50] sm:$0xff]  ;;  %627 = vmatprep.mubr.msk.f32.mxu1 %vm797_vm0, %v796_v57 }
  0x45   : > { %s572_s20 = sshll.u32 %s1102_s19, 3  ;;  %v663_v10 = vpack.c.bf16 %v282_v8, %v279_v7  ;;  %v283_v13 = vld [vmem:[%s1089_s3 + $0x30] sm:$0xff]  ;;  %631 = vmatprep.subr.bf16.mxu0 %v630_v4  ;;  %v634_v14 = vpack.c.bf16 %v287_v12, %v284_v11  ;;  %v286_v15 = vld [vmem:[%s1089_s3 + $0x48] sm:$0xff]  ;;  %v285_v16 = vld [vmem:[%s1089_s3 + $0x40] sm:$0xff]  ;;  %s686_s10 = smul.u32 24, %s1102_s19 }
  0x46   : > { %s242_s28 = scalar_lea.vmem %s1086_s0, %s572_s20  ;;  %v288_v17 = vld [vmem:[%s1089_s3 + $0x58] sm:$0xff]  ;;  %633 = vmatpush1.bf16.msra.mxu0 %v632_v9  ;;  %v636_v18 = vpack.c.bf16 %v286_v15, %v283_v13  ;;  %v290_v20 = vld [vmem:[%s1089_s3 + $0x68] sm:$0xff]  ;;  %v293_v21 = vld [vmem:[%s1089_s3 + $0x80] sm:$0xff] }
  0x47   : > { %v248_v0 = vld [vmem:[%s242_s28] sm:$0xff]  ;;  %664 = vmatpush3.bf16.msra.mxu1 %v663_v10  ;;  %v666_v19 = vpack.c.bf16 %v288_v17, %v285_v16  ;;  %635 = vmatprep.subr.bf16.mxu0 %v634_v14  ;;  %v638_v23 = vpack.c.bf16 %v293_v21, %v290_v20  ;;  %v292_v24 = vld [vmem:[%s1089_s3 + $0x78] sm:$0xff]  ;;  %v291_v25 = vld [vmem:[%s1089_s3 + $0x70] sm:$0xff]  ;;  %s247_s13 = scalar_lea.vmem %s1091_s5, %s686_s10 }
  0x48   : > { %251 = vadd.xlane.f32.xlu0 %v248_v0  ;;  %v289_v22 = vld [vmem:[%s1089_s3 + $0x60] sm:$0xff]  ;;  %665 = vmatprep.subr.bf16.mxu1 %v795_v5  ;;  %v294_v26 = vld [vmem:[%s1089_s3 + $0x88] sm:$0xff]  ;;  %v296_v33 = vld [vmem:[%s1089_s3 + $0x98] sm:$0xff] }
  0x49   : > { %v640_v27 = vpack.c.bf16 %v292_v24, %v289_v22  ;;  %v669_v28 = vpack.c.bf16 %v294_v26, %v291_v25  ;;  %v299_v34 = vld [vmem:[%s1089_s3 + $0xb0] sm:$0xff]  ;;  %v298_v37 = vld [vmem:[%s1089_s3 + $0xa8] sm:$0xff]  ;;  %v297_v38 = vld [vmem:[%s1089_s3 + $0xa0] sm:$0xff] }
  0x4a   : > { %637 = vmatpush1.bf16.msra.mxu0 %v636_v18  ;;  %v642_v35 = vpack.c.bf16 %v299_v34, %v296_v33  ;;  %v295_v36 = vld [vmem:[%s1089_s3 + $0x90] sm:$0xff]  ;;  %v300_v40 = vld [vmem:[%s1089_s3 + $0xb8] sm:$0xff]  ;;  %v302_v42 = vld [vmem:[%s1089_s3 + $0xc8] sm:$0xff] }
  0x4b   : > { %667 = vmatpush3.bf16.msra.mxu1 %v666_v19  ;;  %639 = vmatprep.subr.bf16.mxu0 %v638_v23  ;;  %v644_v39 = vpack.c.bf16 %v298_v37, %v295_v36  ;;  %v672_v41 = vpack.c.bf16 %v300_v40, %v297_v38  ;;  %v305_v43 = vld [vmem:[%s1089_s3 + $0xe0] sm:$0xff]  ;;  %v304_v46 = vld [vmem:[%s1089_s3 + $0xd8] sm:$0xff]  ;;  %v303_v47 = vld [vmem:[%s1089_s3 + $0xd0] sm:$0xff] }
  0x4c   : > { %668 = vmatprep.subr.bf16.mxu1 %v795_v5  ;;  %v646_v44 = vpack.c.bf16 %v305_v43, %v302_v42  ;;  %v301_v45 = vld [vmem:[%s1089_s3 + $0xc0] sm:$0xff]  ;;  %v306_v49 = vld [vmem:[%s1089_s3 + $0xe8] sm:$0xff]  ;;  %v308_v50 = vld [vmem:[%s1089_s3 + $0xf8] sm:$0xff] }
  0x4d   : > { %v648_v48 = vpack.c.bf16 %v304_v46, %v301_v45  ;;  %v311_v51 = vld [vmem:[%s1089_s3 + $0x110] sm:$0xff]  ;;  %v675_v52 = vpack.c.bf16 %v306_v49, %v303_v47  ;;  %v310_v55 = vld [vmem:[%s1089_s3 + $0x108] sm:$0xff]  ;;  %v309_v56 = vld [vmem:[%s1089_s3 + $0x100] sm:$0xff] }
  0x4e   : > { %641 = vmatpush1.bf16.msra.mxu0 %v640_v27  ;;  %v650_v53 = vpack.c.bf16 %v311_v51, %v308_v50  ;;  %v307_v54 = vld [vmem:[%s1089_s3 + $0xf0] sm:$0xff]  ;;  %v312_v59 = vld [vmem:[%s1089_s3 + $0x118] sm:$0xff]  ;;  %v314_v60 = vld [vmem:[%s1089_s3 + $0x128] sm:$0xff] }
  0x4f   : > { %670 = vmatpush3.bf16.msra.mxu1 %v669_v28  ;;  %643 = vmatprep.subr.bf16.mxu0 %v642_v35  ;;  %v652_v58 = vpack.c.bf16 %v310_v55, %v307_v54  ;;  %v317_v61 = vld [vmem:[%s1089_s3 + $0x140] sm:$0xff]  ;;  %v678_v62 = vpack.c.bf16 %v312_v59, %v309_v56  ;;  %v316_v1 = vld [vmem:[%s1089_s3 + $0x138] sm:$0xff]  ;;  %v315_v2 = vld [vmem:[%s1089_s3 + $0x130] sm:$0xff] }
  0x50   : > { %671 = vmatprep.subr.bf16.mxu1 %v795_v5  ;;  %v654_v63 = vpack.c.bf16 %v317_v61, %v314_v60  ;;  %v318_v3 = vld [vmem:[%s1089_s3 + $0x148] sm:$0xff]  ;;  %v320_v4 = vld [vmem:[%s1089_s3 + $0x158] sm:$0xff]  ;;  %v323_v6 = vld [vmem:[%s1089_s3 + $0x170] sm:$0xff] }
  0x51   : > { %v681_v8 = vpack.c.bf16 %v318_v3, %v315_v2  ;;  %v658_v9 = vpack.c.bf16 %v323_v6, %v320_v4  ;;  %v319_v10 = vld [vmem:[%s1089_s3 + $0x150] sm:$0xff]  ;;  %v322_v11 = vld [vmem:[%s1089_s3 + $0x168] sm:$0xff]  ;;  %v321_v12 = vld [vmem:[%s1089_s3 + $0x160] sm:$0xff] }
  0x52   : > { %645 = vmatpush1.bf16.msra.mxu0 %v644_v39  ;;  %v324_v13 = vld [vmem:[%s1089_s3 + $0x178] sm:$0xff]  ;;  %v660_v14 = vpack.c.bf16 %v322_v11, %v319_v10  ;;  %v574_v20 = vld [vmem:[%s1087_s1] ss:$0 sm:$0xff]  ;;  %v325_v28 = vld [vmem:[#allocation4] sm:$0x7] }
  0x53   : > { %673 = vmatpush3.bf16.msra.mxu1 %v672_v41  ;;  %647 = vmatprep.subr.bf16.mxu0 %v646_v44  ;;  %v684_v15 = vpack.c.bf16 %v324_v13, %v321_v12  ;;  %v575_v22 = vld [vmem:[#allocation2] ss:$0 sm:$0xff] }
  0x54   : > { %674 = vmatprep.subr.bf16.mxu1 %v795_v5 }
  0x56   : > { %649 = vmatpush1.bf16.msra.mxu0 %v648_v48 }
  0x57   : > { %676 = vmatpush3.bf16.msra.mxu1 %v675_v52  ;;  %651 = vmatprep.subr.bf16.mxu0 %v650_v53 }
  0x58   : > { %677 = vmatprep.subr.bf16.mxu1 %v795_v5 }
  0x5a   : > { %653 = vmatpush1.bf16.msra.mxu0 %v652_v58 }
  0x5b   : > { %679 = vmatpush3.bf16.msra.mxu1 %v678_v62  ;;  %655 = vmatprep.subr.bf16.mxu0 %v654_v63 }
  0x5c   : > { %680 = vmatprep.subr.bf16.mxu1 %v795_v5 }
  0x5f   : > { %682 = vmatpush3.bf16.msra.mxu1 %v681_v8 }
  0x60   : > { %683 = vmatprep.subr.bf16.mxu1 %v795_v5  ;;  %v327_v5 = vlaneseq }
  0x62   : > { %v328_v25 = vshrl.u32 %v327_v5, 7 }
  0x63   : > { %685 = vmatpush3.bf16.msra.mxu1 %v684_v15 }
  0x64   : > { %v329_v26 = vsub.s32 0, %v328_v25  ;;  %v337_v27 = vsub.s32 2, %v328_v25 }
  0xd5   : > { %v252_v29 = vpop.xlane.xlu0 %251 }
  0xd6   : > { %v254_v30 = vmul.f32 0.0078125, %v252_v29  ;;  %v333_v29 = vsub.s32 1, %v328_v25 }
  0xd8   : > { %v977_v31 = vsub.f32 %v248_v0, %v254_v30  ;;  %v313_v0 = vld [vmem:[%s1089_s3 + $0x120] sm:$0xff]  ;;  %v330_v30 = vrot.slane %v325_v28, %v329_v26  ;;  %v334_v33 = vrot.slane %v325_v28, %v333_v29 }
  0xd9   : > { %v656_v7 = vpack.c.bf16 %v316_v1, %v313_v0 }
  0xda   : > { %v256_v32 = vmul.f32 %v977_v31, %v977_v31 }
  0xdb   : > { %657 = vmatpush1.bf16.msra.mxu0 %v656_v7 }
  0xdc   : > { %257 = vadd.xlane.f32.xlu0 %v256_v32  ;;  %659 = vmatprep.subr.bf16.mxu0 %v658_v9  ;;  %v338_v32 = vrot.slane %v325_v28, %v337_v27 }
  0xdf   : > { %661 = vmatpush1.bf16.msra.mxu0 %v660_v14 }
 0x169   : > { %v258_v16 = vpop.xlane.xlu0 %257 }
 0x16a   : > { %v259_v17 = vmul.f32 0.0078125, %v258_v16 }
 0x16c   : > { %v260_v18 = vadd.f32 1e-05, %v259_v17 }
 0x16e   : > { %719 = vrsqrt.f32 %v260_v18 }
 0x178   : > { %v720_v19 = vpop.eup %719 }
 0x179   : > { %v262_v21 = vmul.f32 %v720_v19, %v977_v31 }
 0x17b   : > { %v269_v23 = vmul.f32 %v574_v20, %v262_v21 }
 0x17d   : > { %v276_v24 = vadd.f32 %v575_v22, %v269_v23 }
 0x17f   : > { %407 = vmatmul.mubr.f32.vlgmr.msra.gmra.mrb[0].mxu0 %v276_v24  ;;  %628 = vmatmul.mubr.f32.vlgmr.msra.gmra.mrb[0].mxu1 %v276_v24 }
 0x252   : > { %v408_v31 = vpop.f32.mrb[0].mxu0  ;;  %v479_v34 = vpop.f32.mrb[0].mxu1 }
 0x253   : > { %v409_v35 = vadd.f32 %v408_v31, %v330_v30  ;;  %v480_v36 = vadd.f32 %v479_v34, %v338_v32  ;;  %v410_v37 = vpop.f32.mrb[1].mxu0  ;;  %v629_v38 = vpop.f32.mrb[1].mxu1 }
 0x254   : > { %v411_v39 = vadd.f32 %v410_v37, %v334_v33 }
 0x255   : > { %483 = vst [vmem:[%s247_s13] sm:$0xff] %v409_v35  ;;  %485 = vst [vmem:[%s247_s13 + $0x10] sm:$0xff] %v480_v36 }
 0x256   : > { %484 = vst [vmem:[%s247_s13 + $0x8] sm:$0xff] %v411_v39 }
 0x257 PF: > { %s17_s18 = sadd.s32 1, %s791_s18  }
 0x258   : > { %p14_p5 = scmp.ge.s32.totalorder %s17_s18, 4  }
 0x25a   :  { %16 = sbr.rel (!%p14_p5) target bundleno = 2 (0x2), region = 79 }
 0x261   :  { %507 = vsyncpa [#allocation3], 1 }
 0x262   :  { %509 = vsyncpa [#allocation3 + $0x1], 1 }
 0x263   :  { %510 = vsyncpa [#allocation5], 1 }

// kernel: _lambda_.8
= control target key start
LH: loop header
LB: loop body
LE: loop exit
PB: predicated region body
PF: predicated region fallthrough
CT: control target
= control target key end

     0   :  { %s1758_s0 = inlined_call_operand.vmem [shape: f32[16,128], index: 0, kind: input, shape index: {}]   ;;  %s1759_s1 = inlined_call_operand.vmem [shape: f32[16,128], index: 1, kind: input, shape index: {}]   ;;  %s1760_s2 = inlined_call_operand.hbm [shape: f32[128,128], index: 2, kind: input, shape index: {}]   ;;  %s1761_s3 = inlined_call_operand.vmem [shape: f32[1,128], index: 3, kind: input, shape index: {}]   ;;  %s1762_s4 = inlined_call_operand.vmem [shape: f32[1,128], index: 4, kind: input, shape index: {}]   ;;  %s1763_s5 = inlined_call_operand.vmem [shape: f32[1,128], index: 5, kind: input, shape index: {}]   ;;  %s1764_s6 = inlined_call_operand.vmem [shape: f32[128,256], index: 6, kind: input, shape index: {}]   ;;  %s1765_s7 = inlined_call_operand.vmem [shape: f32[1,256], index: 7, kind: input, shape index: {}]   ;;  %s1766_s8 = inlined_call_operand.vmem [shape: f32[256,128], index: 8, kind: input, shape index: {}]   ;;  %s1767_s9 = inlined_call_operand.vmem [shape: f32[1,128], index: 9, kind: input, shape index: {}]   ;;  %s1768_s10 = inlined_call_operand.vmem [shape: f32[16,128], index: 10, kind: output, shape index: {}]  }
   0x1   :  { %1775 = sst [smem:[#allocation14_spill]] %s1760_s2 }
   0x2   :  { %1776 = sst [smem:[#allocation15_spill]] %s1764_s6 }
   0x3   :  { %1777 = sst [smem:[#allocation16_spill]] %s1767_s9 }
   0x4   :  { %15 = vsyncpa [#allocation6], 0  ;;  %s1500_s13 = smov 0   ;;  %s1502_s14 = smov 0  }
   0x5   :  { %s1504_s15 = smov 0   ;;  %s1506_s16 = smov 0  }
   0x6   :  { %s1508_s17 = smov 0   ;;  %s1510_s18 = smov 0  }
   0x7   :  { %s1512_s19 = smov 0  }
   0x8 LB: > { %1778 = sst [smem:[#allocation9_spill]] %s1426_s17  ;;  %s1017_s20 = sadd.s32 4294967295, %s1434_s19   ;;  %s1434_s19 = sphi %s1512_s19, %s21_s19   ;;  %s1430_s18 = sphi %s1510_s18, %s1797_s18   ;;  %s1426_s17 = sphi %s1508_s17, %s1796_s17   ;;  %s1422_s16 = sphi %s1506_s16, %s1795_s16   ;;  %s1418_s15 = sphi %s1504_s15, %s1800_s15   ;;  %s1414_s14 = sphi %s1502_s14, %s1799_s14   ;;  %s1410_s13 = sphi %s1500_s13, %s1798_s13  }
   0x9   : > { %1779 = sst [smem:[#allocation10_spill]] %s1430_s18  ;;  %s30_s21 = sadd.s32 1, %s1426_s17 }
   0xa   : > { %p31_p0 = scmp.ge.s32.totalorder %s30_s21, 2  ;;  %s33_s22 = sadd.s32 1, %s1430_s18 }
   0xb   : > { %s176_s23 = sadd.s32 1, %s1414_s14  ;;  %p183_p1 = scmp.ne.s32.totalorder %s1414_s14, %s1410_s13 }
   0xc   : > { %s1802_s21 = smov (%p31_p0, %s30_s21), 0  ;;  %s1804_s22 = smov (!%p31_p0, %s33_s22), %s1430_s18 }
   0xd   : > { %1780 = sst [smem:[#allocation11_spill]] %s1802_s21  ;;  %s173_s24 = ssub.s32 %s1426_s17, %s1802_s21 }
   0xe   : > { %p184_p2 = scmp.eq.s32.totalorder %s1434_s19, 0  ;;  %p35_p3 = scmp.ge.s32.totalorder %s1804_s22, 2 }
   0xf   : > { %p174_p4 = scmp.eq.s32.totalorder %s173_s24, 0  ;;  %p1019_p6 = scmp.ge.s32.totalorder %s1434_s19, 1 }
  0x10   : > { %p1547_p5 = por %p184_p2, %p183_p1  ;;  %s1806_s22 = smov (%p35_p3, %s1804_s22), 0 }
  0x11   : > { %1782 = sst [smem:[#allocation12_spill]] %s1806_s22  ;;  %p299_p7 = scmp.lt.s32.totalorder %s1434_s19, 5 }
  0x12   : > { %s1781_s25 = scalar_select %p1547_p5, 1, 0 }
  0x13   : > { %s1555_s26 = scalar_select %p174_p4, %s1414_s14, %s176_s23  }
  0x14   : > { %p1558_p8 = scmp.eq.s32.totalorder %s1017_s20, 0  ;;  %p1562_p9 = pnand %p1019_p6, %p299_p7 }
  0x15   : > { %1783 = sst [smem:[#allocation13_spill]] %s1555_s26  ;;  %s1436_s29 = smov [#allocation5]  }
  0x16   : > { %s1784_s27 = scalar_select %p1558_p8, 1, 0 }
  0x17   : > { %s1785_s28 = scalar_select %p1562_p9, 1, 0 }
  0x18   : > { %s311_s30 = sshll.u32 %s1436_s29, 4  ;;  %p1273_p10 = pneg %p1562_p9  ;;  %s312_s30 = int_to_ptr.vmem [resolvable:$true] %s311_s30 }
  0x19   : > { %s1787_s2 = sld [smem:[#allocation14_spill]] }
  0x1a   : > { %p1570_p11 = pnand %p1558_p8, %p1273_p10 }
  0x1c   : > { %p1350_p13 = pneg %p1570_p11 }
  0x1f   : > { %s1348_s23 = scalar_lea.hbm %s1787_s2, 2048 }
  0x20   : > { %p1349_p12 = scmp.ne.s32.totalorder %s1787_s2, %s1348_s23  ;;  %p1355_p2 = scmp.lt.u32.totalorder %s1348_s23, %s1787_s2 }
  0x22   : > { %p1351_p0 = pnand %p1350_p13, %p1349_p12 }
  0x24   : > { %p1352_p1 = pneg %p1351_p0 }
  0x26   : > { %p1357_p3 = pnand %p1355_p2, %p1352_p1 }
  0x28   : > { %1360 = shalt.err (!%p1357_p3)
}
  0x29   : > { %s1361_s18 = scalar_lea.vmem %s312_s30, 2048  ;;  %p1369_p10 = scmp.lt.s32.totalorder %s312_s30, %s312_s30 }
  0x2a   : > { %p1362_p4 = scmp.ne.s32.totalorder %s312_s30, %s1361_s18  ;;  %p1370_p8 = scmp.lt.s32.totalorder %s1361_s18, %s1361_s18 }
  0x2c   : > { %p1364_p6 = pnand %p1362_p4, %p1350_p13  ;;  %p1371_p9 = por %p1370_p8, %p1369_p10 }
  0x2e   : > { %p1365_p7 = pneg %p1364_p6 }
  0x30   : > { %p1372_p5 = pnand %p1371_p9, %p1365_p7 }
  0x32   : > { %1375 = shalt.err (!%p1372_p5)
}
  0x33   : > { %s1437_s22 = smov 128   ;;  %s1438_s12 = smov 8  }
  0x34   : > { %1276 = dma.hbm_to_vmem [thread:$0]  (!%p1570_p11), %s1787_s2, 2048, %s312_s30, [#allocation6], %s1437_s22, %s1437_s22, %s1438_s12  }
  0x35   : > { %p1021_p12 = scmp.ge.s32.totalorder %s1434_s19, 4 }
  0x36   : > { %p1788_p0 = scmp.ne.s32.totalorder (!%p1021_p12), %s1781_s25, 0 }
  0x37   : > { %333 = sbr.rel (%p1021_p12) target bundleno = 80 (0x50), region = 36 }
  0x3e   : > { %350 = sbr.rel (!%p1788_p0) target bundleno = 80 (0x50), region = 48  ;;  %s352_s18 = sand.u32 (%p1788_p0), 1, %s1414_s14  }
  0x3f   : > { %s1023_s21 = sshll.u32 (%p1788_p0), %s1426_s17, 3  ;;  %s1022_s23 = sshll.u32 (%p1788_p0), %s352_s18, 7 }
  0x40   : > { %s1789_s6 = sld [smem:[#allocation15_spill]] (%p1788_p0)  ;;  %s354_s25 = scalar_lea.vmem (%p1788_p0), [#allocation7], %s1022_s23 }
  0x46   : > { %s1598_s9 = scalar_lea.vmem %s1789_s6, %s1023_s21 }
  0x47   : > { %v414_v0 = vld [vmem:[%s1598_s9] sm:$0xff]  ;;  %v416_v1 = vld [vmem:[%s1598_s9 + $0x10] sm:$0xff] }
  0x48   : > { %v418_v2 = vld [vmem:[%s1598_s9 + $0x20] sm:$0xff]  ;;  %415 = vst [vmem:[%s354_s25] sm:$0xff] %v414_v0  ;;  %417 = vst [vmem:[%s354_s25 + $0x8] sm:$0xff] %v416_v1  ;;  %v420_v3 = vld [vmem:[%s1598_s9 + $0x30] sm:$0xff] }
  0x49   : > { %419 = vst [vmem:[%s354_s25 + $0x10] sm:$0xff] %v418_v2  ;;  %v422_v4 = vld [vmem:[%s1598_s9 + $0x40] sm:$0xff]  ;;  %v424_v5 = vld [vmem:[%s1598_s9 + $0x50] sm:$0xff]  ;;  %421 = vst [vmem:[%s354_s25 + $0x18] sm:$0xff] %v420_v3 }
  0x4a   : > { %423 = vst [vmem:[%s354_s25 + $0x20] sm:$0xff] %v422_v4  ;;  %425 = vst [vmem:[%s354_s25 + $0x28] sm:$0xff] %v424_v5  ;;  %v426_v6 = vld [vmem:[%s1598_s9 + $0x60] sm:$0xff]  ;;  %v428_v7 = vld [vmem:[%s1598_s9 + $0x70] sm:$0xff] }
  0x4b   : > { %v430_v8 = vld [vmem:[%s1598_s9 + $0x80] sm:$0xff]  ;;  %427 = vst [vmem:[%s354_s25 + $0x30] sm:$0xff] %v426_v6  ;;  %429 = vst [vmem:[%s354_s25 + $0x38] sm:$0xff] %v428_v7  ;;  %v432_v9 = vld [vmem:[%s1598_s9 + $0x90] sm:$0xff] }
  0x4c   : > { %431 = vst [vmem:[%s354_s25 + $0x40] sm:$0xff] %v430_v8  ;;  %v434_v10 = vld [vmem:[%s1598_s9 + $0xa0] sm:$0xff]  ;;  %v436_v11 = vld [vmem:[%s1598_s9 + $0xb0] sm:$0xff]  ;;  %433 = vst [vmem:[%s354_s25 + $0x48] sm:$0xff] %v432_v9 }
  0x4d   : > { %435 = vst [vmem:[%s354_s25 + $0x50] sm:$0xff] %v434_v10  ;;  %437 = vst [vmem:[%s354_s25 + $0x58] sm:$0xff] %v436_v11  ;;  %v438_v12 = vld [vmem:[%s1598_s9 + $0xc0] sm:$0xff]  ;;  %v440_v13 = vld [vmem:[%s1598_s9 + $0xd0] sm:$0xff] }
  0x4e   : > { %v442_v14 = vld [vmem:[%s1598_s9 + $0xe0] sm:$0xff]  ;;  %439 = vst [vmem:[%s354_s25 + $0x60] sm:$0xff] %v438_v12  ;;  %441 = vst [vmem:[%s354_s25 + $0x68] sm:$0xff] %v440_v13  ;;  %v444_v15 = vld [vmem:[%s1598_s9 + $0xf0] sm:$0xff] }
  0x4f   : > { %443 = vst [vmem:[%s354_s25 + $0x70] sm:$0xff] %v442_v14  ;;  %445 = vst [vmem:[%s354_s25 + $0x78] sm:$0xff] %v444_v15 }
  0x50 PF: > { %p1790_p5 = scmp.ne.s32.totalorder %s1785_s28, 0 }
  0x51   : > { %p1791_p8 = scmp.ne.s32.totalorder (!%p1790_p5), %s1784_s27, 0 }
  0x52   : > { %469 = sbr.rel (%p1790_p5) target bundleno = 1161 (0x489), region = 94 }
  0x59   : > { %1405 = dma.done.wait (%p1791_p8), [#allocation6], 2048  }
  0x5a   : > { %1407 = vsyncadd (%p1791_p8), [#allocation6], 4294965248  ;;  %s476_s26 = sand.u32 1, %s1410_s13   ;;  %p528_p9 = scmp.lt.s32.totalorder %s1422_s16, 1 }
  0x5b   : > { %s1026_s9 = sshll.u32 %s476_s26, 7  ;;  %p536_p11 = scmp.lt.s32.totalorder %s1418_s15, 1 }
  0x5c   : > { %s1029_s30 = sshll.u32 %s1418_s15, 4  ;;  %s1808_s16 = smov (!%p528_p9, %s1422_s16), 1 }
  0x5d   : > { %s1628_s28 = scalar_select %p536_p11, %s1418_s15, 1 }
  0x5e   : > { %s1630_s11 = sshll.u32 %s1808_s16, 3  ;;  %p540_p13 = scmp.lt.s32.totalorder %s1029_s30, 31 }
  0x5f   : > { %s531_s12 = scalar_lea.vmem %s1758_s0, %s1630_s11  ;;  %s535_s24 = scalar_lea.vmem %s1759_s1, %s1630_s11 }
  0x60   : > { %s538_s23 = scalar_lea.vmem %s1765_s7, %s1628_s28  ;;  %s548_s16 = scalar_lea.vmem %s1768_s10, %s1630_s11 }
  0x61   : > { %s1810_s30 = smov (!%p540_p13, %s1029_s30), 31  ;;  %s1653_s27 = scalar_lea.vmem [#allocation7], %s1026_s9 }
  0x62   : > { %s1030_s26 = sshll.u32 %s1810_s30, 3  ;;  %p1032_p1 = scmp.ne.s32.totalorder %s1418_s15, 0 }
  0x63   : > { %s1651_s17 = scalar_lea.vmem %s1766_s8, %s1030_s26  ;;  %v555_v16 = vld [vmem:[#allocation5] sm:$0xff] (!%p1032_p1)  ;;  %v556_v17 = vld [vmem:[#allocation5 + $0x8] sm:$0xff] (!%p1032_p1)  ;;  %v557_v18 = vld [vmem:[#allocation5 + $0x10] sm:$0xff] (!%p1032_p1)  ;;  %v1439_v19 = vmov (!%p1032_p1), 0.0|0.0   ;;  %vm1440_vm0 = vmmov (!%p1032_p1), 0   ;;  %v1441_v22 = vmov (!%p1032_p1), 0.0  }
  0x64   : > { %552 = sbr.rel (%p1032_p1) target bundleno = 661 (0x295), region = 106  ;;  %1197 = vmatprep.subr.bf16.mxu0 (!%p1032_p1), %v1439_v19  ;;  %v1198_v20 = vpack.c.bf16 (!%p1032_p1), %v556_v17, %v555_v16  ;;  %v558_v21 = vld [vmem:[#allocation5 + $0x18] sm:$0xff] (!%p1032_p1)  ;;  %1124 = vmatprep.mubr.msk.f32.mxu0 (!%p1032_p1), %vm1440_vm0, %v1441_v22  ;;  %680 = vst [vmem:[#allocation4] sm:$0xff] (!%p1032_p1), %v1441_v22  ;;  %v559_v24 = vld [vmem:[#allocation5 + $0x20] sm:$0xff] (!%p1032_p1)  ;;  %v560_v25 = vld [vmem:[#allocation5 + $0x28] sm:$0xff] (!%p1032_p1) }
  0x65   : > { %v1201_v23 = vpack.c.bf16 (!%p1032_p1), %v558_v21, %v557_v18  ;;  %v1204_v26 = vpack.c.bf16 (!%p1032_p1), %v560_v25, %v559_v24  ;;  %v561_v27 = vld [vmem:[#allocation5 + $0x30] sm:$0xff] (!%p1032_p1)  ;;  %v562_v28 = vld [vmem:[#allocation5 + $0x38] sm:$0xff] (!%p1032_p1)  ;;  %v563_v30 = vld [vmem:[#allocation5 + $0x40] sm:$0xff] (!%p1032_p1) }
  0x66   : > { %1199 = vmatpush3.bf16.msra.mxu0 (!%p1032_p1), %v1198_v20  ;;  %v1207_v29 = vpack.c.bf16 (!%p1032_p1), %v562_v28, %v561_v27  ;;  %v564_v31 = vld [vmem:[#allocation5 + $0x48] sm:$0xff] (!%p1032_p1)  ;;  %v565_v33 = vld [vmem:[#allocation5 + $0x50] sm:$0xff] (!%p1032_p1)  ;;  %v566_v34 = vld [vmem:[#allocation5 + $0x58] sm:$0xff] (!%p1032_p1) }
  0x67   : > { %1200 = vmatprep.subr.bf16.mxu0 (!%p1032_p1), %v1439_v19  ;;  %v1210_v32 = vpack.c.bf16 (!%p1032_p1), %v564_v31, %v563_v30  ;;  %v1213_v35 = vpack.c.bf16 (!%p1032_p1), %v566_v34, %v565_v33  ;;  %v567_v36 = vld [vmem:[#allocation5 + $0x60] sm:$0xff] (!%p1032_p1)  ;;  %v568_v37 = vld [vmem:[#allocation5 + $0x68] sm:$0xff] (!%p1032_p1)  ;;  %v569_v39 = vld [vmem:[#allocation5 + $0x70] sm:$0xff] (!%p1032_p1) }
  0x68   : > { %v1216_v38 = vpack.c.bf16 (!%p1032_p1), %v568_v37, %v567_v36  ;;  %v570_v40 = vld [vmem:[#allocation5 + $0x78] sm:$0xff] (!%p1032_p1)  ;;  %v554_v42 = vld [vmem:[%s531_s12] sm:$0xff] (!%p1032_p1) }
  0x69   : > { %v1219_v41 = vpack.c.bf16 (!%p1032_p1), %v570_v40, %v569_v39  ;;  %v553_v43 = vld [vmem:[%s535_s24] sm:$0xff] (!%p1032_p1) }
  0x6a   : > { %1202 = vmatpush3.bf16.msra.mxu0 (!%p1032_p1), %v1201_v23  ;;  %v1033_v45 = vld [vmem:[%s1761_s3] ss:$0 sm:$0xff] (!%p1032_p1) }
  0x6b   : > { %1203 = vmatprep.subr.bf16.mxu0 %v1439_v19  ;;  %v1034_v57 = vld [vmem:[%s1762_s4] ss:$0 sm:$0xff] }
  0x6c   : > { %v1035_v59 = vld [vmem:[%s1763_s5] ss:$0 sm:$0xff] }
  0x6e   : > { %1205 = vmatpush3.bf16.msra.mxu0 %v1204_v26 }
  0x6f   : > { %1206 = vmatprep.subr.bf16.mxu0 %v1439_v19 }
  0x72   : > { %1208 = vmatpush3.bf16.msra.mxu0 %v1207_v29 }
  0x73   : > { %1209 = vmatprep.subr.bf16.mxu0 %v1439_v19 }
  0x76   : > { %1211 = vmatpush3.bf16.msra.mxu0 %v1210_v32 }
  0x77   : > { %1212 = vmatprep.subr.bf16.mxu0 %v1439_v19 }
  0x7a   : > { %1214 = vmatpush3.bf16.msra.mxu0 %v1213_v35 }
  0x7b   : > { %1215 = vmatprep.subr.bf16.mxu0 %v1439_v19 }
  0x7e   : > { %1217 = vmatpush3.bf16.msra.mxu0 %v1216_v38 }
  0x7f   : > { %1218 = vmatprep.subr.bf16.mxu0 %v1439_v19 }
  0x82   : > { %1220 = vmatpush3.bf16.msra.mxu0 %v1219_v41 }
  0x85   : > { %1125 = vmatmul.mubr.f32.vlgmr.msra.gmra.mrb[0].mxu0 %v554_v42 }
 0x158   : > { %v637_v44 = vpop.f32.mrb[0].mxu0 }
 0x159   : > { %v641_v46 = vadd.f32 %v637_v44, %v553_v43  ;;  %v1126_v47 = vpop.f32.mrb[1].mxu0 }
 0x15b   : > { %v649_v48 = vadd.f32 %v1033_v45, %v641_v46 }
 0x15d   : > { %650 = vst [vmem:[#allocation2] sm:$0xff] %v649_v48  ;;  %653 = vadd.xlane.f32.xlu0 %v649_v48 }
 0x1ea   : > { %v654_v49 = vpop.xlane.xlu0 %653 }
 0x1eb   : > { %v656_v50 = vmul.f32 0.0078125, %v654_v49 }
 0x1ed   : > { %v657_v51 = vsub.f32 %v649_v48, %v656_v50 }
 0x1ef   : > { %v658_v52 = vmul.f32 %v657_v51, %v657_v51 }
 0x1f1   : > { %659 = vadd.xlane.f32.xlu0 %v658_v52 }
 0x27e   : > { %v660_v53 = vpop.xlane.xlu0 %659 }
 0x27f   : > { %v661_v54 = vmul.f32 0.0078125, %v660_v53 }
 0x281   : > { %v662_v55 = vadd.f32 1e-05, %v661_v54 }
 0x283   : > { %1344 = vrsqrt.f32 %v662_v55 }
 0x28d   : > { %v1345_v56 = vpop.eup %1344 }
 0x28e   : > { %v664_v58 = vmul.f32 %v1345_v56, %v657_v51 }
 0x290   : > { %v671_v60 = vmul.f32 %v1034_v57, %v664_v58 }
 0x292   : > { %v678_v61 = vadd.f32 %v1035_v59, %v671_v60 }
 0x294   : > { %679 = vst [vmem:[#allocation3] sm:$0xff] %v678_v61 }
 0x295 PF: > { %v682_v62 = vld [vmem:[%s1653_s27] sm:$0xff]  ;;  %v683_v63 = vld [vmem:[%s1653_s27 + $0x8] sm:$0xff]  ;;  %v684_v0 = vld [vmem:[%s1653_s27 + $0x10] sm:$0xff]  ;;  %v1442_v1 = vmov 0.0|0.0   ;;  %vm1443_vm1 = vmmov 0   ;;  %v1444_v4 = vmov 0.0  }
 0x296   : > { %1221 = vmatprep.subr.bf16.mxu0 %v1442_v1  ;;  %v1222_v2 = vpack.c.bf16 %v683_v63, %v682_v62  ;;  %v685_v3 = vld [vmem:[%s1653_s27 + $0x18] sm:$0xff]  ;;  %1159 = vmatprep.mubr.msk.f32.mxu0 %vm1443_vm1, %v1444_v4  ;;  %v686_v6 = vld [vmem:[%s1653_s27 + $0x20] sm:$0xff]  ;;  %v687_v7 = vld [vmem:[%s1653_s27 + $0x28] sm:$0xff]  ;;  %p1037_p2 = scmp.ne.s32.totalorder %s1418_s15, 1 }
 0x297   : > { %1245 = vmatprep.subr.bf16.mxu1 %v1442_v1  ;;  %1194 = vmatprep.mubr.msk.f32.mxu1 %vm1443_vm1, %v1444_v4  ;;  %v1225_v5 = vpack.c.bf16 %v685_v3, %v684_v0  ;;  %v785_v8 = vld [vmem:[%s1651_s17] sm:$0xff]  ;;  %v786_v9 = vld [vmem:[%s1651_s17 + $0x8] sm:$0xff]  ;;  %v1228_v10 = vpack.c.bf16 %v687_v7, %v686_v6  ;;  %v689_v13 = vld [vmem:[%s1653_s27 + $0x38] sm:$0xff] }
 0x298   : > { %1223 = vmatpush3.bf16.msra.mxu0 %v1222_v2  ;;  %v1246_v11 = vpack.c.bf16 %v786_v9, %v785_v8  ;;  %v688_v12 = vld [vmem:[%s1653_s27 + $0x30] sm:$0xff]  ;;  %v690_v15 = vld [vmem:[%s1653_s27 + $0x40] sm:$0xff]  ;;  %v691_v16 = vld [vmem:[%s1653_s27 + $0x48] sm:$0xff] }
 0x299   : > { %1224 = vmatprep.subr.bf16.mxu0 %v1442_v1  ;;  %v1231_v14 = vpack.c.bf16 %v689_v13, %v688_v12  ;;  %v1234_v17 = vpack.c.bf16 %v691_v16, %v690_v15  ;;  %v692_v18 = vld [vmem:[%s1653_s27 + $0x50] sm:$0xff]  ;;  %v693_v19 = vld [vmem:[%s1653_s27 + $0x58] sm:$0xff]  ;;  %v694_v21 = vld [vmem:[%s1653_s27 + $0x60] sm:$0xff] }
 0x29a   : > { %1247 = vmatpush3.bf16.msra.mxu1 %v1246_v11  ;;  %v1237_v20 = vpack.c.bf16 %v693_v19, %v692_v18  ;;  %v695_v22 = vld [vmem:[%s1653_s27 + $0x68] sm:$0xff]  ;;  %v696_v24 = vld [vmem:[%s1653_s27 + $0x70] sm:$0xff]  ;;  %v697_v25 = vld [vmem:[%s1653_s27 + $0x78] sm:$0xff] }
 0x29b   : > { %1248 = vmatprep.subr.bf16.mxu1 %v1442_v1  ;;  %v1240_v23 = vpack.c.bf16 %v695_v22, %v694_v21  ;;  %v1243_v26 = vpack.c.bf16 %v697_v25, %v696_v24  ;;  %v681_v27 = vld [vmem:[#allocation3] sm:$0xff]  ;;  %v787_v28 = vld [vmem:[%s1651_s17 + $0x10] sm:$0xff]  ;;  %v788_v29 = vld [vmem:[%s1651_s17 + $0x18] sm:$0xff] }
 0x29c   : > { %1226 = vmatpush3.bf16.msra.mxu0 %v1225_v5  ;;  %v1249_v30 = vpack.c.bf16 %v788_v29, %v787_v28  ;;  %v789_v31 = vld [vmem:[%s1651_s17 + $0x20] sm:$0xff]  ;;  %v790_v32 = vld [vmem:[%s1651_s17 + $0x28] sm:$0xff]  ;;  %v791_v34 = vld [vmem:[%s1651_s17 + $0x30] sm:$0xff] }
 0x29d   : > { %1227 = vmatprep.subr.bf16.mxu0 %v1442_v1  ;;  %v1252_v33 = vpack.c.bf16 %v790_v32, %v789_v31  ;;  %v792_v35 = vld [vmem:[%s1651_s17 + $0x38] sm:$0xff]  ;;  %v793_v37 = vld [vmem:[%s1651_s17 + $0x40] sm:$0xff]  ;;  %v794_v38 = vld [vmem:[%s1651_s17 + $0x48] sm:$0xff] }
 0x29e   : > { %1250 = vmatpush3.bf16.msra.mxu1 %v1249_v30  ;;  %v1255_v36 = vpack.c.bf16 %v792_v35, %v791_v34  ;;  %v1258_v39 = vpack.c.bf16 %v794_v38, %v793_v37  ;;  %v795_v40 = vld [vmem:[%s1651_s17 + $0x50] sm:$0xff]  ;;  %v796_v41 = vld [vmem:[%s1651_s17 + $0x58] sm:$0xff]  ;;  %v797_v43 = vld [vmem:[%s1651_s17 + $0x60] sm:$0xff] }
 0x29f   : > { %1251 = vmatprep.subr.bf16.mxu1 %v1442_v1  ;;  %v1261_v42 = vpack.c.bf16 %v796_v41, %v795_v40  ;;  %v798_v44 = vld [vmem:[%s1651_s17 + $0x68] sm:$0xff]  ;;  %v799_v46 = vld [vmem:[%s1651_s17 + $0x70] sm:$0xff]  ;;  %v800_v47 = vld [vmem:[%s1651_s17 + $0x78] sm:$0xff] }
 0x2a0   : > { %1229 = vmatpush3.bf16.msra.mxu0 %v1228_v10  ;;  %v1264_v45 = vpack.c.bf16 %v798_v44, %v797_v43  ;;  %v1267_v48 = vpack.c.bf16 %v800_v47, %v799_v46  ;;  %v1036_v49 = vld [vmem:[%s538_s23] ss:$0 sm:$0xff]  ;;  %v784_v62 = vld [vmem:[#allocation4] sm:$0xff]  ;;  %s1792_s23 = sld [smem:[#allocation16_spill]] (!%p1037_p2) }
 0x2a1   : > { %1230 = vmatprep.subr.bf16.mxu0 %v1442_v1  ;;  %v877_v2 = vld [vmem:[#allocation2] sm:$0xff] (!%p1037_p2) }
 0x2a2   : > { %1253 = vmatpush3.bf16.msra.mxu1 %v1252_v33 }
 0x2a3   : > { %1254 = vmatprep.subr.bf16.mxu1 %v1442_v1 }
 0x2a4   : > { %1232 = vmatpush3.bf16.msra.mxu0 %v1231_v14 }
 0x2a5   : > { %1233 = vmatprep.subr.bf16.mxu0 %v1442_v1 }
 0x2a6   : > { %1256 = vmatpush3.bf16.msra.mxu1 %v1255_v36  ;;  %v1038_v4 = vld [vmem:[%s1792_s23] ss:$0 sm:$0xff] (!%p1037_p2) }
 0x2a7   : > { %1257 = vmatprep.subr.bf16.mxu1 %v1442_v1 }
 0x2a8   : > { %1235 = vmatpush3.bf16.msra.mxu0 %v1234_v17 }
 0x2a9   : > { %1236 = vmatprep.subr.bf16.mxu0 %v1442_v1 }
 0x2aa   : > { %1259 = vmatpush3.bf16.msra.mxu1 %v1258_v39 }
 0x2ab   : > { %1260 = vmatprep.subr.bf16.mxu1 %v1442_v1 }
 0x2ac   : > { %1238 = vmatpush3.bf16.msra.mxu0 %v1237_v20 }
 0x2ad   : > { %1239 = vmatprep.subr.bf16.mxu0 %v1442_v1 }
 0x2ae   : > { %1262 = vmatpush3.bf16.msra.mxu1 %v1261_v42 }
 0x2af   : > { %1263 = vmatprep.subr.bf16.mxu1 %v1442_v1 }
 0x2b0   : > { %1241 = vmatpush3.bf16.msra.mxu0 %v1240_v23 }
 0x2b1   : > { %1242 = vmatprep.subr.bf16.mxu0 %v1442_v1 }
 0x2b2   : > { %1265 = vmatpush3.bf16.msra.mxu1 %v1264_v45 }
 0x2b3   : > { %1266 = vmatprep.subr.bf16.mxu1 %v1442_v1 }
 0x2b4   : > { %1244 = vmatpush3.bf16.msra.mxu0 %v1243_v26 }
 0x2b6   : > { %1268 = vmatpush3.bf16.msra.mxu1 %v1267_v48 }
 0x2b7   : > { %1160 = vmatmul.mubr.f32.vlgmr.msra.gmra.mrb[0].mxu0 %v681_v27 }
 0x38a   : > { %v771_v50 = vpop.f32.mrb[0].mxu0 }
 0x38b   : > { %v772_v51 = vadd.f32 %v1036_v49, %v771_v50  ;;  %v1161_v52 = vpop.f32.mrb[1].mxu0 }
 0x38d   : > { %v776_v53 = vmul.f32 0.044715, %v772_v51  ;;  %v775_v59 = vmul.f32 0.5, %v772_v51 }
 0x38f   : > { %v777_v54 = vmul.f32 %v776_v53, %v772_v51 }
 0x391   : > { %v778_v55 = vmul.f32 %v777_v54, %v772_v51 }
 0x393   : > { %v779_v56 = vadd.f32 %v778_v55, %v772_v51 }
 0x395   : > { %v780_v57 = vmul.f32 0.7978846, %v779_v56 }
 0x397   : > { %1346 = vtanh.f32 %v780_v57 }
 0x3a1   : > { %v1347_v58 = vpop.eup %1346 }
 0x3a2   : > { %v782_v60 = vadd.f32 1.0, %v1347_v58 }
 0x3a4   : > { %v783_v61 = vmul.f32 %v782_v60, %v775_v59 }
 0x3a6   : > { %1195 = vmatmul.mubr.f32.vlgmr.msra.gmra.mrb[0].mxu1 %v783_v61 }
 0x476   : > { %876 = sbr.rel (%p1037_p2) target bundleno = 1161 (0x489), region = 110 }
 0x479   : > { %v867_v63 = vpop.f32.mrb[0].mxu1 }
 0x47a   : > { %v871_v0 = vadd.f32 %v867_v63, %v784_v62  ;;  %v1196_v1 = vpop.f32.mrb[1].mxu1 }
 0x47c   : > { %872 = vst [vmem:[#allocation4] sm:$0xff] %v871_v0 }
 0x483   : > { %v878_v3 = vld [vmem:[#allocation4] sm:$0xff] }
 0x484   : > { %v879_v5 = vadd.f32 %v878_v3, %v877_v2 }
 0x486   : > { %v887_v6 = vadd.f32 %v1038_v4, %v879_v5 }
 0x488   : > { %888 = vst [vmem:[%s548_s16] sm:$0xff] %v887_v6 }
 0x489 PF: > { %s21_s19 = sadd.s32 1, %s1434_s19   ;;  %s1793_s15 = sld [smem:[#allocation13_spill]] }
 0x48a   : > { %p18_p3 = scmp.ge.s32.totalorder %s21_s19, 6   ;;  %s1794_s27 = sld [smem:[#allocation9_spill]] }
 0x48b   : > { %s1795_s16 = sld [smem:[#allocation10_spill]]  ;;  %s1796_s17 = sld [smem:[#allocation11_spill]] }
 0x48c   : > { %s1797_s18 = sld [smem:[#allocation12_spill]]  ;;  %s1798_s13 = smov %s1414_s14 }
 0x48d   :  { %20 = sbr.rel (!%p18_p3) target bundleno = 8 (0x8), region = 158 }
 0x48f   : > { %s1799_s14 = smov %s1793_s15 }
 0x490   : > { %s1800_s15 = smov %s1794_s27 }
 0x494   :  { %908 = vsyncpa [#allocation6], 1 }
 0x495   :  { %910 = vsyncpa [#allocation6 + $0x1], 1 }

// kernel: _lambda_.7
= control target key start
LH: loop header
LB: loop body
LE: loop exit
PB: predicated region body
PF: predicated region fallthrough
CT: control target
= control target key end

     0   :  { %s2355_s12 = smov 0   ;;  %s2357_s13 = smov 0   ;;  %s2697_s0 = inlined_call_operand.vmem [shape: f32[16,384], index: 0, kind: input, shape index: {}, may-alias: {0,1,2}]   ;;  %s2698_s1 = inlined_call_operand.vmem [shape: f32[16,384], index: 1, kind: input, shape index: {}, may-alias: {0,1,2}]   ;;  %s2699_s2 = inlined_call_operand.vmem [shape: f32[16,384], index: 2, kind: input, shape index: {}, may-alias: {0,1,2}]   ;;  %s2700_s3 = inlined_call_operand.vmem [shape: f32[16,128], index: 3, kind: output, shape index: {}]  }
   0x1   :  { %s2359_s14 = smov 0   ;;  %s2361_s15 = smov 0  }
   0x2   :  { %s2363_s16 = smov 0  }
   0x3 LB: > { %s22_s17 = sadd.s32 1, %s2305_s14  ;;  %s25_s18 = sadd.s32 1, %s2309_s15  ;;  %s2313_s16 = sphi %s2363_s16, %s13_s16   ;;  %s2309_s15 = sphi %s2361_s15, %s2704_s15   ;;  %s2305_s14 = sphi %s2359_s14, %s2703_s14   ;;  %s2301_s13 = sphi %s2357_s13, %s2702_s13   ;;  %s2297_s12 = sphi %s2355_s12, %s2701_s12  }
   0x4   : > { %p23_p0 = scmp.ge.s32.totalorder %s22_s17, 2  ;;  %p1996_p1 = scmp.ge.s32.totalorder %s2313_s16, 1 }
   0x5   : > { %p187_p2 = scmp.lt.s32.totalorder %s2313_s16, 5 }
   0x6   : > { %s2706_s17 = smov (%p23_p0, %s22_s17), 0  ;;  %s2708_s18 = smov (!%p23_p0, %s25_s18), %s2309_s15 }
   0x7   : > { %p188_p3 = pnand %p1996_p1, %p187_p2  ;;  %p27_p4 = scmp.ge.s32.totalorder %s2708_s18, 2 }
   0x8   : > { %p226_p5 = scmp.lt.s32.totalorder (!%p188_p3), %s2301_s13, 1  ;;  %p231_p6 = scmp.lt.s32.totalorder (!%p188_p3), %s2297_s12, %s2301_s13 }
   0x9   : > { %s2710_s18 = smov (%p27_p4, %s2708_s18), 0  ;;  %191 = sbr.rel (%p188_p3) target bundleno = 2865 (0xb31), region = 32 }
   0xa   : > { %p2001_p8 = scmp.ne.s32.totalorder (!%p188_p3), %s2297_s12, 0 }
  0x10   : > { %s227_s19 = scalar_select %p226_p5, %s2301_s13, 1 }
  0x11   : > { %s232_s20 = scalar_select %p231_p6, %s2297_s12, %s2301_s13 }
  0x12   : > { %s2158_s21 = smul.u32 24, %s227_s19  ;;  %s2000_s22 = sshll.u32 %s227_s19, 3  ;;  %vm259_vm0 = vcmask (!%p2001_p8), 31744   ;;  %v2315_v0 = vmov (!%p2001_p8), -3.4028235e+38   ;;  %v2316_v1 = vmov (!%p2001_p8), 0.0  }
  0x13   : > { %p233_p7 = scmp.lt.s32.totalorder %s232_s20, 1  ;;  %s2398_s25 = scalar_lea.vmem %s2700_s3, %s2000_s22  ;;  %260 = vst.msk [vmem:[#allocation2] sm:$0xff] (!%p2001_p8), %vm259_vm0, %v2315_v0  ;;  %261 = vst.msk [vmem:[#allocation3] sm:$0xff] (!%p2001_p8), %vm259_vm0, %v2316_v1 }
  0x14   : > { %s2403_s28 = scalar_lea.vmem %s2697_s0, %s2158_s21  ;;  %258 = sbr.rel (%p2001_p8) target bundleno = 27 (0x1b), region = 36  ;;  %262 = vst [vmem:[#allocation4] sm:$0xff] (!%p2001_p8), %v2316_v1 }
  0x15   : > { %s2712_s20 = smov (!%p233_p7, %s232_s20), 1 }
  0x16   : > { %s1998_s29 = smul.u32 24, %s2712_s20 }
  0x18   : > { %s2408_s5 = scalar_lea.vmem %s2698_s1, %s1998_s29  ;;  %s2413_s8 = scalar_lea.vmem %s2699_s2, %s1998_s29 }
  0x1b PF: > { %p2002_p9 = scmp.ge.s32.totalorder %s2297_s12, %s2301_s13 }
  0x1c   : > { %v2003_v2 = vld [vmem:[%s2408_s5 + $0x8] sm:$0xff] (!%p2002_p9)  ;;  %vm270_vm1 = vcmask (!%p2002_p9), 261120   ;;  %v2317_v3 = vmov (!%p2002_p9), 0.0   ;;  %vm2318_vm2 = vmmov (!%p2002_p9), 0   ;;  %v267_v4 = vld [vmem:[%s2403_s28] sm:$0xff] (!%p2002_p9)  ;;  %vm348_vm3 = vcmask (!%p2002_p9), 64512  }
  0x1d   : > { %266 = sbr.rel (%p2002_p9) target bundleno = 1446 (0x5a6), region = 40  ;;  %2078 = vmatprep.subr.mxu0 (!%p2002_p9), %v2317_v3  ;;  %2080 = vmatprep.mubr.msk.f32.mxu0 (!%p2002_p9), %vm2318_vm2, %v2317_v3  ;;  %v2319_v8 = vmov (!%p2002_p9), 0   ;;  %s2320_s9 = smov (!%p2002_p9), 96   ;;  %v347_v9 = vld [vmem:[#allocation2] sm:$0xff] (!%p2002_p9)  ;;  %vm370_vm4 = vcmask (!%p2002_p9), 7168   ;;  %v2441_v13 = vld [vmem:[%s2413_s8 + $0x10] sm:$0xff] (!%p2002_p9) }
  0x1e   : > { %2079 = vmatpush3.xpose.msk.msra.mxu0 (!%p2002_p9), %vm270_vm1, %v2003_v2  ;;  %2083 = vmatprep.subr.mxu1 (!%p2002_p9), %v2317_v3  ;;  %s2321_s10 = smov (!%p2002_p9), 64   ;;  %s2322_s11 = smov (!%p2002_p9), 32   ;;  %v2323_v35 = vmov (!%p2002_p9), 1   ;;  %v2324_v36 = vmov (!%p2002_p9), 2   ;;  %vm560_vm5 = vcmask (!%p2002_p9), 15368   ;;  %v2325_v43 = vmov (!%p2002_p9), 3  }
  0x1f   : > { %2085 = vmatprep.mubr.msk.f32.mxu1 (!%p2002_p9), %vm2318_vm2, %v2317_v3  ;;  %2093 = vmatprep.subr.mxu0 (!%p2002_p9), %v2317_v3  ;;  %vm759_vm6 = vcmask (!%p2002_p9), 23568   ;;  %vm958_vm7 = vcmask (!%p2002_p9), 31768   ;;  %v372_v62 = vld [vmem:[#allocation4] sm:$0xff] (!%p2002_p9)  ;;  %vm651_vm8 = vcmask (!%p2002_p9), 523520   ;;  %vm850_vm9 = vcmask (!%p2002_p9), 785920  }
  0x20   : > { %2219 = vset.pattern.permute.xlu0 (!%p2002_p9), %v2319_v8  ;;  %462 = vrot.lane.b32.xlu1 (!%p2002_p9), %v2003_v2, %s2320_s9  ;;  %vm1049_vm10 = vcmask (!%p2002_p9), 1048320  }
  0x21   : > { %2081 = vmatmul.mubr.msk.f32.vlgmr.msra.gmra.mrb[0].mxu0 (!%p2002_p9), %vm270_vm1, %v267_v4  ;;  %2084 = vmatpush3.msra.mxu1 (!%p2002_p9), %v2441_v13 }
  0x22   : > { %2095 = vmatprep.mubr.msk.f32.mxu0 (!%p2002_p9), %vm2318_vm2, %v2317_v3  ;;  %2088 = vmatprep.subr.mxu1 (!%p2002_p9), %v2317_v3 }
  0x23   : > { %2220 = vset.pattern.permute.xlu1 (!%p2002_p9), %v2323_v35 }
  0x24   : > { %459 = vrot.lane.b32.xlu1 %v267_v4, %s2320_s9 }
  0x28   : > { %661 = vrot.lane.b32.xlu1 %v2003_v2, %s2321_s10 }
  0x2c   : > { %658 = vrot.lane.b32.xlu1 %v267_v4, %s2321_s10 }
  0x30   : > { %860 = vrot.lane.b32.xlu1 %v2003_v2, %s2322_s11 }
  0x34   : > { %857 = vrot.lane.b32.xlu1 %v267_v4, %s2322_s11 }
  0x92   : > { %v463_v14 = vpop.permute.xlu1 %462 }
  0x96   : > { %v460_v18 = vpop.permute.xlu1 %459 }
  0x9a   : > { %v662_v19 = vpop.permute.xlu1 %661 }
  0x9e   : > { %v659_v21 = vpop.permute.xlu1 %658 }
  0xa2   : > { %v861_v22 = vpop.permute.xlu1 %860 }
  0xa6   : > { %v858_v23 = vpop.permute.xlu1 %857 }
  0xf4   : > { %v343_v5 = vpop.f32.mrb[0].mxu0 }
  0xf5   : > { %v2082_v6 = vpop.f32.mrb[1].mxu0  ;;  %v349_v7 = vsel %vm348_vm3, %v343_v5, -inf }
  0xf6   : > { %350 = vmax.xlane.f32.xlu0 %v349_v7 }
 0x183   : > { %v351_v10 = vpop.xlane.xlu0 %350 }
 0x184   : > { %v352_v11 = vmax.f32 %v347_v9, %v351_v10 }
 0x186   : > { %v353_v12 = vsub.f32 %v347_v9, %v352_v11  ;;  %454 = vst.msk [vmem:[#allocation2] sm:$0xff] %vm370_vm4, %v352_v11  ;;  %358 = vperm.xlu0 %2219, %v352_v11  }
 0x188   : > { %v354_v40 = vmul.f32 1.442695, %v353_v12 }
 0x18a   : > { %2221 = vset.pattern.permute.xlu0 %v2324_v36 }
 0x18d   : > { %v538_v38 = vld [vmem:[#allocation2] sm:$0xff] }
 0x205   : > { %v359_v15 = vpop.permute.xlu0 %358 }
 0x206   : > { %v361_v16 = vsub.f32 %v343_v5, %v359_v15  ;;  %v364_v15 = vld [vmem:[#allocation3] sm:$0xff] }
 0x208   : > { %v362_v17 = vmul.f32 1.442695, %v361_v16 }
 0x20a   : > { %2228 = vpow2.f32 %v362_v17 }
 0x20b   : > { %2230 = vpow2.f32 %v354_v40 }
 0x214   : > { %v2445_v20 = vpop.eup %2228 }
 0x215   : > { %2086 = vmatmul.mubr.msk.f32.vlgmr.msra.gmra.mrb[0].mxu1 %vm348_vm3, %v2445_v20  ;;  %v2476_v47 = vpop.eup %2230  ;;  %v366_v52 = vsel %vm348_vm3, %v2445_v20, 0.0 }
 0x216   : > { %2089 = vmatpush3.xpose.msk.msra.mxu1 %vm270_vm1, %v463_v14  ;;  %2090 = vmatprep.mubr.msk.f32.mxu1 %vm2318_vm2, %v2317_v3  ;;  %v365_v16 = vmul.f32 %v2476_v47, %v364_v15 }
 0x217   : > { %2098 = vmatprep.subr.mxu1 %v2317_v3 }
 0x219   : > { %2091 = vmatmul.mubr.msk.f32.vlgmr.msra.gmra.mrb[2].mxu1 %vm270_vm1, %v460_v18 }
 0x21a   : > { %2099 = vmatpush3.xpose.msk.msra.mxu1 %vm270_vm1, %v662_v19  ;;  %2100 = vmatprep.mubr.msk.f32.mxu1 %vm2318_vm2, %v2317_v3 }
 0x21b   : > { %2108 = vmatprep.subr.mxu1 %v2317_v3 }
 0x21d   : > { %2101 = vmatmul.mubr.msk.f32.vlgmr.msra.gmra.mrb[4].mxu1 %vm270_vm1, %v659_v21 }
 0x21e   : > { %2109 = vmatpush3.xpose.msk.msra.mxu1 %vm270_vm1, %v861_v22  ;;  %2110 = vmatprep.mubr.msk.f32.mxu1 %vm2318_vm2, %v2317_v3 }
 0x221   : > { %2111 = vmatmul.mubr.msk.f32.vlgmr.msra.gmra.mrb[6].mxu1 %vm270_vm1, %v858_v23 }
 0x2e8   : > { %v2463_v24 = vpop.f32.mrb[0].mxu1 }
 0x2e9   : > { %v2087_v25 = vpop.f32.mrb[1].mxu1 }
 0x2ec   : > { %v534_v26 = vpop.f32.mrb[2].mxu1 }
 0x2ed   : > { %v2092_v27 = vpop.f32.mrb[3].mxu1  ;;  %v539_v28 = vsel %vm348_vm3, %v534_v26, -inf }
 0x2ee   : > { %540 = vmax.xlane.f32.xlu1 %v539_v28 }
 0x2f0   : > { %v733_v29 = vpop.f32.mrb[4].mxu1 }
 0x2f1   : > { %v738_v30 = vsel %vm348_vm3, %v733_v29, -inf  ;;  %v2102_v31 = vpop.f32.mrb[5].mxu1 }
 0x2f2   : > { %739 = vmax.xlane.f32.xlu0 %v738_v30 }
 0x2f4   : > { %v2467_v32 = vpop.f32.mrb[6].mxu1 }
 0x2f5   : > { %v937_v33 = vsel %vm348_vm3, %v2467_v32, -inf  ;;  %v2112_v34 = vpop.f32.mrb[7].mxu1 }
 0x2f6   : > { %938 = vmax.xlane.f32.xlu1 %v937_v33 }
 0x37b   : > { %v541_v37 = vpop.xlane.xlu1 %540 }
 0x37c   : > { %v542_v39 = vmax.f32 %v538_v38, %v541_v37 }
 0x37e   : > { %v543_v41 = vsub.f32 %v538_v38, %v542_v39  ;;  %653 = vst.msk [vmem:[#allocation2] sm:$0xff] %vm560_vm5, %v542_v39  ;;  %548 = vperm.xlu1 %2220, %v542_v39  }
 0x37f   : > { %v740_v42 = vpop.xlane.xlu0 %739 }
 0x380   : > { %v544_v53 = vmul.f32 1.442695, %v543_v41 }
 0x382   : > { %570 = vrot.lane.b32.xlu1 %v2441_v13, %s2320_s9  ;;  %2232 = vpow2.f32 %v544_v53 }
 0x383   : > { %2222 = vset.pattern.permute.xlu1 %v2325_v43  ;;  %v939_v48 = vpop.xlane.xlu1 %938 }
 0x385   : > { %v737_v44 = vld [vmem:[#allocation2] sm:$0xff] }
 0x386   : > { %v741_v45 = vmax.f32 %v737_v44, %v740_v42 }
 0x388   : > { %v742_v46 = vsub.f32 %v737_v44, %v741_v45  ;;  %852 = vst.msk [vmem:[#allocation2] sm:$0xff] %vm759_vm6, %v741_v45  ;;  %747 = vperm.xlu0 %2221, %v741_v45  }
 0x38c   : > { %2223 = vset.pattern.permute.xlu0 %v2319_v8  ;;  %v2233_v54 = vpop.eup %2232  ;;  %v743_v8 = vmul.f32 1.442695, %v742_v46 }
 0x38d   : > { %375 = vperm.xlu0 %2223, %v2476_v47  }
 0x38f   : > { %v2480_v49 = vld [vmem:[#allocation2] sm:$0xff] }
 0x390   : > { %v2483_v50 = vmax.f32 %v2480_v49, %v939_v48 }
 0x391   : > { %2225 = vset.pattern.permute.xlu0 %v2324_v36 }
 0x392   : > { %v941_v51 = vsub.f32 %v2480_v49, %v2483_v50  ;;  %1051 = vst.msk [vmem:[#allocation2] sm:$0xff] %vm958_vm7, %v2483_v50  ;;  %946 = vperm.xlu1 %2222, %v2483_v50  }
 0x396   : > { %769 = vrot.lane.b32.xlu1 %v2441_v13, %s2321_s10 }
 0x397   : > { %2224 = vset.pattern.permute.xlu1 %v2323_v35 }
 0x39a   : > { %968 = vrot.lane.b32.xlu1 %v2441_v13, %s2322_s11 }
 0x3be   : > { %367 = vadd.xlane.f32.xlu1 %v366_v52 }
 0x3cf   : > { %565 = vperm.xlu1 %2224, %v2233_v54  }
 0x3d3   : > { %2226 = vset.pattern.permute.xlu1 %v2325_v43 }
 0x3fd   : > { %v549_v55 = vpop.permute.xlu1 %548 }
 0x3fe   : > { %v551_v56 = vsub.f32 %v534_v26, %v549_v55 }
 0x400   : > { %v552_v57 = vmul.f32 1.442695, %v551_v56 }
 0x401   : > { %v571_v58 = vpop.permute.xlu1 %570 }
 0x402   : > { %2234 = vpow2.f32 %v552_v57  ;;  %2094 = vmatpush3.msra.mxu0 %v571_v58 }
 0x403   : > { %2103 = vmatprep.subr.mxu0 %v2317_v3 }
 0x407   : > { %v748_v59 = vpop.permute.xlu0 %747 }
 0x408   : > { %v750_v60 = vsub.f32 %v733_v29, %v748_v59  ;;  %v942_v29 = vmul.f32 1.442695, %v941_v51 }
 0x40a   : > { %v751_v61 = vmul.f32 1.442695, %v750_v60 }
 0x40c   : > { %v2235_v63 = vpop.eup %2234  ;;  %2236 = vpow2.f32 %v751_v61  ;;  %v376_v0 = vpop.permute.xlu0 %375 }
 0x40d   : > { %v378_v1 = vmul.f32 %v376_v0, %v372_v62  ;;  %2096 = vmatmul.mubr.msk.f32.vlgmr.msra.gmra.mrb[2].mxu0 %vm348_vm3, %v2235_v63  ;;  %v556_v2 = vsel %vm348_vm3, %v2235_v63, 0.0 }
 0x40e   : > { %557 = vadd.xlane.f32.xlu0 %v556_v2  ;;  %2105 = vmatprep.mubr.msk.f32.mxu0 %vm2318_vm2, %v2317_v3 }
 0x40f   : > { %v452_v4 = vadd.f32 %v2463_v24, %v378_v1 }
 0x411   : > { %453 = vst.msk [vmem:[#allocation4] sm:$0xff] %vm270_vm1, %v452_v4  ;;  %v947_v5 = vpop.permute.xlu1 %946 }
 0x412   : > { %v949_v6 = vsub.f32 %v2467_v32, %v947_v5 }
 0x414   : > { %v950_v7 = vmul.f32 1.442695, %v949_v6 }
 0x415   : > { %v770_v9 = vpop.permute.xlu1 %769 }
 0x416   : > { %v2237_v10 = vpop.eup %2236  ;;  %2238 = vpow2.f32 %v950_v7  ;;  %2104 = vmatpush3.msra.mxu0 %v770_v9 }
 0x417   : > { %2106 = vmatmul.mubr.msk.f32.vlgmr.msra.gmra.mrb[4].mxu0 %vm348_vm3, %v2237_v10  ;;  %2113 = vmatprep.subr.mxu0 %v2317_v3  ;;  %2240 = vpow2.f32 %v743_v8  ;;  %v755_v28 = vsel %vm348_vm3, %v2237_v10, 0.0 }
 0x418   : > { %2115 = vmatprep.mubr.msk.f32.mxu0 %vm2318_vm2, %v2317_v3  ;;  %2242 = vpow2.f32 %v942_v29  ;;  %v562_v32 = vld [vmem:[#allocation4] sm:$0xff] }
 0x419   : > { %v969_v11 = vpop.permute.xlu1 %968 }
 0x41a   : > { %2114 = vmatpush3.msra.mxu0 %v969_v11 }
 0x420   : > { %v2239_v12 = vpop.eup %2238 }
 0x421   : > { %2116 = vmatmul.mubr.msk.f32.vlgmr.msra.gmra.mrb[6].mxu0 %vm348_vm3, %v2239_v12  ;;  %v2241_v13 = vpop.eup %2240  ;;  %v954_v14 = vsel %vm348_vm3, %v2239_v12, 0.0 }
 0x422   : > { %v2243_v30 = vpop.eup %2242 }
 0x424   : > { %764 = vperm.xlu0 %2225, %v2241_v13  }
 0x428   : > { %2227 = vset.pattern.permute.xlu0 %v2325_v43 }
 0x443   : > { %955 = vadd.xlane.f32.xlu0 %v954_v14 }
 0x44b   : > { %v368_v17 = vpop.xlane.xlu1 %367 }
 0x44c   : > { %v369_v18 = vadd.f32 %v368_v17, %v365_v16 }
 0x44e   : > { %371 = vst.msk [vmem:[#allocation3] sm:$0xff] %vm370_vm4, %v369_v18 }
 0x44f   : > { %v566_v31 = vpop.permute.xlu1 %565 }
 0x450   : > { %v568_v33 = vmul.f32 %v566_v31, %v562_v32 }
 0x455   : > { %v554_v3 = vld [vmem:[#allocation3] sm:$0xff] }
 0x456   : > { %v555_v19 = vmul.f32 %v2233_v54, %v554_v3 }
 0x49b   : > { %v558_v20 = vpop.xlane.xlu0 %557 }
 0x49c   : > { %v559_v21 = vadd.f32 %v558_v20, %v555_v19 }
 0x49e   : > { %561 = vst.msk [vmem:[#allocation3] sm:$0xff] %vm560_vm5, %v559_v21 }
 0x4a3   : > { %v765_v41 = vpop.permute.xlu0 %764 }
 0x4a5   : > { %v753_v36 = vld [vmem:[#allocation3] sm:$0xff] }
 0x4a6   : > { %v754_v37 = vmul.f32 %v2241_v13, %v753_v36 }
 0x4d0   : > { %v956_v48 = vpop.xlane.xlu0 %955 }
 0x4e0   : > { %v642_v22 = vpop.f32.mrb[2].mxu0 }
 0x4e1   : > { %647 = vrot.lane.b32.xlu1 %v642_v22, %s2322_s11  ;;  %v2097_v23 = vpop.f32.mrb[3].mxu0 }
 0x4ea   : > { %v841_v24 = vpop.f32.mrb[4].mxu0 }
 0x4eb   : > { %v2107_v25 = vpop.f32.mrb[5].mxu0 }
 0x4f4   : > { %v1040_v26 = vpop.f32.mrb[6].mxu0 }
 0x4f5   : > { %v2117_v27 = vpop.f32.mrb[7].mxu0 }
 0x505   : > { %756 = vadd.xlane.f32.xlu1 %v755_v28 }
 0x516   : > { %846 = vrot.lane.b32.xlu1 %v841_v24, %s2321_s10 }
 0x51a   : > { %963 = vperm.xlu1 %2226, %v2243_v30  }
 0x51e   : > { %1045 = vrot.lane.b32.xlu1 %v1040_v26, %s2320_s9 }
 0x553   : > { %v648_v34 = vpop.permute.xlu1 %647 }
 0x554   : > { %v650_v35 = vadd.f32 %v648_v34, %v568_v33 }
 0x556   : > { %652 = vst.msk [vmem:[#allocation4] sm:$0xff] %vm651_vm8, %v650_v35 }
 0x55d   : > { %v761_v39 = vld [vmem:[#allocation4] sm:$0xff] }
 0x55e   : > { %v767_v42 = vmul.f32 %v765_v41, %v761_v39 }
 0x592   : > { %v757_v38 = vpop.xlane.xlu1 %756 }
 0x593   : > { %v758_v40 = vadd.f32 %v757_v38, %v754_v37 }
 0x595   : > { %760 = vst.msk [vmem:[#allocation3] sm:$0xff] %vm759_vm6, %v758_v40 }
 0x596   : > { %v847_v43 = vpop.permute.xlu1 %846 }
 0x597   : > { %v849_v44 = vadd.f32 %v847_v43, %v767_v42 }
 0x599   : > { %851 = vst.msk [vmem:[#allocation4] sm:$0xff] %vm850_vm9, %v849_v44 }
 0x59a   : > { %v964_v46 = vpop.permute.xlu1 %963 }
 0x59c   : > { %v952_v45 = vld [vmem:[#allocation3] sm:$0xff] }
 0x59d   : > { %v953_v47 = vmul.f32 %v2243_v30, %v952_v45 }
 0x59e   : > { %v1046_v52 = vpop.permute.xlu1 %1045 }
 0x59f   : > { %v957_v49 = vadd.f32 %v956_v48, %v953_v47 }
 0x5a0   : > { %v960_v50 = vld [vmem:[#allocation4] sm:$0xff] }
 0x5a1   : > { %959 = vst.msk [vmem:[#allocation3] sm:$0xff] %vm958_vm7, %v957_v49  ;;  %v966_v51 = vmul.f32 %v964_v46, %v960_v50 }
 0x5a3   : > { %v1048_v53 = vadd.f32 %v1046_v52, %v966_v51 }
 0x5a5   : > { %1050 = vst.msk [vmem:[#allocation4] sm:$0xff] %vm1049_vm10, %v1048_v53 }
 0x5a6 PF: > { %p2023_p10 = scmp.ne.s32.totalorder %s2297_s12, %s2301_s13 }
 0x5a7   : > { %v2024_v54 = vld [vmem:[%s2408_s5 + $0x8] sm:$0xff] (!%p2023_p10)  ;;  %vm1064_vm11 = vcmask (!%p2023_p10), 261120   ;;  %v2326_v55 = vmov (!%p2023_p10), 0.0   ;;  %vm2327_vm12 = vmmov (!%p2023_p10), 0   ;;  %v1061_v56 = vld [vmem:[%s2403_s28] sm:$0xff] (!%p2023_p10)  ;;  %v1056_v57 = vlaneseq (!%p2023_p10)  ;;  %s2329_s12 = smov (!%p2023_p10), 96  }
 0x5a8   : > { %1055 = sbr.rel (%p2023_p10) target bundleno = 2865 (0xb31), region = 44  ;;  %2118 = vmatprep.subr.mxu0 (!%p2023_p10), %v2326_v55  ;;  %2120 = vmatprep.mubr.msk.f32.mxu0 (!%p2023_p10), %vm2327_vm12, %v2326_v55  ;;  %vm1143_vm14 = vcmask (!%p2023_p10), 64512   ;;  %v2328_v0 = vmov (!%p2023_p10), 0   ;;  %s2330_s13 = smov (!%p2023_p10), 64   ;;  %v2556_v1 = vld [vmem:[#allocation2] sm:$0xff] (!%p2023_p10)  ;;  %vm1165_vm15 = vcmask (!%p2023_p10), 7168  }
 0x5a9   : > { %2119 = vmatpush3.xpose.msk.msra.mxu0 (!%p2023_p10), %vm1064_vm11, %v2024_v54  ;;  %2123 = vmatprep.subr.mxu1 (!%p2023_p10), %v2326_v55  ;;  %v2539_v58 = vshrl.u32 (!%p2023_p10), %v1056_v57, 7  ;;  %v2541_v59 = vand.u32 (!%p2023_p10), 127, %v1056_v57  ;;  %s2331_s19 = smov (!%p2023_p10), 32   ;;  %v2567_v6 = vld [vmem:[%s2413_s8 + $0x10] sm:$0xff] (!%p2023_p10)  ;;  %v2332_v30 = vmov (!%p2023_p10), 1   ;;  %v2333_v31 = vmov (!%p2023_p10), 2  }
 0x5aa   : > { %2125 = vmatprep.mubr.msk.f32.mxu1 (!%p2023_p10), %vm2327_vm12, %v2326_v55  ;;  %2133 = vmatprep.subr.mxu0 (!%p2023_p10), %v2326_v55  ;;  %vm1356_vm0 = vcmask (!%p2023_p10), 15368   ;;  %v2334_v37 = vmov (!%p2023_p10), 3   ;;  %vm1556_vm1 = vcmask (!%p2023_p10), 23568   ;;  %vm1756_vm2 = vcmask (!%p2023_p10), 31768  }
 0x5ab   : > { %vm1060_vm13 = vcmp.le.s32.totalorder (!%p2023_p10), %v2541_v59, %v2539_v58  ;;  %2244 = vset.pattern.permute.xlu0 (!%p2023_p10), %v2328_v0  ;;  %1257 = vrot.lane.b32.xlu1 (!%p2023_p10), %v2024_v54, %s2329_s12  ;;  %vm1447_vm3 = vcmask (!%p2023_p10), 523520   ;;  %vm1647_vm4 = vcmask (!%p2023_p10), 785920   ;;  %vm1847_vm5 = vcmask (!%p2023_p10), 1048320  }
 0x5ac   : > { %2121 = vmatmul.mubr.msk.f32.vlgmr.msra.gmra.mrb[0].mxu0 (!%p2023_p10), %vm1064_vm11, %v1061_v56  ;;  %2124 = vmatpush3.msra.mxu1 (!%p2023_p10), %v2567_v6 }
 0x5ad   : > { %2135 = vmatprep.mubr.msk.f32.mxu0 (!%p2023_p10), %vm2327_vm12, %v2326_v55  ;;  %2128 = vmatprep.subr.mxu1 (!%p2023_p10), %v2326_v55 }
 0x5ae   : > { %2245 = vset.pattern.permute.xlu1 (!%p2023_p10), %v2332_v30 }
 0x5af   : > { %1254 = vrot.lane.b32.xlu1 %v1061_v56, %s2329_s12 }
 0x5b3   : > { %1457 = vrot.lane.b32.xlu1 %v2024_v54, %s2330_s13 }
 0x5b7   : > { %1454 = vrot.lane.b32.xlu1 %v1061_v56, %s2330_s13 }
 0x5bb   : > { %1657 = vrot.lane.b32.xlu1 %v2024_v54, %s2331_s19 }
 0x5bf   : > { %1654 = vrot.lane.b32.xlu1 %v1061_v56, %s2331_s19 }
 0x61d   : > { %v1258_v7 = vpop.permute.xlu1 %1257 }
 0x621   : > { %v1255_v11 = vpop.permute.xlu1 %1254 }
 0x625   : > { %v1458_v12 = vpop.permute.xlu1 %1457 }
 0x629   : > { %v1455_v14 = vpop.permute.xlu1 %1454 }
 0x62d   : > { %v1658_v15 = vpop.permute.xlu1 %1657 }
 0x631   : > { %v1655_v16 = vpop.permute.xlu1 %1654 }
 0x67f   : > { %v1137_v60 = vpop.f32.mrb[0].mxu0 }
 0x680   : > { %v1141_v61 = vsel %vm1060_vm13, %v1137_v60, -3.4028235e+38  ;;  %v2122_v62 = vpop.f32.mrb[1].mxu0 }
 0x681   : > { %v1144_v63 = vsel %vm1143_vm14, %v1141_v61, -inf }
 0x682   : > { %1145 = vmax.xlane.f32.xlu0 %v1144_v63 }
 0x70f   : > { %v1146_v2 = vpop.xlane.xlu0 %1145 }
 0x710   : > { %v2559_v4 = vmax.f32 %v2556_v1, %v1146_v2 }
 0x712   : > { %v1148_v5 = vsub.f32 %v2556_v1, %v2559_v4  ;;  %1249 = vst.msk [vmem:[#allocation2] sm:$0xff] %vm1165_vm15, %v2559_v4  ;;  %1153 = vperm.xlu0 %2244, %v2559_v4  }
 0x714   : > { %v1149_v46 = vmul.f32 1.442695, %v1148_v5 }
 0x716   : > { %2246 = vset.pattern.permute.xlu0 %v2333_v31 }
 0x719   : > { %v2605_v33 = vld [vmem:[#allocation2] sm:$0xff] }
 0x791   : > { %v1154_v8 = vpop.permute.xlu0 %1153 }
 0x792   : > { %v1156_v9 = vsub.f32 %v1141_v61, %v1154_v8 }
 0x794   : > { %v1157_v10 = vmul.f32 1.442695, %v1156_v9 }
 0x796   : > { %2257 = vpow2.f32 %v1157_v10 }
 0x797   : > { %2259 = vpow2.f32 %v1149_v46 }
 0x7a0   : > { %v2571_v13 = vpop.eup %2257 }
 0x7a1   : > { %2126 = vmatmul.mubr.msk.f32.vlgmr.msra.gmra.mrb[0].mxu1 %vm1143_vm14, %v2571_v13  ;;  %v1161_v45 = vsel %vm1143_vm14, %v2571_v13, 0.0  ;;  %v2260_v47 = vpop.eup %2259 }
 0x7a2   : > { %2129 = vmatpush3.xpose.msk.msra.mxu1 %vm1064_vm11, %v1258_v7  ;;  %2130 = vmatprep.mubr.msk.f32.mxu1 %vm2327_vm12, %v2326_v55 }
 0x7a3   : > { %2138 = vmatprep.subr.mxu1 %v2326_v55 }
 0x7a5   : > { %2131 = vmatmul.mubr.msk.f32.vlgmr.msra.gmra.mrb[2].mxu1 %vm1064_vm11, %v1255_v11 }
 0x7a6   : > { %2139 = vmatpush3.xpose.msk.msra.mxu1 %vm1064_vm11, %v1458_v12  ;;  %2140 = vmatprep.mubr.msk.f32.mxu1 %vm2327_vm12, %v2326_v55  ;;  %v1167_v12 = vld [vmem:[#allocation4] sm:$0xff] }
 0x7a7   : > { %2148 = vmatprep.subr.mxu1 %v2326_v55 }
 0x7a9   : > { %2141 = vmatmul.mubr.msk.f32.vlgmr.msra.gmra.mrb[4].mxu1 %vm1064_vm11, %v1455_v14 }
 0x7aa   : > { %2149 = vmatpush3.xpose.msk.msra.mxu1 %vm1064_vm11, %v1658_v15  ;;  %2150 = vmatprep.mubr.msk.f32.mxu1 %vm2327_vm12, %v2326_v55 }
 0x7ad   : > { %2151 = vmatmul.mubr.msk.f32.vlgmr.msra.gmra.mrb[6].mxu1 %vm1064_vm11, %v1655_v16 }
 0x874   : > { %v2589_v17 = vpop.f32.mrb[0].mxu1 }
 0x875   : > { %v2127_v18 = vpop.f32.mrb[1].mxu1 }
 0x878   : > { %v1329_v3 = vpop.f32.mrb[2].mxu1 }
 0x879   : > { %v1333_v19 = vsel %vm1060_vm13, %v1329_v3, -3.4028235e+38  ;;  %v2132_v20 = vpop.f32.mrb[3].mxu1 }
 0x87a   : > { %v1335_v21 = vsel %vm1143_vm14, %v1333_v19, -inf }
 0x87b   : > { %1336 = vmax.xlane.f32.xlu1 %v1335_v21 }
 0x87c   : > { %v1529_v22 = vpop.f32.mrb[4].mxu1 }
 0x87d   : > { %v1533_v23 = vsel %vm1060_vm13, %v1529_v22, -3.4028235e+38  ;;  %v2142_v24 = vpop.f32.mrb[5].mxu1 }
 0x87e   : > { %v1535_v25 = vsel %vm1143_vm14, %v1533_v23, -inf }
 0x87f   : > { %1536 = vmax.xlane.f32.xlu0 %v1535_v25 }
 0x880   : > { %v1729_v26 = vpop.f32.mrb[6].mxu1 }
 0x881   : > { %v1733_v27 = vsel %vm1060_vm13, %v1729_v26, -3.4028235e+38  ;;  %v2152_v28 = vpop.f32.mrb[7].mxu1 }
 0x882   : > { %v1735_v29 = vsel %vm1143_vm14, %v1733_v27, -inf }
 0x883   : > { %1736 = vmax.xlane.f32.xlu1 %v1735_v29 }
 0x908   : > { %v1337_v32 = vpop.xlane.xlu1 %1336 }
 0x909   : > { %v2608_v34 = vmax.f32 %v2605_v33, %v1337_v32 }
 0x90b   : > { %v1339_v35 = vsub.f32 %v2605_v33, %v2608_v34  ;;  %1449 = vst.msk [vmem:[#allocation2] sm:$0xff] %vm1356_vm0, %v2608_v34  ;;  %1344 = vperm.xlu1 %2245, %v2608_v34  }
 0x90c   : > { %v1537_v36 = vpop.xlane.xlu0 %1536 }
 0x90d   : > { %v1340_v5 = vmul.f32 1.442695, %v1339_v35 }
 0x90f   : > { %1366 = vrot.lane.b32.xlu1 %v2567_v6, %s2329_s12 }
 0x910   : > { %2247 = vset.pattern.permute.xlu1 %v2334_v37  ;;  %v1737_v41 = vpop.xlane.xlu1 %1736 }
 0x912   : > { %v1534_v38 = vld [vmem:[#allocation2] sm:$0xff] }
 0x913   : > { %v1538_v39 = vmax.f32 %v1534_v38, %v1537_v36 }
 0x915   : > { %v1539_v40 = vsub.f32 %v1534_v38, %v1538_v39  ;;  %1649 = vst.msk [vmem:[#allocation2] sm:$0xff] %vm1556_vm1, %v1538_v39  ;;  %1544 = vperm.xlu0 %2246, %v1538_v39  }
 0x919   : > { %2249 = vset.pattern.permute.xlu0 %v2332_v30 }
 0x91c   : > { %v2620_v42 = vld [vmem:[#allocation2] sm:$0xff] }
 0x91d   : > { %v2623_v43 = vmax.f32 %v2620_v42, %v1737_v41 }
 0x91f   : > { %v1739_v44 = vsub.f32 %v2620_v42, %v2623_v43  ;;  %1849 = vst.msk [vmem:[#allocation2] sm:$0xff] %vm1756_vm2, %v2623_v43  ;;  %1744 = vperm.xlu1 %2247, %v2623_v43  }
 0x921   : > { %v1740_v20 = vmul.f32 1.442695, %v1739_v44 }
 0x923   : > { %1566 = vrot.lane.b32.xlu1 %v2567_v6, %s2330_s13 }
 0x924   : > { %2248 = vset.pattern.permute.xlu1 %v2328_v0 }
 0x927   : > { %1766 = vrot.lane.b32.xlu1 %v2567_v6, %s2331_s19  ;;  %v1540_v6 = vmul.f32 1.442695, %v1539_v40 }
 0x94b   : > { %1162 = vadd.xlane.f32.xlu1 %v1161_v45 }
 0x95c   : > { %1170 = vperm.xlu1 %2248, %v2260_v47  }
 0x960   : > { %2251 = vset.pattern.permute.xlu1 %v2334_v37 }
 0x98a   : > { %v1345_v48 = vpop.permute.xlu1 %1344 }
 0x98b   : > { %v1347_v49 = vsub.f32 %v1333_v19, %v1345_v48 }
 0x98d   : > { %v1348_v50 = vmul.f32 1.442695, %v1347_v49 }
 0x98e   : > { %v1367_v51 = vpop.permute.xlu1 %1366 }
 0x98f   : > { %2261 = vpow2.f32 %v1348_v50  ;;  %2134 = vmatpush3.msra.mxu0 %v1367_v51 }
 0x990   : > { %2143 = vmatprep.subr.mxu0 %v2326_v55 }
 0x994   : > { %v1545_v52 = vpop.permute.xlu0 %1544 }
 0x995   : > { %v1547_v53 = vsub.f32 %v1533_v23, %v1545_v52 }
 0x997   : > { %v1548_v54 = vmul.f32 1.442695, %v1547_v53 }
 0x999   : > { %v2262_v56 = vpop.eup %2261  ;;  %2263 = vpow2.f32 %v1548_v54 }
 0x99a   : > { %2136 = vmatmul.mubr.msk.f32.vlgmr.msra.gmra.mrb[2].mxu0 %vm1143_vm14, %v2262_v56  ;;  %v1352_v57 = vsel %vm1143_vm14, %v2262_v56, 0.0 }
 0x99b   : > { %1353 = vadd.xlane.f32.xlu0 %v1352_v57  ;;  %2145 = vmatprep.mubr.msk.f32.mxu0 %vm2327_vm12, %v2326_v55 }
 0x99e   : > { %v1745_v58 = vpop.permute.xlu1 %1744 }
 0x99f   : > { %v1747_v59 = vsub.f32 %v1733_v27, %v1745_v58 }
 0x9a1   : > { %v1748_v60 = vmul.f32 1.442695, %v1747_v59 }
 0x9a2   : > { %v1567_v61 = vpop.permute.xlu1 %1566 }
 0x9a3   : > { %v2264_v62 = vpop.eup %2263  ;;  %2265 = vpow2.f32 %v1748_v60  ;;  %2144 = vmatpush3.msra.mxu0 %v1567_v61 }
 0x9a4   : > { %2146 = vmatmul.mubr.msk.f32.vlgmr.msra.gmra.mrb[4].mxu0 %vm1143_vm14, %v2264_v62  ;;  %v1552_v63 = vsel %vm1143_vm14, %v2264_v62, 0.0  ;;  %2153 = vmatprep.subr.mxu0 %v2326_v55  ;;  %2267 = vpow2.f32 %v1340_v5 }
 0x9a5   : > { %1553 = vadd.xlane.f32.xlu1 %v1552_v63  ;;  %2155 = vmatprep.mubr.msk.f32.mxu0 %vm2327_vm12, %v2326_v55  ;;  %2269 = vpow2.f32 %v1540_v6  ;;  %v1159_v55 = vld [vmem:[#allocation3] sm:$0xff] }
 0x9a6   : > { %v1767_v1 = vpop.permute.xlu1 %1766  ;;  %v1160_v9 = vmul.f32 %v2260_v47, %v1159_v55  ;;  %2271 = vpow2.f32 %v1740_v20 }
 0x9a7   : > { %2154 = vmatpush3.msra.mxu0 %v1767_v1 }
 0x9ad   : > { %v2266_v2 = vpop.eup %2265 }
 0x9ae   : > { %2156 = vmatmul.mubr.msk.f32.vlgmr.msra.gmra.mrb[6].mxu0 %vm1143_vm14, %v2266_v2  ;;  %v1752_v4 = vsel %vm1143_vm14, %v2266_v2, 0.0  ;;  %v2268_v7 = vpop.eup %2267 }
 0x9af   : > { %1753 = vadd.xlane.f32.xlu0 %v1752_v4  ;;  %v2270_v8 = vpop.eup %2269 }
 0x9c5   : > { %1361 = vperm.xlu0 %2249, %v2268_v7  }
 0x9c9   : > { %2250 = vset.pattern.permute.xlu0 %v2333_v31 }
 0x9ca   : > { %1561 = vperm.xlu0 %2250, %v2270_v8  }
 0x9ce   : > { %2253 = vset.pattern.permute.xlu0 %v2332_v30 }
 0x9d8   : > { %v1163_v10 = vpop.xlane.xlu1 %1162 }
 0x9d9   : > { %v1164_v11 = vadd.f32 %v1163_v10, %v1160_v9 }
 0x9db   : > { %1166 = vst.msk [vmem:[#allocation3] sm:$0xff] %vm1165_vm15, %v1164_v11 }
 0x9dc   : > { %v1171_v13 = vpop.permute.xlu1 %1170 }
 0x9dd   : > { %v1173_v14 = vmul.f32 %v1171_v13, %v1167_v12 }
 0x9df   : > { %v1247_v15 = vadd.f32 %v2589_v17, %v1173_v14  ;;  %v2272_v17 = vpop.eup %2271 }
 0x9e1   : > { %1248 = vst.msk [vmem:[#allocation4] sm:$0xff] %vm1064_vm11, %v1247_v15 }
 0x9e2   : > { %v1350_v16 = vld [vmem:[#allocation3] sm:$0xff] }
 0x9e3   : > { %v1351_v18 = vmul.f32 %v2268_v7, %v1350_v16 }
 0x9e8   : > { %v1358_v40 = vld [vmem:[#allocation4] sm:$0xff] }
 0xa28   : > { %v1354_v3 = vpop.xlane.xlu0 %1353 }
 0xa29   : > { %v1355_v19 = vadd.f32 %v1354_v3, %v1351_v18 }
 0xa2b   : > { %1357 = vst.msk [vmem:[#allocation3] sm:$0xff] %vm1356_vm0, %v1355_v19 }
 0xa32   : > { %v1550_v21 = vld [vmem:[#allocation3] sm:$0xff]  ;;  %v1554_v23 = vpop.xlane.xlu1 %1553 }
 0xa33   : > { %v1551_v22 = vmul.f32 %v2270_v8, %v1550_v21 }
 0xa35   : > { %v1555_v24 = vadd.f32 %v1554_v23, %v1551_v22 }
 0xa37   : > { %1557 = vst.msk [vmem:[#allocation3] sm:$0xff] %vm1556_vm1, %v1555_v24 }
 0xa3c   : > { %v1754_v27 = vpop.xlane.xlu0 %1753 }
 0xa3e   : > { %v1750_v25 = vld [vmem:[#allocation3] sm:$0xff] }
 0xa3f   : > { %v1751_v26 = vmul.f32 %v2272_v17, %v1750_v25 }
 0xa41   : > { %v1755_v28 = vadd.f32 %v1754_v27, %v1751_v26 }
 0xa43   : > { %1757 = vst.msk [vmem:[#allocation3] sm:$0xff] %vm1756_vm2, %v1755_v28 }
 0xa44   : > { %v1362_v39 = vpop.permute.xlu0 %1361 }
 0xa45   : > { %v1364_v41 = vmul.f32 %v1362_v39, %v1358_v40 }
 0xa49   : > { %v1562_v43 = vpop.permute.xlu0 %1561 }
 0xa4a   : > { %v1850_v32 = vld [vmem:[#allocation3] sm:$0xff] }
 0xa4b   : > { %2273 = vrcp.f32 %v1850_v32 }
 0xa55   : > { %v2274_v35 = vpop.eup %2273 }
 0xa6d   : > { %v1438_v29 = vpop.f32.mrb[2].mxu0 }
 0xa6e   : > { %v2137_v30 = vpop.f32.mrb[3].mxu0  ;;  %1443 = vrot.lane.b32.xlu1 %v1438_v29, %s2331_s19 }
 0xa77   : > { %v1638_v33 = vpop.f32.mrb[4].mxu0 }
 0xa78   : > { %v2147_v34 = vpop.f32.mrb[5].mxu0  ;;  %1643 = vrot.lane.b32.xlu1 %v1638_v33, %s2330_s13 }
 0xa7c   : > { %1761 = vperm.xlu1 %2251, %v2272_v17  }
 0xa80   : > { %2252 = vset.pattern.permute.xlu1 %v2328_v0 }
 0xa81   : > { %v1838_v36 = vpop.f32.mrb[6].mxu0  ;;  %1855 = vperm.xlu1 %2252, %v2274_v35  }
 0xa82   : > { %v2157_v38 = vpop.f32.mrb[7].mxu0  ;;  %1843 = vrot.lane.b32.xlu0 %v1838_v36, %s2329_s12 }
 0xa85   : > { %2254 = vset.pattern.permute.xlu1 %v2333_v31 }
 0xa86   : > { %1865 = vperm.xlu0 %2253, %v2274_v35   ;;  %1875 = vperm.xlu1 %2254, %v2274_v35  }
 0xa8a   : > { %2255 = vset.pattern.permute.xlu1 %v2334_v37  ;;  %2256 = vset.pattern.permute.xlu0 %v2334_v37 }
 0xa8b   : > { %1885 = vperm.xlu1 %2255, %v2274_v35  }
 0xae0   : > { %v1444_v42 = vpop.permute.xlu1 %1443 }
 0xae1   : > { %v1446_v0 = vadd.f32 %v1444_v42, %v1364_v41 }
 0xae3   : > { %1448 = vst.msk [vmem:[#allocation4] sm:$0xff] %vm1447_vm3, %v1446_v0 }
 0xaea   : > { %v1558_v44 = vld [vmem:[#allocation4] sm:$0xff]  ;;  %v1644_v31 = vpop.permute.xlu1 %1643 }
 0xaeb   : > { %v1564_v45 = vmul.f32 %v1562_v43, %v1558_v44 }
 0xaed   : > { %v1646_v46 = vadd.f32 %v1644_v31, %v1564_v45 }
 0xaef   : > { %1648 = vst.msk [vmem:[#allocation4] sm:$0xff] %vm1647_vm4, %v1646_v46 }
 0xaf4   : > { %v1844_v49 = vpop.permute.xlu0 %1843 }
 0xaf6   : > { %v1758_v47 = vld [vmem:[#allocation4] sm:$0xff] }
 0xafb   : > { %v1762_v48 = vpop.permute.xlu1 %1761 }
 0xafc   : > { %v1764_v37 = vmul.f32 %v1762_v48, %v1758_v47 }
 0xafe   : > { %v1846_v50 = vadd.f32 %v1844_v49, %v1764_v37 }
 0xb00   : > { %1848 = vst.msk [vmem:[#allocation4] sm:$0xff] %vm1847_vm5, %v1846_v50  ;;  %v1856_v52 = vpop.permute.xlu1 %1855 }
 0xb05   : > { %v1866_v54 = vpop.permute.xlu0 %1865  ;;  %v1876_v59 = vpop.permute.xlu1 %1875 }
 0xb07   : > { %v1852_v51 = vld [vmem:[#allocation4] sm:$0xff] }
 0xb08   : > { %v1858_v53 = vmul.f32 %v1856_v52, %v1852_v51 }
 0xb0a   : > { %1859 = vst.msk [vmem:[#allocation4] sm:$0xff] %vm1064_vm11, %v1858_v53  ;;  %v1886_v62 = vpop.permute.xlu1 %1885 }
 0xb11   : > { %v1862_v56 = vld [vmem:[#allocation4] sm:$0xff] }
 0xb12   : > { %v1868_v57 = vmul.f32 %v1866_v54, %v1862_v56 }
 0xb14   : > { %1869 = vst.msk [vmem:[#allocation4] sm:$0xff] %vm1447_vm3, %v1868_v57 }
 0xb1b   : > { %v1872_v58 = vld [vmem:[#allocation4] sm:$0xff] }
 0xb1c   : > { %v1878_v60 = vmul.f32 %v1876_v59, %v1872_v58 }
 0xb1e   : > { %1879 = vst.msk [vmem:[#allocation4] sm:$0xff] %vm1647_vm4, %v1878_v60 }
 0xb25   : > { %v1882_v61 = vld [vmem:[#allocation4] sm:$0xff] }
 0xb26   : > { %v1888_v63 = vmul.f32 %v1886_v62, %v1882_v61 }
 0xb28   : > { %1889 = vst.msk [vmem:[#allocation4] sm:$0xff] %vm1847_vm5, %v1888_v63 }
 0xb2f   : > { %v1890_v1 = vld [vmem:[#allocation4] sm:$0xff] }
 0xb30   : > { %1891 = vst [vmem:[%s2398_s25] sm:$0xff] %v1890_v1 }
 0xb31 PF: > { %s13_s16 = sadd.s32 1, %s2313_s16   ;;  %s2701_s12 = smov %s2305_s14 }
 0xb32   : > { %p10_p11 = scmp.ge.s32.totalorder %s13_s16, 6   ;;  %s2702_s13 = smov %s2309_s15 }
 0xb33   : > { %s2703_s14 = smov %s2706_s17  ;;  %s2704_s15 = smov %s2710_s18 }
 0xb34   :  { %12 = sbr.rel (!%p10_p11) target bundleno = 3 (0x3), region = 80 }

// kernel: _lambda_.11
= control target key start
LH: loop header
LB: loop body
LE: loop exit
PB: predicated region body
PF: predicated region fallthrough
CT: control target
= control target key end

     0   :  { %s1967_s0 = inlined_call_operand.vmem [shape: f32[16,128], index: 0, kind: input, shape index: {}]   ;;  %s1968_s1 = inlined_call_operand.vmem [shape: f32[16,128], index: 1, kind: input, shape index: {}]   ;;  %s1969_s2 = inlined_call_operand.vmem [shape: f32[128,128], index: 2, kind: input, shape index: {}]   ;;  %s1970_s3 = inlined_call_operand.vmem [shape: f32[1,128], index: 3, kind: input, shape index: {}]   ;;  %s1971_s4 = inlined_call_operand.vmem [shape: f32[1,128], index: 4, kind: input, shape index: {}]   ;;  %s1972_s5 = inlined_call_operand.vmem [shape: f32[1,128], index: 5, kind: input, shape index: {}]   ;;  %s1973_s6 = inlined_call_operand.vmem [shape: f32[128,256], index: 6, kind: input, shape index: {}]   ;;  %s1974_s7 = inlined_call_operand.vmem [shape: f32[1,256], index: 7, kind: input, shape index: {}]   ;;  %s1975_s8 = inlined_call_operand.vmem [shape: f32[256,128], index: 8, kind: input, shape index: {}]   ;;  %s1976_s9 = inlined_call_operand.vmem [shape: f32[1,128], index: 9, kind: input, shape index: {}]   ;;  %s1977_s10 = inlined_call_operand.vmem [shape: f32[1,128], index: 10, kind: input, shape index: {}]   ;;  %s1978_s11 = inlined_call_operand.vmem [shape: f32[1,128], index: 11, kind: input, shape index: {}]   ;;  %s1979_s12 = inlined_call_operand.hbm [shape: f32[16,128], index: 12, kind: output, shape index: {}]  }
   0x1   :  { %1994 = sst [smem:[#allocation21_spill]] %s1973_s6 }
   0x2   :  { %1995 = sst [smem:[#allocation22_spill]] %s1977_s10 }
   0x3   :  { %1996 = sst [smem:[#allocation23_spill]] %s1978_s11 }
   0x4   :  { %1997 = sst [smem:[#allocation24_spill]] %s1979_s12 }
   0x5   :  { %17 = vsyncpa [#allocation7], 0 }
   0x6   :  { %19 = vsyncpa [#allocation7 + $0x1], 0  ;;  %s1628_s21 = smov 0   ;;  %s1630_s22 = smov 0  }
   0x7   :  { %s1632_s23 = smov 0   ;;  %s1634_s24 = smov 0  }
   0x8   :  { %s1636_s25 = smov 0   ;;  %s1638_s26 = smov 0  }
   0x9   :  { %s1640_s27 = smov 0   ;;  %s1642_s28 = smov 0  }
   0xa   :  { %s1644_s29 = smov 0   ;;  %s1646_s30 = smov 0  }
   0xb LB: > { %1998 = sst [smem:[#allocation9_spill]] %s1518_s21  ;;  %s1091_s13 = sadd.s32 4294967295, %s1554_s30   ;;  %s1554_s30 = sphi %s1646_s30, %s25_s30   ;;  %s1550_s29 = sphi %s1644_s29, %s2029_s29   ;;  %s1546_s28 = sphi %s1642_s28, %s2028_s28   ;;  %s1542_s27 = sphi %s1640_s27, %s2027_s27   ;;  %s1538_s26 = sphi %s1638_s26, %s2026_s26   ;;  %s1534_s25 = sphi %s1636_s25, %s2025_s25   ;;  %s1530_s24 = sphi %s1634_s24, %s2032_s24   ;;  %s1526_s23 = sphi %s1632_s23, %s2023_s23   ;;  %s1522_s22 = sphi %s1630_s22, %s2031_s22   ;;  %s1518_s21 = sphi %s1628_s21, %s2030_s21  }
   0xc   : > { %1999 = sst [smem:[#allocation10_spill]] %s1526_s23  ;;  %s1092_s14 = sadd.s32 4294967294, %s1554_s30  }
   0xd   : > { %2000 = sst [smem:[#allocation11_spill]] %s1534_s25  ;;  %s34_s15 = sadd.s32 1, %s1546_s28 }
   0xe   : > { %2001 = sst [smem:[#allocation12_spill]] %s1546_s28  ;;  %s37_s16 = sadd.s32 1, %s1550_s29 }
   0xf   : > { %2002 = sst [smem:[#allocation13_spill]] %s1550_s29  ;;  %p35_p0 = scmp.ge.s32.totalorder %s34_s15, 2 }
  0x10   : > { %2003 = sst [smem:[#allocation14_spill]] %s1554_s30  ;;  %s180_s17 = sadd.s32 1, %s1534_s25 }
  0x11   : > { %p187_p1 = scmp.ne.s32.totalorder %s1534_s25, %s1530_s24  ;;  %p188_p2 = scmp.eq.s32.totalorder %s1554_s30, 0 }
  0x12   : > { %s2034_s15 = smov (%p35_p0, %s34_s15), 0  ;;  %s2036_s16 = smov (!%p35_p0, %s37_s16), %s1550_s29 }
  0x13   : > { %2004 = sst [smem:[#allocation15_spill]] %s2034_s15  ;;  %s177_s18 = ssub.s32 %s1546_s28, %s2034_s15 }
  0x14   : > { %p1691_p3 = por %p188_p2, %p187_p1  ;;  %p39_p4 = scmp.ge.s32.totalorder %s2036_s16, 2 }
  0x15   : > { %p178_p5 = scmp.eq.s32.totalorder %s177_s18, 0  ;;  %s321_s20 = sadd.s32 1, %s1526_s23 }
  0x16   : > { %p331_p6 = scmp.ne.s32.totalorder %s1526_s23, %s1522_s22  ;;  %s2038_s16 = smov (%p39_p4, %s2036_s16), 0 }
  0x17   : > { %2006 = sst [smem:[#allocation16_spill]] %s2038_s16  ;;  %s318_s11 = ssub.s32 %s1550_s29, %s2038_s16 }
  0x18   : > { %s1701_s12 = scalar_select %p178_p5, %s1534_s25, %s180_s17  }
  0x19   : > { %p332_p7 = scmp.eq.s32.totalorder %s1091_s13, 3  ;;  %p319_p8 = scmp.eq.s32.totalorder %s318_s11, 0 }
  0x1a   : > { %2007 = sst [smem:[#allocation17_spill]] %s1701_s12  ;;  %p337_p9 = scmp.ne.s32.totalorder %s1522_s22, %s1518_s21 }
  0x1b   : > { %p1707_p10 = por %p332_p7, %p331_p6  ;;  %p338_p11 = scmp.eq.s32.totalorder %s1092_s14, 3 }
  0x1c   : > { %s1712_s15 = scalar_select %p319_p8, %s1526_s23, %s321_s20  }
  0x1d   : > { %s2008_s10 = scalar_select %p1707_p10, 1, 0 }
  0x1e   : > { %2010 = sst [smem:[#allocation19_spill]] %s1712_s15  ;;  %p1714_p12 = por %p338_p11, %p337_p9 }
  0x1f   : > { %2009 = sst [smem:[#allocation18_spill]] %s2008_s10  ;;  %p1094_p13 = scmp.ge.s32.totalorder %s1554_s30, 4 }
  0x20   : > { %s2011_s18 = scalar_select %p1714_p12, 1, 0 }
  0x21   : > { %375 = sbr.rel (%p1094_p13) target bundleno = 58 (0x3a), region = 44 }
  0x22   : > { %2012 = sst [smem:[#allocation20_spill]] %s2011_s18 }
  0x28   : > { %392 = sbr.rel (!%p1691_p3) target bundleno = 58 (0x3a), region = 56  ;;  %s394_s11 = sand.u32 (%p1691_p3), 1, %s1534_s25  }
  0x29   : > { %s1096_s13 = sshll.u32 (%p1691_p3), %s1546_s28, 3  ;;  %s1095_s17 = sshll.u32 (%p1691_p3), %s394_s11, 7 }
  0x2a   : > { %s2013_s6 = sld [smem:[#allocation21_spill]] (%p1691_p3)  ;;  %s396_s19 = scalar_lea.vmem (%p1691_p3), [#allocation5], %s1095_s17 }
  0x30   : > { %s1726_s14 = scalar_lea.vmem %s2013_s6, %s1096_s13 }
  0x31   : > { %v456_v0 = vld [vmem:[%s1726_s14] sm:$0xff]  ;;  %v458_v1 = vld [vmem:[%s1726_s14 + $0x10] sm:$0xff] }
  0x32   : > { %v460_v2 = vld [vmem:[%s1726_s14 + $0x20] sm:$0xff]  ;;  %457 = vst [vmem:[%s396_s19] sm:$0xff] %v456_v0  ;;  %459 = vst [vmem:[%s396_s19 + $0x8] sm:$0xff] %v458_v1  ;;  %v462_v3 = vld [vmem:[%s1726_s14 + $0x30] sm:$0xff] }
  0x33   : > { %461 = vst [vmem:[%s396_s19 + $0x10] sm:$0xff] %v460_v2  ;;  %v464_v4 = vld [vmem:[%s1726_s14 + $0x40] sm:$0xff]  ;;  %v466_v5 = vld [vmem:[%s1726_s14 + $0x50] sm:$0xff]  ;;  %463 = vst [vmem:[%s396_s19 + $0x18] sm:$0xff] %v462_v3 }
  0x34   : > { %465 = vst [vmem:[%s396_s19 + $0x20] sm:$0xff] %v464_v4  ;;  %467 = vst [vmem:[%s396_s19 + $0x28] sm:$0xff] %v466_v5  ;;  %v468_v6 = vld [vmem:[%s1726_s14 + $0x60] sm:$0xff]  ;;  %v470_v7 = vld [vmem:[%s1726_s14 + $0x70] sm:$0xff] }
  0x35   : > { %v472_v8 = vld [vmem:[%s1726_s14 + $0x80] sm:$0xff]  ;;  %469 = vst [vmem:[%s396_s19 + $0x30] sm:$0xff] %v468_v6  ;;  %471 = vst [vmem:[%s396_s19 + $0x38] sm:$0xff] %v470_v7  ;;  %v474_v9 = vld [vmem:[%s1726_s14 + $0x90] sm:$0xff] }
  0x36   : > { %473 = vst [vmem:[%s396_s19 + $0x40] sm:$0xff] %v472_v8  ;;  %v476_v10 = vld [vmem:[%s1726_s14 + $0xa0] sm:$0xff]  ;;  %v478_v11 = vld [vmem:[%s1726_s14 + $0xb0] sm:$0xff]  ;;  %475 = vst [vmem:[%s396_s19 + $0x48] sm:$0xff] %v474_v9 }
  0x37   : > { %477 = vst [vmem:[%s396_s19 + $0x50] sm:$0xff] %v476_v10  ;;  %479 = vst [vmem:[%s396_s19 + $0x58] sm:$0xff] %v478_v11  ;;  %v480_v12 = vld [vmem:[%s1726_s14 + $0xc0] sm:$0xff]  ;;  %v482_v13 = vld [vmem:[%s1726_s14 + $0xd0] sm:$0xff] }
  0x38   : > { %v484_v14 = vld [vmem:[%s1726_s14 + $0xe0] sm:$0xff]  ;;  %481 = vst [vmem:[%s396_s19 + $0x60] sm:$0xff] %v480_v12  ;;  %483 = vst [vmem:[%s396_s19 + $0x68] sm:$0xff] %v482_v13  ;;  %v486_v15 = vld [vmem:[%s1726_s14 + $0xf0] sm:$0xff] }
  0x39   : > { %485 = vst [vmem:[%s396_s19 + $0x70] sm:$0xff] %v484_v14  ;;  %487 = vst [vmem:[%s396_s19 + $0x78] sm:$0xff] %v486_v15 }
  0x3a PF: > { %p1097_p0 = scmp.ge.s32.totalorder %s1554_s30, 1  ;;  %p507_p1 = scmp.lt.s32.totalorder %s1554_s30, 5 }
  0x3c   : > { %p508_p2 = pnand %p1097_p0, %p507_p1 }
  0x3d   : > { %s514_s29 = sand.u32 (!%p508_p2), 1, %s1530_s24   ;;  %s1985_s16 = sand.u32 (!%p508_p2), 1, %s1522_s22  }
  0x3e   : > { %511 = sbr.rel (%p508_p2) target bundleno = 1470 (0x5be), region = 102  ;;  %s1098_s20 = sshll.u32 (!%p508_p2), %s514_s29, 7 }
  0x3f   : > { %s1750_s11 = sshll.u32 (!%p508_p2), %s1985_s16, 3  ;;  %p571_p3 = scmp.lt.s32.totalorder (!%p508_p2), %s1542_s27, 1 }
  0x40   : > { %p579_p4 = scmp.lt.s32.totalorder (!%p508_p2), %s1538_s26, 1  ;;  %s1102_s13 = sshll.u32 (!%p508_p2), %s1538_s26, 4 }
  0x41   : > { %p583_p5 = scmp.lt.s32.totalorder (!%p508_p2), %s1102_s13, 31  ;;  %s1778_s10 = scalar_lea.vmem (!%p508_p2), [#allocation5], %s1098_s20 }
  0x42   : > { %s570_s6 = scalar_lea.vmem (!%p508_p2), [#allocation6], %s1750_s11  ;;  %p1104_p6 = scmp.ne.s32.totalorder (!%p508_p2), %s1538_s26, 0 }
  0x45   : > { %s572_s17 = scalar_select %p571_p3, %s1542_s27, 1 }
  0x46   : > { %s1757_s14 = scalar_select %p579_p4, %s1538_s26, 1 }
  0x47   : > { %s1100_s19 = sshll.u32 %s572_s17, 3  ;;  %s2040_s13 = smov (!%p583_p5, %s1102_s13), 31  ;;  %v594_v16 = vld [vmem:[%s1969_s2] sm:$0xff] (!%p1104_p6)  ;;  %v595_v17 = vld [vmem:[%s1969_s2 + $0x8] sm:$0xff] (!%p1104_p6)  ;;  %v596_v18 = vld [vmem:[%s1969_s2 + $0x10] sm:$0xff] (!%p1104_p6)  ;;  %v1556_v19 = vmov (!%p1104_p6), 0.0|0.0  }
  0x48   : > { %s1762_s12 = scalar_lea.vmem %s1967_s0, %s1100_s19  ;;  %s1767_s16 = scalar_lea.vmem %s1968_s1, %s1100_s19  ;;  %1273 = vmatprep.subr.bf16.mxu0 (!%p1104_p6), %v1556_v19  ;;  %v1274_v20 = vpack.c.bf16 (!%p1104_p6), %v595_v17, %v594_v16  ;;  %v597_v21 = vld [vmem:[%s1969_s2 + $0x18] sm:$0xff] (!%p1104_p6)  ;;  %vm1557_vm0 = vmmov (!%p1104_p6), 0   ;;  %v1558_v22 = vmov (!%p1104_p6), 0.0   ;;  %v598_v24 = vld [vmem:[%s1969_s2 + $0x20] sm:$0xff] (!%p1104_p6)  ;;  %v599_v25 = vld [vmem:[%s1969_s2 + $0x28] sm:$0xff] (!%p1104_p6) }
  0x49   : > { %s581_s23 = scalar_lea.vmem %s1974_s7, %s1757_s14  ;;  %s1103_s18 = sshll.u32 %s2040_s13, 3  ;;  %1200 = vmatprep.mubr.msk.f32.mxu0 (!%p1104_p6), %vm1557_vm0, %v1558_v22  ;;  %719 = vst [vmem:[#allocation4] sm:$0xff] (!%p1104_p6), %v1558_v22  ;;  %v1277_v23 = vpack.c.bf16 (!%p1104_p6), %v597_v21, %v596_v18  ;;  %v1280_v26 = vpack.c.bf16 (!%p1104_p6), %v599_v25, %v598_v24  ;;  %v600_v27 = vld [vmem:[%s1969_s2 + $0x30] sm:$0xff] (!%p1104_p6)  ;;  %v601_v28 = vld [vmem:[%s1969_s2 + $0x38] sm:$0xff] (!%p1104_p6)  ;;  %v602_v30 = vld [vmem:[%s1969_s2 + $0x40] sm:$0xff] (!%p1104_p6) }
  0x4a   : > { %s1776_s17 = scalar_lea.vmem %s1975_s8, %s1103_s18  ;;  %591 = sbr.rel (%p1104_p6) target bundleno = 633 (0x279), region = 110  ;;  %1275 = vmatpush3.bf16.msra.mxu0 (!%p1104_p6), %v1274_v20  ;;  %v1283_v29 = vpack.c.bf16 (!%p1104_p6), %v601_v28, %v600_v27  ;;  %v603_v31 = vld [vmem:[%s1969_s2 + $0x48] sm:$0xff] (!%p1104_p6)  ;;  %v604_v33 = vld [vmem:[%s1969_s2 + $0x50] sm:$0xff] (!%p1104_p6)  ;;  %v605_v34 = vld [vmem:[%s1969_s2 + $0x58] sm:$0xff] (!%p1104_p6) }
  0x4b   : > { %1276 = vmatprep.subr.bf16.mxu0 (!%p1104_p6), %v1556_v19  ;;  %v1286_v32 = vpack.c.bf16 (!%p1104_p6), %v603_v31, %v602_v30  ;;  %v1289_v35 = vpack.c.bf16 (!%p1104_p6), %v605_v34, %v604_v33  ;;  %v606_v36 = vld [vmem:[%s1969_s2 + $0x60] sm:$0xff] (!%p1104_p6)  ;;  %v607_v37 = vld [vmem:[%s1969_s2 + $0x68] sm:$0xff] (!%p1104_p6)  ;;  %v608_v39 = vld [vmem:[%s1969_s2 + $0x70] sm:$0xff] (!%p1104_p6) }
  0x4c   : > { %v1292_v38 = vpack.c.bf16 (!%p1104_p6), %v607_v37, %v606_v36  ;;  %v609_v40 = vld [vmem:[%s1969_s2 + $0x78] sm:$0xff] (!%p1104_p6)  ;;  %v593_v42 = vld [vmem:[%s1762_s12] sm:$0xff] (!%p1104_p6) }
  0x4d   : > { %v1295_v41 = vpack.c.bf16 (!%p1104_p6), %v609_v40, %v608_v39  ;;  %v592_v43 = vld [vmem:[%s1767_s16] sm:$0xff] (!%p1104_p6) }
  0x4e   : > { %1278 = vmatpush3.bf16.msra.mxu0 (!%p1104_p6), %v1277_v23  ;;  %v1105_v45 = vld [vmem:[%s1970_s3] ss:$0 sm:$0xff] (!%p1104_p6) }
  0x4f   : > { %1279 = vmatprep.subr.bf16.mxu0 (!%p1104_p6), %v1556_v19  ;;  %v1106_v57 = vld [vmem:[%s1971_s4] ss:$0 sm:$0xff] (!%p1104_p6) }
  0x50   : > { %v1107_v59 = vld [vmem:[%s1972_s5] ss:$0 sm:$0xff] (!%p1104_p6) }
  0x52   : > { %1281 = vmatpush3.bf16.msra.mxu0 %v1280_v26 }
  0x53   : > { %1282 = vmatprep.subr.bf16.mxu0 %v1556_v19 }
  0x56   : > { %1284 = vmatpush3.bf16.msra.mxu0 %v1283_v29 }
  0x57   : > { %1285 = vmatprep.subr.bf16.mxu0 %v1556_v19 }
  0x5a   : > { %1287 = vmatpush3.bf16.msra.mxu0 %v1286_v32 }
  0x5b   : > { %1288 = vmatprep.subr.bf16.mxu0 %v1556_v19 }
  0x5e   : > { %1290 = vmatpush3.bf16.msra.mxu0 %v1289_v35 }
  0x5f   : > { %1291 = vmatprep.subr.bf16.mxu0 %v1556_v19 }
  0x62   : > { %1293 = vmatpush3.bf16.msra.mxu0 %v1292_v38 }
  0x63   : > { %1294 = vmatprep.subr.bf16.mxu0 %v1556_v19 }
  0x66   : > { %1296 = vmatpush3.bf16.msra.mxu0 %v1295_v41 }
  0x69   : > { %1201 = vmatmul.mubr.f32.vlgmr.msra.gmra.mrb[0].mxu0 %v593_v42 }
 0x13c   : > { %v676_v44 = vpop.f32.mrb[0].mxu0 }
 0x13d   : > { %v680_v46 = vadd.f32 %v676_v44, %v592_v43  ;;  %v1202_v47 = vpop.f32.mrb[1].mxu0 }
 0x13f   : > { %v688_v48 = vadd.f32 %v1105_v45, %v680_v46 }
 0x141   : > { %689 = vst [vmem:[#allocation2] sm:$0xff] %v688_v48  ;;  %692 = vadd.xlane.f32.xlu0 %v688_v48 }
 0x1ce   : > { %v693_v49 = vpop.xlane.xlu0 %692 }
 0x1cf   : > { %v695_v50 = vmul.f32 0.0078125, %v693_v49 }
 0x1d1   : > { %v696_v51 = vsub.f32 %v688_v48, %v695_v50 }
 0x1d3   : > { %v697_v52 = vmul.f32 %v696_v51, %v696_v51 }
 0x1d5   : > { %698 = vadd.xlane.f32.xlu0 %v697_v52 }
 0x262   : > { %v699_v53 = vpop.xlane.xlu0 %698 }
 0x263   : > { %v700_v54 = vmul.f32 0.0078125, %v699_v53 }
 0x265   : > { %v701_v55 = vadd.f32 1e-05, %v700_v54 }
 0x267   : > { %1438 = vrsqrt.f32 %v701_v55 }
 0x271   : > { %v1439_v56 = vpop.eup %1438 }
 0x272   : > { %v703_v58 = vmul.f32 %v1439_v56, %v696_v51 }
 0x274   : > { %v710_v60 = vmul.f32 %v1106_v57, %v703_v58 }
 0x276   : > { %v717_v61 = vadd.f32 %v1107_v59, %v710_v60 }
 0x278   : > { %718 = vst [vmem:[#allocation3] sm:$0xff] %v717_v61 }
 0x279 PF: > { %v721_v62 = vld [vmem:[%s1778_s10] sm:$0xff]  ;;  %v722_v63 = vld [vmem:[%s1778_s10 + $0x8] sm:$0xff]  ;;  %v723_v0 = vld [vmem:[%s1778_s10 + $0x10] sm:$0xff]  ;;  %v1559_v1 = vmov 0.0|0.0   ;;  %vm1560_vm1 = vmmov 0   ;;  %v1561_v4 = vmov 0.0  }
 0x27a   : > { %1297 = vmatprep.subr.bf16.mxu0 %v1559_v1  ;;  %v1298_v2 = vpack.c.bf16 %v722_v63, %v721_v62  ;;  %v724_v3 = vld [vmem:[%s1778_s10 + $0x18] sm:$0xff]  ;;  %1235 = vmatprep.mubr.msk.f32.mxu0 %vm1560_vm1, %v1561_v4  ;;  %v725_v6 = vld [vmem:[%s1778_s10 + $0x20] sm:$0xff]  ;;  %v726_v7 = vld [vmem:[%s1778_s10 + $0x28] sm:$0xff]  ;;  %p1109_p7 = scmp.ne.s32.totalorder %s1538_s26, 1 }
 0x27b   : > { %1321 = vmatprep.subr.bf16.mxu1 %v1559_v1  ;;  %1270 = vmatprep.mubr.msk.f32.mxu1 %vm1560_vm1, %v1561_v4  ;;  %v1301_v5 = vpack.c.bf16 %v724_v3, %v723_v0  ;;  %v824_v8 = vld [vmem:[%s1776_s17] sm:$0xff]  ;;  %v825_v9 = vld [vmem:[%s1776_s17 + $0x8] sm:$0xff]  ;;  %v1304_v10 = vpack.c.bf16 %v726_v7, %v725_v6  ;;  %v728_v13 = vld [vmem:[%s1778_s10 + $0x38] sm:$0xff]  ;;  %s2014_s15 = sld [smem:[#allocation22_spill]] (!%p1109_p7)  ;;  %s2015_s30 = sld [smem:[#allocation23_spill]] (!%p1109_p7) }
 0x27c   : > { %1299 = vmatpush3.bf16.msra.mxu0 %v1298_v2  ;;  %v1322_v11 = vpack.c.bf16 %v825_v9, %v824_v8  ;;  %v727_v12 = vld [vmem:[%s1778_s10 + $0x30] sm:$0xff]  ;;  %v729_v15 = vld [vmem:[%s1778_s10 + $0x40] sm:$0xff]  ;;  %v730_v16 = vld [vmem:[%s1778_s10 + $0x48] sm:$0xff] }
 0x27d   : > { %1300 = vmatprep.subr.bf16.mxu0 %v1559_v1  ;;  %v1307_v14 = vpack.c.bf16 %v728_v13, %v727_v12  ;;  %v1310_v17 = vpack.c.bf16 %v730_v16, %v729_v15  ;;  %v731_v18 = vld [vmem:[%s1778_s10 + $0x50] sm:$0xff]  ;;  %v732_v19 = vld [vmem:[%s1778_s10 + $0x58] sm:$0xff]  ;;  %v733_v21 = vld [vmem:[%s1778_s10 + $0x60] sm:$0xff] }
 0x27e   : > { %1323 = vmatpush3.bf16.msra.mxu1 %v1322_v11  ;;  %v1313_v20 = vpack.c.bf16 %v732_v19, %v731_v18  ;;  %v734_v22 = vld [vmem:[%s1778_s10 + $0x68] sm:$0xff]  ;;  %v735_v24 = vld [vmem:[%s1778_s10 + $0x70] sm:$0xff]  ;;  %v736_v25 = vld [vmem:[%s1778_s10 + $0x78] sm:$0xff] }
 0x27f   : > { %1324 = vmatprep.subr.bf16.mxu1 %v1559_v1  ;;  %v1316_v23 = vpack.c.bf16 %v734_v22, %v733_v21  ;;  %v1319_v26 = vpack.c.bf16 %v736_v25, %v735_v24  ;;  %v720_v27 = vld [vmem:[#allocation3] sm:$0xff]  ;;  %v826_v28 = vld [vmem:[%s1776_s17 + $0x10] sm:$0xff]  ;;  %v827_v29 = vld [vmem:[%s1776_s17 + $0x18] sm:$0xff] }
 0x280   : > { %1302 = vmatpush3.bf16.msra.mxu0 %v1301_v5  ;;  %v1325_v30 = vpack.c.bf16 %v827_v29, %v826_v28  ;;  %v828_v31 = vld [vmem:[%s1776_s17 + $0x20] sm:$0xff]  ;;  %v829_v32 = vld [vmem:[%s1776_s17 + $0x28] sm:$0xff]  ;;  %v830_v34 = vld [vmem:[%s1776_s17 + $0x30] sm:$0xff] }
 0x281   : > { %1303 = vmatprep.subr.bf16.mxu0 %v1559_v1  ;;  %v1328_v33 = vpack.c.bf16 %v829_v32, %v828_v31  ;;  %v831_v35 = vld [vmem:[%s1776_s17 + $0x38] sm:$0xff]  ;;  %v832_v37 = vld [vmem:[%s1776_s17 + $0x40] sm:$0xff]  ;;  %v833_v38 = vld [vmem:[%s1776_s17 + $0x48] sm:$0xff] }
 0x282   : > { %1326 = vmatpush3.bf16.msra.mxu1 %v1325_v30  ;;  %v1331_v36 = vpack.c.bf16 %v831_v35, %v830_v34  ;;  %v1334_v39 = vpack.c.bf16 %v833_v38, %v832_v37  ;;  %v834_v40 = vld [vmem:[%s1776_s17 + $0x50] sm:$0xff]  ;;  %v835_v41 = vld [vmem:[%s1776_s17 + $0x58] sm:$0xff]  ;;  %v836_v43 = vld [vmem:[%s1776_s17 + $0x60] sm:$0xff] }
 0x283   : > { %1327 = vmatprep.subr.bf16.mxu1 %v1559_v1  ;;  %v1337_v42 = vpack.c.bf16 %v835_v41, %v834_v40  ;;  %v837_v44 = vld [vmem:[%s1776_s17 + $0x68] sm:$0xff]  ;;  %v838_v46 = vld [vmem:[%s1776_s17 + $0x70] sm:$0xff]  ;;  %v839_v47 = vld [vmem:[%s1776_s17 + $0x78] sm:$0xff] }
 0x284   : > { %1305 = vmatpush3.bf16.msra.mxu0 %v1304_v10  ;;  %v1340_v45 = vpack.c.bf16 %v837_v44, %v836_v43  ;;  %v1343_v48 = vpack.c.bf16 %v839_v47, %v838_v46  ;;  %v1108_v49 = vld [vmem:[%s581_s23] ss:$0 sm:$0xff]  ;;  %v823_v62 = vld [vmem:[#allocation4] sm:$0xff] }
 0x285   : > { %1306 = vmatprep.subr.bf16.mxu0 %v1559_v1  ;;  %v916_v2 = vld [vmem:[#allocation2] sm:$0xff] (!%p1109_p7) }
 0x286   : > { %1329 = vmatpush3.bf16.msra.mxu1 %v1328_v33  ;;  %v1110_v4 = vld [vmem:[%s1976_s9] ss:$0 sm:$0xff] (!%p1109_p7) }
 0x287   : > { %1330 = vmatprep.subr.bf16.mxu1 %v1559_v1  ;;  %v1111_v15 = vld [vmem:[%s2014_s15] ss:$0 sm:$0xff] (!%p1109_p7) }
 0x288   : > { %1308 = vmatpush3.bf16.msra.mxu0 %v1307_v14 }
 0x289   : > { %1309 = vmatprep.subr.bf16.mxu0 %v1559_v1 }
 0x28a   : > { %1332 = vmatpush3.bf16.msra.mxu1 %v1331_v36 }
 0x28b   : > { %1333 = vmatprep.subr.bf16.mxu1 %v1559_v1 }
 0x28c   : > { %1311 = vmatpush3.bf16.msra.mxu0 %v1310_v17  ;;  %v1112_v17 = vld [vmem:[%s2015_s30] ss:$0 sm:$0xff] (!%p1109_p7) }
 0x28d   : > { %1312 = vmatprep.subr.bf16.mxu0 %v1559_v1 }
 0x28e   : > { %1335 = vmatpush3.bf16.msra.mxu1 %v1334_v39 }
 0x28f   : > { %1336 = vmatprep.subr.bf16.mxu1 %v1559_v1 }
 0x290   : > { %1314 = vmatpush3.bf16.msra.mxu0 %v1313_v20 }
 0x291   : > { %1315 = vmatprep.subr.bf16.mxu0 %v1559_v1 }
 0x292   : > { %1338 = vmatpush3.bf16.msra.mxu1 %v1337_v42 }
 0x293   : > { %1339 = vmatprep.subr.bf16.mxu1 %v1559_v1 }
 0x294   : > { %1317 = vmatpush3.bf16.msra.mxu0 %v1316_v23 }
 0x295   : > { %1318 = vmatprep.subr.bf16.mxu0 %v1559_v1 }
 0x296   : > { %1341 = vmatpush3.bf16.msra.mxu1 %v1340_v45 }
 0x297   : > { %1342 = vmatprep.subr.bf16.mxu1 %v1559_v1 }
 0x298   : > { %1320 = vmatpush3.bf16.msra.mxu0 %v1319_v26 }
 0x29a   : > { %1344 = vmatpush3.bf16.msra.mxu1 %v1343_v48 }
 0x29b   : > { %1236 = vmatmul.mubr.f32.vlgmr.msra.gmra.mrb[0].mxu0 %v720_v27 }
 0x36e   : > { %v810_v50 = vpop.f32.mrb[0].mxu0 }
 0x36f   : > { %v811_v51 = vadd.f32 %v1108_v49, %v810_v50  ;;  %v1237_v52 = vpop.f32.mrb[1].mxu0 }
 0x371   : > { %v815_v53 = vmul.f32 0.044715, %v811_v51  ;;  %v814_v59 = vmul.f32 0.5, %v811_v51 }
 0x373   : > { %v816_v54 = vmul.f32 %v815_v53, %v811_v51 }
 0x375   : > { %v817_v55 = vmul.f32 %v816_v54, %v811_v51 }
 0x377   : > { %v818_v56 = vadd.f32 %v817_v55, %v811_v51 }
 0x379   : > { %v819_v57 = vmul.f32 0.7978846, %v818_v56 }
 0x37b   : > { %1440 = vtanh.f32 %v819_v57 }
 0x385   : > { %v1441_v58 = vpop.eup %1440 }
 0x386   : > { %v821_v60 = vadd.f32 1.0, %v1441_v58 }
 0x388   : > { %v822_v61 = vmul.f32 %v821_v60, %v814_v59 }
 0x38a   : > { %1271 = vmatmul.mubr.f32.vlgmr.msra.gmra.mrb[0].mxu1 %v822_v61 }
 0x45a   : > { %915 = sbr.rel (%p1109_p7) target bundleno = 1444 (0x5a4), region = 114 }
 0x45d   : > { %v906_v63 = vpop.f32.mrb[0].mxu1 }
 0x45e   : > { %v910_v0 = vadd.f32 %v906_v63, %v823_v62  ;;  %v1272_v1 = vpop.f32.mrb[1].mxu1 }
 0x460   : > { %911 = vst [vmem:[#allocation4] sm:$0xff] %v910_v0 }
 0x467   : > { %v917_v3 = vld [vmem:[#allocation4] sm:$0xff] }
 0x468   : > { %v918_v5 = vadd.f32 %v917_v3, %v916_v2 }
 0x46a   : > { %v926_v6 = vadd.f32 %v1110_v4, %v918_v5 }
 0x46c   : > { %929 = vadd.xlane.f32.xlu0 %v926_v6 }
 0x4f9   : > { %v930_v7 = vpop.xlane.xlu0 %929 }
 0x4fa   : > { %v932_v8 = vmul.f32 0.0078125, %v930_v7 }
 0x4fc   : > { %v933_v9 = vsub.f32 %v926_v6, %v932_v8 }
 0x4fe   : > { %v934_v10 = vmul.f32 %v933_v9, %v933_v9 }
 0x500   : > { %935 = vadd.xlane.f32.xlu0 %v934_v10 }
 0x58d   : > { %v936_v11 = vpop.xlane.xlu0 %935 }
 0x58e   : > { %v937_v12 = vmul.f32 0.0078125, %v936_v11 }
 0x590   : > { %v938_v13 = vadd.f32 1e-05, %v937_v12 }
 0x592   : > { %1442 = vrsqrt.f32 %v938_v13 }
 0x59c   : > { %v1443_v14 = vpop.eup %1442 }
 0x59d   : > { %v940_v16 = vmul.f32 %v1443_v14, %v933_v9 }
 0x59f   : > { %v947_v18 = vmul.f32 %v1111_v15, %v940_v16 }
 0x5a1   : > { %v954_v19 = vadd.f32 %v1112_v17, %v947_v18 }
 0x5a3   : > { %955 = vst [vmem:[%s570_s6] sm:$0xff] %v954_v19 }
 0x5a4 PF: > { %s1114_s20 = sshll.u32 %s1542_s27, 7  ;;  %s2017_s12 = sld [smem:[#allocation24_spill]] }
 0x5a5   : > { %s970_s19 = sshll.u32 %s570_s6, 4  ;;  %s2018_s24 = sand.u32 1, %s1522_s22   ;;  %s971_s19 = int_to_ptr.vmem [resolvable:$true] %s970_s19 }
 0x5a6   : > { %s957_s10 = scalar_lea.sflag [#allocation7], %s2018_s24  ;;  %s1444_s25 = scalar_lea.vmem %s971_s19, 128 }
 0x5a7   : > { %p1445_p8 = scmp.ne.s32.totalorder %s971_s19, %s1444_s25  ;;  %s1562_s23 = smov [#allocation6]  }
 0x5a8   : > { %s1448_s14 = sshll.u32 %s1562_s23, 4  ;;  %s1449_s14 = int_to_ptr.vmem [resolvable:$false] %s1448_s14 }
 0x5a9   : > { %p1446_p9 = pnand %p1445_p8, %p1707_p10  ;;  %s1450_s26 = scalar_lea.vmem %s1449_s14, 256 }
 0x5aa   : > { %s1910_s16 = scalar_lea.hbm %s2017_s12, %s1114_s20  ;;  %p1451_p13 = scmp.lt.s32.totalorder %s971_s19, %s1449_s14 }
 0x5ab   : > { %p1447_p11 = pneg %p1446_p9  ;;  %p1452_p0 = scmp.lt.s32.totalorder %s1450_s26, %s1444_s25 }
 0x5ad   : > { %p1453_p1 = por %p1452_p0, %p1451_p13 }
 0x5af   : > { %p1454_p2 = pnand %p1453_p1, %p1447_p11 }
 0x5b1   : > { %1457 = shalt.err (!%p1454_p2)
}
 0x5b2   : > { %s1458_s27 = scalar_lea.hbm %s1910_s16, 128  ;;  %s1462_s17 = scalar_lea.hbm %s2017_s12, 256 }
 0x5b3   : > { %p1459_p3 = scmp.ne.s32.totalorder %s1910_s16, %s1458_s27  ;;  %p1463_p6 = scmp.lt.u32.totalorder %s1910_s16, %s2017_s12 }
 0x5b4   : > { %p1464_p7 = scmp.lt.u32.totalorder %s1462_s17, %s1458_s27  ;;  %p1466_p9 = scmp.lt.u32.totalorder %s1458_s27, %s1910_s16 }
 0x5b5   : > { %p1460_p4 = pnand %p1459_p3, %p1707_p10 }
 0x5b6   : > { %p1465_p8 = por %p1464_p7, %p1463_p6 }
 0x5b7   : > { %p1461_p5 = pneg %p1460_p4 }
 0x5b8   : > { %p1467_p11 = por %p1466_p9, %p1465_p8 }
 0x5ba   : > { %p1468_p13 = pnand %p1467_p11, %p1461_p5 }
 0x5bc   : > { %1471 = shalt.err (!%p1468_p13)
}
 0x5bd   : > { %1345 = dma.vmem_to_hbm [thread:$0]  (%p1707_p10), %s971_s19, 128, %s1910_s16, %s957_s10  }
 0x5be PF: > { %s2019_s21 = sld [smem:[#allocation14_spill]]  ;;  %s2020_s30 = sld [smem:[#allocation9_spill]] }
 0x5c4   : > { %p1351_p0 = scmp.ge.s32.totalorder %s2019_s21, 2  ;;  %s982_s29 = sand.u32 1, %s2020_s30  }
 0x5c5   : > { %s983_s28 = scalar_lea.sflag [#allocation7], %s982_s29 }
 0x5c6   : > { %p1348_p1 = pnand %p1351_p0, %p1714_p12 }
 0x5c8   : > { %1513 = dma.done.wait (!%p1348_p1), %s983_s28, 128  }
 0x5c9   : > { %1515 = vsyncadd (!%p1348_p1), %s983_s28, 4294967168  ;;  %s25_s30 = sadd.s32 1, %s2019_s21   ;;  %s2022_s24 = sld [smem:[#allocation10_spill]] }
 0x5ca   : > { %p22_p2 = scmp.ge.s32.totalorder %s25_s30, 6   ;;  %s2023_s23 = sld [smem:[#allocation19_spill]] }
 0x5cb   : > { %s2024_s18 = sld [smem:[#allocation11_spill]]  ;;  %s2025_s25 = sld [smem:[#allocation17_spill]] }
 0x5cc   : > { %s2026_s26 = sld [smem:[#allocation12_spill]]  ;;  %s2027_s27 = sld [smem:[#allocation13_spill]] }
 0x5cd   : > { %s2028_s28 = sld [smem:[#allocation15_spill]]  ;;  %s2029_s29 = sld [smem:[#allocation16_spill]] }
 0x5ce   : > { %s2030_s21 = smov %s1522_s22  ;;  %24 = sbr.rel (!%p22_p2) target bundleno = 11 (0xb), region = 166 }
 0x5cf   : > { %s2031_s22 = smov %s2022_s24 }
 0x5d1   : > { %s2032_s24 = smov %s2024_s18 }
 0x5d5   :  { %988 = vsyncpa [#allocation7], 1 }
 0x5d6   :  { %990 = vsyncpa [#allocation7 + $0x1], 1 }

</bundles_post_ra>
